<compile_context>
chip_gen: v6e
topology: v6e:2x2x1
jax: 0.10.0
libtpu: 0.0.40
codegen_flags: <defaults>
</compile_context>

<pallas_src>
import jax
import jax.numpy as jnp
from jax.experimental import pallas as pl
from jax.experimental.pallas import tpu as pltpu


def _round_up(x, m):
    return (x + m - 1) // m * m


def _mlp_kernel(v_ref, l_ref, w0v_ref, w0l_ref, b0_ref, w1_ref, b1_ref,
                w2_ref, b2_ref, o_ref):
    # v_ref, l_ref : (TILE_B, F)   bf16   visual / language tiles
    # w0v_ref      : (F, 1024)     bf16   first-layer weight, visual half
    # w0l_ref      : (F, 1024)     bf16   first-layer weight, language half
    # b0_ref       : (1, 1024)     f32
    # w1_ref       : (1024, 512)   bf16
    # b1_ref       : (1, 512)      f32
    # w2_ref       : (1, 512)      f32    last layer as a row vector (VPU path)
    # b2_ref       : (1, 1)        f32    scalar bias in SMEM
    # o_ref        : (1, TILE_B)   f32    lane-dense output row for this tile

    # Layer 0: concat(v, l) @ W0 + b0  ==  v @ W0[:F] + l @ W0[F:] + b0
    h0 = jnp.dot(v_ref[...], w0v_ref[...], preferred_element_type=jnp.float32)
    h0 = h0 + jnp.dot(l_ref[...], w0l_ref[...], preferred_element_type=jnp.float32)
    h0 = jnp.maximum(h0 + b0_ref[...], 0.0)

    # Layer 1: bf16 MXU inputs, f32 accumulate / elementwise.
    h1 = jnp.dot(h0.astype(jnp.bfloat16), w1_ref[...],
                 preferred_element_type=jnp.float32)
    h1 = jnp.maximum(h1 + b1_ref[...], 0.0)

    # Layer 2: N=1 matmul replaced by VPU multiply + XLU cross-lane reduce
    # (keeps the MXU free; final result laid out along lanes).
    row = jnp.sum(h1 * w2_ref[...], axis=-1) + b2_ref[0, 0]        # (TILE_B,)
    o_ref[...] = row[None, :].astype(o_ref.dtype)                  # lane-dense store


def symmetric_estimator(visual, language, params, *, tile_b=512):
    """Forward pass identical to SymmetricEstimator.forward (bf16 MXU inputs).

    visual:   (..., F) float32
    language: (..., F) float32
    returns:  (..., 1) float32
    """
    w0v, w0l, b0, w1, b1, w2, b2 = params
    assert visual.shape == language.shape
    lead_shape = visual.shape[:-1]
    feat = visual.shape[-1]

    v2d = visual.reshape(-1, feat)
    l2d = language.reshape(-1, feat)
    batch = v2d.shape[0]

    # Batch tile: multiple of 128 (full MXU M-rows, lane-dense output row),
    # capped near the (padded) batch so tiny batches don't over-pad.
    tile_b = min(tile_b, _round_up(batch, 128))
    padded = _round_up(batch, tile_b)
    if padded != batch:
        pad = ((0, padded - batch), (0, 0))
        v2d = jnp.pad(v2d, pad)
        l2d = jnp.pad(l2d, pad)

    # Only MXU operands go bf16; everything else stays f32 inside the kernel.
    v2d = v2d.astype(jnp.bfloat16)
    l2d = l2d.astype(jnp.bfloat16)

    num_tiles = padded // tile_b

    # Explicit VMEM budget: resident weights + 2x-buffered I/O tiles + f32
    # activations for one tile, with headroom; never below the 32 MiB scoped
    # default, never above 48 MiB (safe under v7x's 64 MiB physical VMEM).
    weight_bytes = (w0v.size + w0l.size + w1.size) * 2 \
        + (b0.size + b1.size + w2.size + b2.size) * 4
    io_bytes = 2 * (2 * tile_b * feat * 2) + 2 * tile_b * 4
    act_bytes = tile_b * (1024 + 512) * 4
    vmem_limit = int(min(48 * 1024 * 1024,
                         max(32 * 1024 * 1024,
                             weight_bytes + 2 * io_bytes + 4 * act_bytes)))

    # Advisory cost estimate for XLA's scheduler around the custom call.
    flops = 2 * padded * (2 * feat * 1024 + 1024 * 512 + 512)
    bytes_accessed = (2 * padded * feat * 2          # inputs (bf16)
                      + padded * 4                   # output (f32)
                      + weight_bytes)

    out = pl.pallas_call(
        _mlp_kernel,
        out_shape=jax.ShapeDtypeStruct((num_tiles, tile_b), jnp.float32),
        grid=(num_tiles,),
        in_specs=[
            pl.BlockSpec((tile_b, feat), lambda i: (i, 0)),   # visual tile
            pl.BlockSpec((tile_b, feat), lambda i: (i, 0)),   # language tile
            pl.BlockSpec(memory_space=pltpu.VMEM),            # w0v (resident)
            pl.BlockSpec(memory_space=pltpu.VMEM),            # w0l (resident)
            pl.BlockSpec(memory_space=pltpu.VMEM),            # b0
            pl.BlockSpec(memory_space=pltpu.VMEM),            # w1 (resident)
            pl.BlockSpec(memory_space=pltpu.VMEM),            # b1
            pl.BlockSpec(memory_space=pltpu.VMEM),            # w2 row vector
            pl.BlockSpec(memory_space=pltpu.SMEM),            # b2 scalar
        ],
        out_specs=pl.BlockSpec((1, tile_b), lambda i: (i, 0)),
        compiler_params=pltpu.CompilerParams(
            dimension_semantics=("parallel",),                # 2x on v7x dual-TC
            vmem_limit_bytes=vmem_limit,
        ),
        cost_estimate=pl.CostEstimate(flops=flops, transcendentals=0,
                                      bytes_accessed=bytes_accessed),
    )(v2d, l2d, w0v, w0l, b0, w1, b1, w2, b2)

    return out.reshape(-1)[:batch].reshape(lead_shape + (1,))


def init_params(in_feature, key):
    """Synthetic parameters matching nn.Linear(2F,1024) / (1024,512) / (512,1).

    Weights are stored [in, out] (so the kernel computes x @ W + b), W0 is split
    into visual/language halves, MXU weights are bf16, and w2 is a (1, 512) row.
    """
    k0, k1, k2, k3, k4, k5 = jax.random.split(key, 6)
    d0 = in_feature * 2
    w0 = jax.random.normal(k0, (d0, 1024), jnp.float32) * (1.0 / jnp.sqrt(d0))
    b0 = jax.random.normal(k1, (1, 1024), jnp.float32) * 0.01
    w1 = jax.random.normal(k2, (1024, 512), jnp.float32) * (1.0 / jnp.sqrt(1024.0))
    b1 = jax.random.normal(k3, (1, 512), jnp.float32) * 0.01
    w2 = jax.random.normal(k4, (1, 512), jnp.float32) * (1.0 / jnp.sqrt(512.0))
    b2 = jax.random.normal(k5, (1, 1), jnp.float32) * 0.01
    w0v = w0[:in_feature].astype(jnp.bfloat16)
    w0l = w0[in_feature:].astype(jnp.bfloat16)
    return (w0v, w0l, b0, w1.astype(jnp.bfloat16), b1, w2, b2)


def _reference(visual, language, params):
    """Plain-JAX reference with identical precision choices (bf16 MXU inputs)."""
    w0v, w0l, b0, w1, b1, w2, b2 = params
    v = visual.astype(jnp.bfloat16)
    l = language.astype(jnp.bfloat16)
    h0 = jax.nn.relu(
        jnp.dot(v, w0v, preferred_element_type=jnp.float32)
        + jnp.dot(l, w0l, preferred_element_type=jnp.float32) + b0)
    h1 = jax.nn.relu(
        jnp.dot(h0.astype(jnp.bfloat16), w1, preferred_element_type=jnp.float32) + b1)
    return jnp.sum(h1 * w2, axis=-1, keepdims=True) + b2


if __name__ == "__main__":
    key = jax.random.PRNGKey(0)
    k_v, k_l, k_p = jax.random.split(key, 3)

    in_feature = 32
    batch = 8

    visual = jax.random.normal(k_v, (batch, in_feature), jnp.float32)
    language = jax.random.normal(k_l, (batch, in_feature), jnp.float32)
    params = init_params(in_feature, k_p)

    out = symmetric_estimator(visual, language, params)
    out = jax.block_until_ready(out)

    ref = _reference(visual, language, params)
    assert out.shape == (batch, 1), out.shape
    assert jnp.allclose(out, ref, atol=2e-3, rtol=2e-3), (
        float(jnp.max(jnp.abs(out - ref))))

    print("KERNEL_OK")
</pallas_src>

<mosaic_0001>
module attributes {stable_mosaic.version = 11 : i64} {
  func.func @_mlp_kernel(%arg0: i32, %arg1: memref<128x32xbf16, #tpu.memory_space<vmem>>, %arg2: memref<128x32xbf16, #tpu.memory_space<vmem>>, %arg3: memref<32x1024xbf16, #tpu.memory_space<vmem>>, %arg4: memref<32x1024xbf16, #tpu.memory_space<vmem>>, %arg5: memref<1x1024xf32, #tpu.memory_space<vmem>>, %arg6: memref<1024x512xbf16, #tpu.memory_space<vmem>>, %arg7: memref<1x512xf32, #tpu.memory_space<vmem>>, %arg8: memref<1x512xf32, #tpu.memory_space<vmem>>, %arg9: memref<1x1xf32, #tpu.memory_space<smem>>, %arg10: memref<1x128xf32, #tpu.memory_space<vmem>>) attributes {dimension_semantics = [#tpu.dimension_semantics<parallel>], iteration_bounds = array<i64: 1>, scalar_prefetch = 0 : i64, scratch_operands = 0 : i64, tpu.core_type = #tpu.core_type<tc>, window_params = [{transform_indices = @transform_0, window_bounds = array<i64: 128, 32>}, {transform_indices = @transform_1, window_bounds = array<i64: 128, 32>}, {pipeline_mode = #tpu.pipeline_mode<synchronous>, transform_indices = @transform_2, window_bounds = array<i64: 32, 1024>}, {pipeline_mode = #tpu.pipeline_mode<synchronous>, transform_indices = @transform_3, window_bounds = array<i64: 32, 1024>}, {pipeline_mode = #tpu.pipeline_mode<synchronous>, transform_indices = @transform_4, window_bounds = array<i64: 1, 1024>}, {pipeline_mode = #tpu.pipeline_mode<synchronous>, transform_indices = @transform_5, window_bounds = array<i64: 1024, 512>}, {pipeline_mode = #tpu.pipeline_mode<synchronous>, transform_indices = @transform_6, window_bounds = array<i64: 1, 512>}, {pipeline_mode = #tpu.pipeline_mode<synchronous>, transform_indices = @transform_7, window_bounds = array<i64: 1, 512>}, {transform_indices = @transform_8, window_bounds = array<i64: 1, 1>}, {transform_indices = @transform_9, window_bounds = array<i64: 1, 128>}]} {
    %c0 = arith.constant 0 : index
    %c0_0 = arith.constant 0 : index
    %0 = vector.load %arg1[%c0, %c0_0] : memref<128x32xbf16, #tpu.memory_space<vmem>>, vector<128x32xbf16>
    %c0_1 = arith.constant 0 : index
    %c0_2 = arith.constant 0 : index
    %1 = vector.load %arg3[%c0_1, %c0_2] : memref<32x1024xbf16, #tpu.memory_space<vmem>>, vector<32x1024xbf16>
    %cst = arith.constant dense<0.000000e+00> : vector<128x1024xf32>
    %2 = tpu.matmul %0, %1, %cst {dimension_numbers = #tpu.dot_dimension_numbers<[1], [0], [0], [1], [0, 0, 1, 1], [], []>} : vector<128x32xbf16>, vector<32x1024xbf16>, vector<128x1024xf32> -> vector<128x1024xf32>
    %c0_3 = arith.constant 0 : index
    %c0_4 = arith.constant 0 : index
    %3 = vector.load %arg2[%c0_3, %c0_4] : memref<128x32xbf16, #tpu.memory_space<vmem>>, vector<128x32xbf16>
    %c0_5 = arith.constant 0 : index
    %c0_6 = arith.constant 0 : index
    %4 = vector.load %arg4[%c0_5, %c0_6] : memref<32x1024xbf16, #tpu.memory_space<vmem>>, vector<32x1024xbf16>
    %cst_7 = arith.constant dense<0.000000e+00> : vector<128x1024xf32>
    %5 = tpu.matmul %3, %4, %cst_7 {dimension_numbers = #tpu.dot_dimension_numbers<[1], [0], [0], [1], [0, 0, 1, 1], [], []>} : vector<128x32xbf16>, vector<32x1024xbf16>, vector<128x1024xf32> -> vector<128x1024xf32>
    %6 = arith.addf %2, %5 : vector<128x1024xf32>
    %c0_8 = arith.constant 0 : index
    %c0_9 = arith.constant 0 : index
    %7 = vector.load %arg5[%c0_8, %c0_9] : memref<1x1024xf32, #tpu.memory_space<vmem>>, vector<1x1024xf32>
    %8 = vector.broadcast %7 : vector<1x1024xf32> to vector<128x1024xf32>
    %9 = arith.addf %6, %8 : vector<128x1024xf32>
    %cst_10 = arith.constant 0.000000e+00 : f32
    %10 = vector.broadcast %cst_10 : f32 to vector<128x1024xf32>
    %11 = arith.maximumf %9, %10 : vector<128x1024xf32>
    %12 = arith.truncf %11 : vector<128x1024xf32> to vector<128x1024xbf16>
    %c0_11 = arith.constant 0 : index
    %c0_12 = arith.constant 0 : index
    %13 = vector.load %arg6[%c0_11, %c0_12] : memref<1024x512xbf16, #tpu.memory_space<vmem>>, vector<1024x512xbf16>
    %cst_13 = arith.constant dense<0.000000e+00> : vector<128x512xf32>
    %14 = tpu.matmul %12, %13, %cst_13 {dimension_numbers = #tpu.dot_dimension_numbers<[1], [0], [0], [1], [0, 0, 1, 1], [], []>} : vector<128x1024xbf16>, vector<1024x512xbf16>, vector<128x512xf32> -> vector<128x512xf32>
    %c0_14 = arith.constant 0 : index
    %c0_15 = arith.constant 0 : index
    %15 = vector.load %arg7[%c0_14, %c0_15] : memref<1x512xf32, #tpu.memory_space<vmem>>, vector<1x512xf32>
    %16 = vector.broadcast %15 : vector<1x512xf32> to vector<128x512xf32>
    %17 = arith.addf %14, %16 : vector<128x512xf32>
    %cst_16 = arith.constant 0.000000e+00 : f32
    %18 = vector.broadcast %cst_16 : f32 to vector<128x512xf32>
    %19 = arith.maximumf %17, %18 : vector<128x512xf32>
    %c0_17 = arith.constant 0 : index
    %c0_18 = arith.constant 0 : index
    %20 = vector.load %arg8[%c0_17, %c0_18] : memref<1x512xf32, #tpu.memory_space<vmem>>, vector<1x512xf32>
    %21 = vector.broadcast %20 : vector<1x512xf32> to vector<128x512xf32>
    %22 = arith.mulf %19, %21 : vector<128x512xf32>
    %cst_19 = arith.constant dense<0.000000e+00> : vector<128xf32>
    %23 = vector.multi_reduction <add>, %22, %cst_19 [1] : vector<128x512xf32> to vector<128xf32>
    %c0_20 = arith.constant 0 : index
    %c0_21 = arith.constant 0 : index
    %24 = memref.load %arg9[%c0_20, %c0_21] : memref<1x1xf32, #tpu.memory_space<smem>>
    %25 = vector.broadcast %24 : f32 to vector<128xf32>
    %26 = arith.addf %23, %25 : vector<128xf32>
    %27 = vector.shape_cast %26 : vector<128xf32> to vector<1x128xf32>
    %c0_22 = arith.constant 0 : index
    %c0_23 = arith.constant 0 : index
    %28 = vector.load %arg10[%c0_22, %c0_23] : memref<1x128xf32, #tpu.memory_space<vmem>>, vector<1x128xf32>
    tpu.vector_store %arg10[%c0_22, %c0_23], %27 {strides = array<i32>} : memref<1x128xf32, #tpu.memory_space<vmem>>, vector<1x128xf32>,
    return
  }
  func.func @transform_0(%arg0: i32) -> (i32, i32) {
    %c0_i32 = arith.constant 0 : i32
    %c0_i32_0 = arith.constant 0 : i32
    return %arg0, %c0_i32 : i32, i32
  }
  func.func @transform_1(%arg0: i32) -> (i32, i32) {
    %c0_i32 = arith.constant 0 : i32
    %c0_i32_0 = arith.constant 0 : i32
    return %arg0, %c0_i32 : i32, i32
  }
  func.func @transform_2(%arg0: i32) -> (i32, i32) {
    %c0_i32 = arith.constant 0 : i32
    %c0_i32_0 = arith.constant 0 : i32
    %c0_i32_1 = arith.constant 0 : i32
    return %c0_i32, %c0_i32_0 : i32, i32
  }
  func.func @transform_3(%arg0: i32) -> (i32, i32) {
    %c0_i32 = arith.constant 0 : i32
    %c0_i32_0 = arith.constant 0 : i32
    %c0_i32_1 = arith.constant 0 : i32
    return %c0_i32, %c0_i32_0 : i32, i32
  }
  func.func @transform_4(%arg0: i32) -> (i32, i32) {
    %c0_i32 = arith.constant 0 : i32
    %c0_i32_0 = arith.constant 0 : i32
    %c0_i32_1 = arith.constant 0 : i32
    return %c0_i32, %c0_i32_0 : i32, i32
  }
  func.func @transform_5(%arg0: i32) -> (i32, i32) {
    %c0_i32 = arith.constant 0 : i32
    %c0_i32_0 = arith.constant 0 : i32
    %c0_i32_1 = arith.constant 0 : i32
    return %c0_i32, %c0_i32_0 : i32, i32
  }
  func.func @transform_6(%arg0: i32) -> (i32, i32) {
    %c0_i32 = arith.constant 0 : i32
    %c0_i32_0 = arith.constant 0 : i32
    %c0_i32_1 = arith.constant 0 : i32
    return %c0_i32, %c0_i32_0 : i32, i32
  }
  func.func @transform_7(%arg0: i32) -> (i32, i32) {
    %c0_i32 = arith.constant 0 : i32
    %c0_i32_0 = arith.constant 0 : i32
    %c0_i32_1 = arith.constant 0 : i32
    return %c0_i32, %c0_i32_0 : i32, i32
  }
  func.func @transform_8(%arg0: i32) -> (i32, i32) {
    %c0_i32 = arith.constant 0 : i32
    %c0_i32_0 = arith.constant 0 : i32
    %c0_i32_1 = arith.constant 0 : i32
    return %c0_i32, %c0_i32_0 : i32, i32
  }
  func.func @transform_9(%arg0: i32) -> (i32, i32) {
    %c0_i32 = arith.constant 0 : i32
    %c0_i32_0 = arith.constant 0 : i32
    return %arg0, %c0_i32 : i32, i32
  }
}

</mosaic_0001>

<bundles_post_ra>
// kernel: tpu_custom_call.1
= control target key start
LH: loop header
LB: loop body
LE: loop exit
PB: predicated region body
PF: predicated region fallthrough
CT: control target
= control target key end

     0   :  { %15 = vsyncpa [#allocation4], 0  ;;  %s7130_s0 = inlined_call_operand.vmem [shape: bf16[128,32], index: 0, kind: input, shape index: {}]   ;;  %s7131_s1 = inlined_call_operand.vmem [shape: bf16[128,32], index: 1, kind: input, shape index: {}]   ;;  %s7132_s2 = inlined_call_operand.vmem [shape: bf16[32,1024], index: 2, kind: input, shape index: {}]   ;;  %s7133_s3 = inlined_call_operand.hbm [shape: bf16[32,1024], index: 3, kind: input, shape index: {}]   ;;  %s7134_s4 = inlined_call_operand.vmem [shape: f32[1,1024], index: 4, kind: input, shape index: {}]   ;;  %s7135_s5 = inlined_call_operand.hbm [shape: bf16[1024,512], index: 5, kind: input, shape index: {}]   ;;  %s7136_s6 = inlined_call_operand.vmem [shape: f32[1,512], index: 6, kind: input, shape index: {}]   ;;  %s7137_s7 = inlined_call_operand.vmem [shape: f32[1,512], index: 7, kind: input, shape index: {}]   ;;  %s7138_s8 = inlined_call_operand.<no memory space> [shape: f32[1,1], index: 8, kind: input, shape index: {}]   ;;  %s7139_s9 = inlined_call_operand.hbm [shape: f32[1,128], index: 9, kind: output, shape index: {}]  }
   0x1   :  { %16 = vsyncpa [#allocation7], 0 }
   0x2   :  { %17 = vsyncpa [#allocation5], 0  ;;  %s5379_s30 = smov [#allocation3]  }
   0x3   :  { %s29_s10 = sshll.u32 %s5379_s30, 4  ;;  %s30_s10 = int_to_ptr.vmem [resolvable:$true] %s29_s10 }
   0x4   :  { %s5321_s11 = scalar_lea.vmem %s30_s10, 2048  ;;  %p5326_p1 = scmp.lt.s32.totalorder %s30_s10, %s30_s10 }
   0x5   :  { %p5322_p0 = scmp.ne.s32.totalorder %s30_s10, %s5321_s11  ;;  %p5327_p2 = scmp.lt.s32.totalorder %s5321_s11, %s5321_s11 }
   0x7   :  { %p5328_p3 = por %p5327_p2, %p5326_p1 }
   0x9   :  { %p5329_p4 = pnand %p5328_p3, %p5322_p0 }
   0xb   :  { %5332 = shalt.err (!%p5329_p4)
}
   0xc   :  { %s5380_s12 = smov 512   ;;  %s5381_s13 = smov 32  }
   0xd   :  { %35 = dma.hbm_to_vmem [thread:$0]  %s7133_s3, 2048, %s30_s10, [#allocation4], %s5380_s12, %s5380_s12, %s5381_s13  }
   0xe   :  { %s5382_s16 = smov [#allocation6]  }
   0xf   :  { %s43_s17 = sshll.u32 %s5382_s16, 4  ;;  %s44_s17 = int_to_ptr.vmem [resolvable:$true] %s43_s17 }
  0x10   :  { %s5341_s18 = scalar_lea.vmem %s44_s17, 32768  ;;  %p5346_p6 = scmp.lt.s32.totalorder %s44_s17, %s44_s17 }
  0x11   :  { %p5342_p5 = scmp.ne.s32.totalorder %s44_s17, %s5341_s18  ;;  %p5347_p7 = scmp.lt.s32.totalorder %s5341_s18, %s5341_s18 }
  0x13   :  { %p5348_p8 = por %p5347_p7, %p5346_p6 }
  0x15   :  { %p5349_p9 = pnand %p5348_p8, %p5342_p5 }
  0x17   :  { %5352 = shalt.err (!%p5349_p9)
}
  0x18   :  { %s5383_s19 = smov 256   ;;  %s5384_s20 = smov 16  }
  0x19   :  { %49 = dma.hbm_to_vmem [thread:$0]  %s7135_s5, 32768, %s44_s17, [#allocation7], %s5383_s19, %s5383_s19, %s5384_s20  }
  0x1a   :  { %5373 = dma.done.wait [#allocation4], 2048  }
  0x1b   :  { %5374 = vsyncadd [#allocation4], 4294965248 }
  0x1c   :  { %5375 = dma.done.wait [#allocation7], 32768  }
  0x1d   :  { %5376 = vsyncadd [#allocation7], 4294934528  ;;  %v5385_v0 = vmov 0   ;;  %v119_v1 = vld [vmem:[#allocation3 + $0x40] sm:$0xff]  ;;  %v120_v3 = vld [vmem:[#allocation3 + $0x48] sm:$0xff]  ;;  %vm247_vm0 = vcmask 261120  }
  0x1e   :  { %304 = vmatprep.mubr.bf16.mxu0 %v5385_v0  ;;  %417 = vmatprep.mubr.bf16.mxu1 %v5385_v0  ;;  %v123_v2 = vld [vmem:[#allocation3 + $0x60] sm:$0xff]  ;;  %v124_v5 = vld [vmem:[#allocation3 + $0x68] sm:$0xff]  ;;  %v121_v15 = vld [vmem:[#allocation3 + $0x50] sm:$0xff]  ;;  %vm4419_vm1 = vcmask 130112   ;;  %vm4426_vm2 = vcmask 195712   ;;  %vm4433_vm3 = vcmask 261312  }
  0x1f   :  { %v4554_v4 = vcombine.high %v119_v1, %v123_v2  ;;  %v4553_v6 = vcombine.low %v119_v1, %v123_v2  ;;  %v111_v7 = vld [vmem:[#allocation3] sm:$0xff]  ;;  %v4556_v9 = vcombine.high %v120_v3, %v124_v5  ;;  %v4555_v10 = vcombine.low %v120_v3, %v124_v5  ;;  %v112_v12 = vld [vmem:[#allocation3 + $0x8] sm:$0xff]  ;;  %v125_v17 = vld [vmem:[#allocation3 + $0x70] sm:$0xff] }
  0x20   :  { %v115_v8 = vld [vmem:[#allocation3 + $0x20] sm:$0xff]  ;;  %v116_v13 = vld [vmem:[#allocation3 + $0x28] sm:$0xff]  ;;  %v122_v18 = vld [vmem:[#allocation3 + $0x58] sm:$0xff]  ;;  %v4558_v21 = vcombine.high %v121_v15, %v125_v17  ;;  %v4557_v24 = vcombine.low %v121_v15, %v125_v17  ;;  %vm4440_vm4 = vcmask 326912   ;;  %vm4447_vm5 = vcmask 392512  }
  0x21   :  { %v4546_v11 = vcombine.high %v111_v7, %v115_v8  ;;  %284 = vmatprep.subr.bf16.mxu0 %v4554_v4  ;;  %v4548_v14 = vcombine.high %v112_v12, %v116_v13  ;;  %397 = vmatprep.subr.bf16.mxu1 %v4556_v9  ;;  %v4545_v16 = vcombine.low %v111_v7, %v115_v8  ;;  %v126_v19 = vld [vmem:[#allocation3 + $0x78] sm:$0xff]  ;;  %v5448_v23 = vld [vmem:[%s7131_s1] sm:$0xff]   ;;  %v113_v26 = vld [vmem:[#allocation3 + $0x10] sm:$0xff]  ;;  %vm4454_vm6 = vcmask 458112  }
  0x22   :  { %285 = vmatpush1.bf16.msra.mxu0 %v4553_v6  ;;  %398 = vmatpush1.bf16.msra.mxu1 %v4555_v10  ;;  %v4547_v20 = vcombine.low %v112_v12, %v116_v13  ;;  %v4560_v22 = vcombine.high %v122_v18, %v126_v19  ;;  %v4559_v25 = vcombine.low %v122_v18, %v126_v19  ;;  %v117_v27 = vld [vmem:[#allocation3 + $0x30] sm:$0xff]  ;;  %v114_v28 = vld [vmem:[#allocation3 + $0x18] sm:$0xff]  ;;  %v87_v34 = vld [vmem:[%s7132_s2 + $0x40] sm:$0xff]  ;;  %vm4461_vm7 = vcmask 523712  }
  0x23   :  { %286 = vmatprep.subr.bf16.mxu0 %v4546_v11  ;;  %399 = vmatprep.subr.bf16.mxu1 %v4548_v14  ;;  %v4550_v29 = vcombine.high %v113_v26, %v117_v27  ;;  %v118_v30 = vld [vmem:[#allocation3 + $0x38] sm:$0xff]  ;;  %v4549_v32 = vcombine.low %v113_v26, %v117_v27  ;;  %v91_v35 = vld [vmem:[%s7132_s2 + $0x60] sm:$0xff]  ;;  %v88_v37 = vld [vmem:[%s7132_s2 + $0x48] sm:$0xff]  ;;  %vm4468_vm8 = vcmask 589312   ;;  %vm4475_vm9 = vcmask 654912  }
  0x24   :  { %v4552_v31 = vcombine.high %v114_v28, %v118_v30  ;;  %v4551_v33 = vcombine.low %v114_v28, %v118_v30  ;;  %v4610_v36 = vcombine.high %v87_v34, %v91_v35  ;;  %v92_v38 = vld [vmem:[%s7132_s2 + $0x68] sm:$0xff]  ;;  %v5482_v41 = vld [vmem:[%s7131_s1 + $0x10] sm:$0xff]   ;;  %v4916_v42 = vld [vmem:[%s7131_s1 + $0x18] sm:$0xff]   ;;  %v4609_v51 = vcombine.low %v87_v34, %v91_v35 }
  0x25   :  { %v5471_v39 = vld [vmem:[%s7131_s1 + $0x8] sm:$0xff]   ;;  %v4612_v40 = vcombine.high %v88_v37, %v92_v38  ;;  %v4917_v43 = vld [vmem:[%s7131_s1 + $0x20] sm:$0xff]   ;;  %v4919_v45 = vld [vmem:[%s7131_s1 + $0x30] sm:$0xff]   ;;  %v4611_v54 = vcombine.low %v88_v37, %v92_v38  ;;  %vm4482_vm10 = vcmask 720512   ;;  %vm4489_vm11 = vcmask 786112  }
  0x26   :  { %287 = vmatpush1.bf16.msra.mxu0 %v4545_v16  ;;  %400 = vmatpush1.bf16.msra.mxu1 %v4547_v20  ;;  %v4918_v44 = vld [vmem:[%s7131_s1 + $0x28] sm:$0xff]   ;;  %v4920_v46 = vld [vmem:[%s7131_s1 + $0x38] sm:$0xff]   ;;  %v79_v47 = vld [vmem:[%s7132_s2] sm:$0xff]  ;;  %vm4496_vm12 = vcmask 851712   ;;  %vm4503_vm13 = vcmask 917312   ;;  %vm4510_vm14 = vcmask 982912  }
  0x27   :  { %510 = vmatprep.subr.bf16.mxu0 %v4558_v21  ;;  %623 = vmatprep.subr.bf16.mxu1 %v4560_v22  ;;  %v83_v48 = vld [vmem:[%s7132_s2 + $0x20] sm:$0xff]  ;;  %v80_v49 = vld [vmem:[%s7132_s2 + $0x8] sm:$0xff]  ;;  %v89_v52 = vld [vmem:[%s7132_s2 + $0x50] sm:$0xff]  ;;  %vm4517_vm15 = vcmask 1048512  }
  0x28   :  { %v84_v50 = vld [vmem:[%s7132_s2 + $0x28] sm:$0xff]  ;;  %v93_v53 = vld [vmem:[%s7132_s2 + $0x70] sm:$0xff]  ;;  %v90_v55 = vld [vmem:[%s7132_s2 + $0x58] sm:$0xff]  ;;  %v4602_v57 = vcombine.high %v79_v47, %v83_v48  ;;  %v4601_v59 = vcombine.low %v79_v47, %v83_v48 }
  0x29   :  { %4561 = vmatmul.mubr.msk.bf16.vlgmr.msra.gmra.mxu0 %vm247_vm0, %v5448_v23  ;;  %4569 = vmatmul.mubr.msk.bf16.vlgmr.msra.gmra.mxu1 %vm247_vm0, %v5448_v23  ;;  %v94_v56 = vld [vmem:[%s7132_s2 + $0x78] sm:$0xff]  ;;  %v4604_v58 = vcombine.high %v80_v49, %v84_v50  ;;  %v4603_v60 = vcombine.low %v80_v49, %v84_v50  ;;  %v4614_v61 = vcombine.high %v89_v52, %v93_v53  ;;  %v5590_v63 = vld [vmem:[%s7130_s0] sm:$0xff]   ;;  %v81_v1 = vld [vmem:[%s7132_s2 + $0x10] sm:$0xff] }
  0x2a   :  { %511 = vmatpush1.bf16.msra.mxu0 %v4557_v24  ;;  %624 = vmatpush1.bf16.msra.mxu1 %v4559_v25  ;;  %v4616_v62 = vcombine.high %v90_v55, %v94_v56  ;;  %v85_v2 = vld [vmem:[%s7132_s2 + $0x30] sm:$0xff]  ;;  %v4613_v3 = vcombine.low %v89_v52, %v93_v53  ;;  %v82_v4 = vld [vmem:[%s7132_s2 + $0x18] sm:$0xff]  ;;  %v4615_v6 = vcombine.low %v90_v55, %v94_v56  ;;  %v5613_v11 = vld [vmem:[%s7130_s0 + $0x8] sm:$0xff]  }
  0x2b   :  { %314 = vmatprep.mubr.bf16.mxu0 %v5385_v0  ;;  %427 = vmatprep.mubr.bf16.mxu1 %v5385_v0  ;;  %v86_v5 = vld [vmem:[%s7132_s2 + $0x38] sm:$0xff]  ;;  %v4606_v7 = vcombine.high %v81_v1, %v85_v2  ;;  %v4605_v9 = vcombine.low %v81_v1, %v85_v2  ;;  %v5624_v12 = vld [vmem:[%s7130_s0 + $0x10] sm:$0xff]   ;;  %v5646_v16 = vld [vmem:[%s7130_s0 + $0x20] sm:$0xff]  }
  0x2c   :  { %512 = vmatprep.subr.bf16.mxu0 %v4550_v29  ;;  %625 = vmatprep.subr.bf16.mxu1 %v4552_v31  ;;  %v4608_v8 = vcombine.high %v82_v4, %v86_v5  ;;  %v4607_v10 = vcombine.low %v82_v4, %v86_v5  ;;  %v4931_v13 = vld [vmem:[#allocation6 + $0xe4] ss:$16 sps:$4 sm:$0xff]   ;;  %v5635_v15 = vld [vmem:[%s7130_s0 + $0x18] sm:$0xff]   ;;  %v5657_v17 = vld [vmem:[%s7130_s0 + $0x28] sm:$0xff]  }
  0x2d   :  { %v4934_v14 = vld [vmem:[#allocation6 + $0x2e4] ss:$16 sps:$4 sm:$0xff]   ;;  %v5679_v19 = vld [vmem:[%s7130_s0 + $0x38] sm:$0xff]   ;;  %v4929_v20 = vld [vmem:[#allocation6 + $0xe0] ss:$16 sps:$4 sm:$0xff]  }
  0x2e   :  { %513 = vmatpush1.bf16.msra.mxu0 %v4549_v32  ;;  %626 = vmatpush1.bf16.msra.mxu1 %v4551_v33  ;;  %v5668_v18 = vld [vmem:[%s7130_s0 + $0x30] sm:$0xff]  }
  0x2f   :  { %880 = vmatprep.subr.bf16.mxu0 %v4610_v36  ;;  %993 = vmatprep.subr.bf16.mxu1 %v4612_v40  ;;  %v4932_v21 = vld [vmem:[#allocation6 + $0x2e0] ss:$16 sps:$4 sm:$0xff]   ;;  %v4937_v22 = vld [vmem:[#allocation6 + $0xc4] ss:$16 sps:$4 sm:$0xff]  }
  0x30   :  { %v4940_v24 = vld [vmem:[#allocation6 + $0x2c4] ss:$16 sps:$4 sm:$0xff]   ;;  %v4935_v27 = vld [vmem:[#allocation6 + $0xc0] ss:$16 sps:$4 sm:$0xff]  }
  0x31   :  { %4562 = vmatmul.mubr.msk.bf16.gmra.mxu0 %vm247_vm0, %v5471_v39  ;;  %4570 = vmatmul.mubr.msk.bf16.gmra.mxu1 %vm247_vm0, %v5471_v39  ;;  %v4938_v29 = vld [vmem:[#allocation6 + $0x2c0] ss:$16 sps:$4 sm:$0xff]   ;;  %v4943_v30 = vld [vmem:[#allocation6 + $0xa4] ss:$16 sps:$4 sm:$0xff]  }
  0x32   :  { %324 = vmatprep.mubr.bf16.mxu0 %v5385_v0  ;;  %437 = vmatprep.mubr.bf16.mxu1 %v5385_v0  ;;  %v4946_v32 = vld [vmem:[#allocation6 + $0x2a4] ss:$16 sps:$4 sm:$0xff]   ;;  %v4941_v35 = vld [vmem:[#allocation6 + $0xa0] ss:$16 sps:$4 sm:$0xff]  }
  0x33   :  { %v4944_v37 = vld [vmem:[#allocation6 + $0x2a0] ss:$16 sps:$4 sm:$0xff]   ;;  %v4949_v38 = vld [vmem:[#allocation6 + $0x84] ss:$16 sps:$4 sm:$0xff]  }
  0x34   :  { %v4952_v40 = vld [vmem:[#allocation6 + $0x284] ss:$16 sps:$4 sm:$0xff]   ;;  %v4956_v53 = vld [vmem:[#allocation6 + $0x260] ss:$16 sps:$4 sm:$0xff]  }
  0x35   :  { %v4958_v48 = vld [vmem:[#allocation6 + $0x264] ss:$16 sps:$4 sm:$0xff]   ;;  %v4965_v4 = vld [vmem:[#allocation6 + $0x20] ss:$16 sps:$4 sm:$0xff]  }
  0x36   :  { %v4964_v56 = vld [vmem:[#allocation6 + $0x244] ss:$16 sps:$4 sm:$0xff]  }
  0x37   :  { %v4970_v1 = vld [vmem:[#allocation6 + $0x224] ss:$16 sps:$4 sm:$0xff]  }
  0x39   :  { %4563 = vmatmul.mubr.msk.bf16.gmra.mxu0 %vm247_vm0, %v5482_v41  ;;  %4571 = vmatmul.mubr.msk.bf16.gmra.mxu1 %vm247_vm0, %v5482_v41 }
  0x3a   :  { %334 = vmatprep.mubr.bf16.mxu0 %v5385_v0  ;;  %447 = vmatprep.mubr.bf16.mxu1 %v5385_v0 }
  0x41   :  { %4564 = vmatmul.mubr.msk.bf16.gmra.mxu0 %vm247_vm0, %v4916_v42  ;;  %4572 = vmatmul.mubr.msk.bf16.gmra.mxu1 %vm247_vm0, %v4916_v42 }
  0x42   :  { %344 = vmatprep.mubr.bf16.mxu0 %v5385_v0  ;;  %457 = vmatprep.mubr.bf16.mxu1 %v5385_v0 }
  0x49   :  { %4565 = vmatmul.mubr.msk.bf16.gmra.mxu0 %vm247_vm0, %v4917_v43  ;;  %4573 = vmatmul.mubr.msk.bf16.gmra.mxu1 %vm247_vm0, %v4917_v43 }
  0x4a   :  { %354 = vmatprep.mubr.bf16.mxu0 %v5385_v0  ;;  %467 = vmatprep.mubr.bf16.mxu1 %v5385_v0 }
  0x51   :  { %4566 = vmatmul.mubr.msk.bf16.gmra.mxu0 %vm247_vm0, %v4918_v44  ;;  %4574 = vmatmul.mubr.msk.bf16.gmra.mxu1 %vm247_vm0, %v4918_v44 }
  0x52   :  { %364 = vmatprep.mubr.bf16.mxu0 %v5385_v0  ;;  %477 = vmatprep.mubr.bf16.mxu1 %v5385_v0 }
  0x59   :  { %4567 = vmatmul.mubr.msk.bf16.gmra.mxu0 %vm247_vm0, %v4919_v45  ;;  %4575 = vmatmul.mubr.msk.bf16.gmra.mxu1 %vm247_vm0, %v4919_v45 }
  0x5a   :  { %374 = vmatprep.mubr.bf16.mxu0 %v5385_v0  ;;  %487 = vmatprep.mubr.bf16.mxu1 %v5385_v0 }
  0x61   :  { %4568 = vmatmul.mubr.msk.bf16.gmra.mxu0 %vm247_vm0, %v4920_v46  ;;  %4576 = vmatmul.mubr.msk.bf16.gmra.mxu1 %vm247_vm0, %v4920_v46 }
  0x62   :  { %530 = vmatprep.mubr.bf16.mxu0 %v5385_v0  ;;  %643 = vmatprep.mubr.bf16.mxu1 %v5385_v0 }
  0x69   :  { %4577 = vmatmul.mubr.msk.bf16.vlgmr.msra.gmra.mxu0 %vm247_vm0, %v5448_v23  ;;  %4585 = vmatmul.mubr.msk.bf16.vlgmr.msra.gmra.mxu1 %vm247_vm0, %v5448_v23 }
  0x6a   :  { %881 = vmatpush1.bf16.msra.mxu0 %v4609_v51  ;;  %994 = vmatpush1.bf16.msra.mxu1 %v4611_v54  ;;  %v4953_v51 = vld [vmem:[#allocation6 + $0x60] ss:$16 sps:$4 sm:$0xff]   ;;  %v4961_v54 = vld [vmem:[#allocation6 + $0x44] ss:$16 sps:$4 sm:$0xff]  }
  0x6b   :  { %540 = vmatprep.mubr.bf16.mxu0 %v5385_v0  ;;  %653 = vmatprep.mubr.bf16.mxu1 %v5385_v0 }
  0x6c   :  { %882 = vmatprep.subr.bf16.mxu0 %v4602_v57  ;;  %995 = vmatprep.subr.bf16.mxu1 %v4604_v58 }
  0x6e   :  { %883 = vmatpush1.bf16.msra.mxu0 %v4601_v59  ;;  %996 = vmatpush1.bf16.msra.mxu1 %v4603_v60  ;;  %v4959_v59 = vld [vmem:[#allocation6 + $0x40] ss:$16 sps:$4 sm:$0xff]  }
  0x6f   :  { %1106 = vmatprep.subr.bf16.mxu0 %v4614_v61  ;;  %1219 = vmatprep.subr.bf16.mxu1 %v4616_v62  ;;  %v4962_v61 = vld [vmem:[#allocation6 + $0x240] ss:$16 sps:$4 sm:$0xff]   ;;  %v4967_v62 = vld [vmem:[#allocation6 + $0x24] ss:$16 sps:$4 sm:$0xff]  }
  0x71   :  { %4578 = vmatmul.mubr.msk.bf16.gmra.mxu0 %vm247_vm0, %v5471_v39  ;;  %4586 = vmatmul.mubr.msk.bf16.gmra.mxu1 %vm247_vm0, %v5471_v39 }
  0x72   :  { %550 = vmatprep.mubr.bf16.mxu0 %v5385_v0  ;;  %663 = vmatprep.mubr.bf16.mxu1 %v5385_v0 }
  0x79   :  { %4579 = vmatmul.mubr.msk.bf16.gmra.mxu0 %vm247_vm0, %v5482_v41  ;;  %4587 = vmatmul.mubr.msk.bf16.gmra.mxu1 %vm247_vm0, %v5482_v41 }
  0x7a   :  { %560 = vmatprep.mubr.bf16.mxu0 %v5385_v0  ;;  %673 = vmatprep.mubr.bf16.mxu1 %v5385_v0 }
  0x81   :  { %4580 = vmatmul.mubr.msk.bf16.gmra.mxu0 %vm247_vm0, %v4916_v42  ;;  %4588 = vmatmul.mubr.msk.bf16.gmra.mxu1 %vm247_vm0, %v4916_v42 }
  0x82   :  { %570 = vmatprep.mubr.bf16.mxu0 %v5385_v0  ;;  %683 = vmatprep.mubr.bf16.mxu1 %v5385_v0 }
  0x89   :  { %4581 = vmatmul.mubr.msk.bf16.gmra.mxu0 %vm247_vm0, %v4917_v43  ;;  %4589 = vmatmul.mubr.msk.bf16.gmra.mxu1 %vm247_vm0, %v4917_v43  ;;  %v4947_v43 = vld [vmem:[#allocation6 + $0x80] ss:$16 sps:$4 sm:$0xff]  }
  0x8a   :  { %580 = vmatprep.mubr.bf16.mxu0 %v5385_v0  ;;  %693 = vmatprep.mubr.bf16.mxu1 %v5385_v0 }
  0x91   :  { %4582 = vmatmul.mubr.msk.bf16.gmra.mxu0 %vm247_vm0, %v4918_v44  ;;  %4590 = vmatmul.mubr.msk.bf16.gmra.mxu1 %vm247_vm0, %v4918_v44 }
  0x92   :  { %590 = vmatprep.mubr.bf16.mxu0 %v5385_v0  ;;  %703 = vmatprep.mubr.bf16.mxu1 %v5385_v0 }
  0x99   :  { %4583 = vmatmul.mubr.msk.bf16.gmra.mxu0 %vm247_vm0, %v4919_v45  ;;  %4591 = vmatmul.mubr.msk.bf16.gmra.mxu1 %vm247_vm0, %v4919_v45  ;;  %v4950_v45 = vld [vmem:[#allocation6 + $0x280] ss:$16 sps:$4 sm:$0xff]  }
  0x9a   :  { %600 = vmatprep.mubr.bf16.mxu0 %v5385_v0  ;;  %713 = vmatprep.mubr.bf16.mxu1 %v5385_v0 }
  0xa1   :  { %4584 = vmatmul.mubr.msk.bf16.gmra.mxu0 %vm247_vm0, %v4920_v46  ;;  %4592 = vmatmul.mubr.msk.bf16.gmra.mxu1 %vm247_vm0, %v4920_v46  ;;  %v4955_v46 = vld [vmem:[#allocation6 + $0x64] ss:$16 sps:$4 sm:$0xff]  }
  0xa2   :  { %900 = vmatprep.mubr.bf16.mxu0 %v5385_v0  ;;  %1013 = vmatprep.mubr.bf16.mxu1 %v5385_v0 }
  0xa9   :  { %4617 = vmatmul.mubr.msk.bf16.vlgmr.msra.gmra.mxu0 %vm247_vm0, %v5590_v63  ;;  %4625 = vmatmul.mubr.msk.bf16.vlgmr.msra.gmra.mxu1 %vm247_vm0, %v5590_v63 }
  0xaa   :  { %1107 = vmatpush1.bf16.msra.mxu0 %v4613_v3  ;;  %1220 = vmatpush1.bf16.msra.mxu1 %v4615_v6  ;;  %v4968_v6 = vld [vmem:[#allocation6 + $0x220] ss:$16 sps:$4 sm:$0xff]  }
  0xab   :  { %910 = vmatprep.mubr.bf16.mxu0 %v5385_v0  ;;  %1023 = vmatprep.mubr.bf16.mxu1 %v5385_v0 }
  0xac   :  { %1108 = vmatprep.subr.bf16.mxu0 %v4606_v7  ;;  %1221 = vmatprep.subr.bf16.mxu1 %v4608_v8  ;;  %v4973_v7 = vld [vmem:[#allocation6 + $0x4] ss:$16 sps:$4 sm:$0xff]  }
  0xae   :  { %1109 = vmatpush1.bf16.msra.mxu0 %v4605_v9  ;;  %1222 = vmatpush1.bf16.msra.mxu1 %v4607_v10  ;;  %v4976_v9 = vld [vmem:[#allocation6 + $0x204] ss:$16 sps:$4 sm:$0xff]  }
  0xaf   :  { %3240 = vmatprep.subr.bf16.mxu0 %v4931_v13  ;;  %3353 = vmatprep.subr.bf16.mxu1 %v4934_v14  ;;  %v4974_v14 = vld [vmem:[#allocation6 + $0x200] ss:$16 sps:$4 sm:$0xff]  }
  0xb1   :  { %4618 = vmatmul.mubr.msk.bf16.gmra.mxu0 %vm247_vm0, %v5613_v11  ;;  %4626 = vmatmul.mubr.msk.bf16.gmra.mxu1 %vm247_vm0, %v5613_v11 }
  0xb2   :  { %920 = vmatprep.mubr.bf16.mxu0 %v5385_v0  ;;  %1033 = vmatprep.mubr.bf16.mxu1 %v5385_v0 }
  0xb9   :  { %4619 = vmatmul.mubr.msk.bf16.gmra.mxu0 %vm247_vm0, %v5624_v12  ;;  %4627 = vmatmul.mubr.msk.bf16.gmra.mxu1 %vm247_vm0, %v5624_v12 }
  0xba   :  { %930 = vmatprep.mubr.bf16.mxu0 %v5385_v0  ;;  %1043 = vmatprep.mubr.bf16.mxu1 %v5385_v0 }
  0xc1   :  { %4620 = vmatmul.mubr.msk.bf16.gmra.mxu0 %vm247_vm0, %v5635_v15  ;;  %4628 = vmatmul.mubr.msk.bf16.gmra.mxu1 %vm247_vm0, %v5635_v15 }
  0xc2   :  { %940 = vmatprep.mubr.bf16.mxu0 %v5385_v0  ;;  %1053 = vmatprep.mubr.bf16.mxu1 %v5385_v0 }
  0xc9   :  { %4621 = vmatmul.mubr.msk.bf16.gmra.mxu0 %vm247_vm0, %v5646_v16  ;;  %4629 = vmatmul.mubr.msk.bf16.gmra.mxu1 %vm247_vm0, %v5646_v16 }
  0xca   :  { %950 = vmatprep.mubr.bf16.mxu0 %v5385_v0  ;;  %1063 = vmatprep.mubr.bf16.mxu1 %v5385_v0 }
  0xd1   :  { %4622 = vmatmul.mubr.msk.bf16.gmra.mxu0 %vm247_vm0, %v5657_v17  ;;  %4630 = vmatmul.mubr.msk.bf16.gmra.mxu1 %vm247_vm0, %v5657_v17 }
  0xd2   :  { %960 = vmatprep.mubr.bf16.mxu0 %v5385_v0  ;;  %1073 = vmatprep.mubr.bf16.mxu1 %v5385_v0 }
  0xd9   :  { %4623 = vmatmul.mubr.msk.bf16.gmra.mxu0 %vm247_vm0, %v5668_v18  ;;  %4631 = vmatmul.mubr.msk.bf16.gmra.mxu1 %vm247_vm0, %v5668_v18 }
  0xda   :  { %970 = vmatprep.mubr.bf16.mxu0 %v5385_v0  ;;  %1083 = vmatprep.mubr.bf16.mxu1 %v5385_v0 }
  0xe1   :  { %4624 = vmatmul.mubr.msk.bf16.gmra.mxu0 %vm247_vm0, %v5679_v19  ;;  %4632 = vmatmul.mubr.msk.bf16.gmra.mxu1 %vm247_vm0, %v5679_v19 }
  0xe2   :  { %1126 = vmatprep.mubr.bf16.mxu0 %v5385_v0  ;;  %1239 = vmatprep.mubr.bf16.mxu1 %v5385_v0 }
  0xe9   :  { %v5687_v23 = vpop.f32.mrf.mxu0  ;;  %4633 = vmatmul.mubr.msk.bf16.vlgmr.msra.gmra.mxu0 %vm247_vm0, %v5590_v63  ;;  %v5691_v25 = vpop.f32.mrf.mxu1  ;;  %4641 = vmatmul.mubr.msk.bf16.vlgmr.msra.gmra.mxu1 %vm247_vm0, %v5590_v63 }
  0xea   :  { %1136 = vmatprep.mubr.bf16.mxu0 %v5385_v0  ;;  %1249 = vmatprep.mubr.bf16.mxu1 %v5385_v0 }
  0xeb   :  { %v5696_v26 = vpop.f32.mrf.mxu0  ;;  %3241 = vmatpush1.bf16.msra.mxu0 %v4929_v20  ;;  %v5699_v28 = vpop.f32.mrf.mxu1  ;;  %3354 = vmatpush1.bf16.msra.mxu1 %v4932_v21  ;;  %v4979_v20 = vld [vmem:[#allocation6 + $0x1e4] ss:$16 sps:$4 sm:$0xff]  }
  0xec   :  { %3242 = vmatprep.subr.bf16.mxu0 %v4937_v22  ;;  %3355 = vmatprep.subr.bf16.mxu1 %v4940_v24  ;;  %v4982_v22 = vld [vmem:[#allocation6 + $0x3e4] ss:$16 sps:$4 sm:$0xff]  }
  0xed   :  { %v5701_v31 = vpop.f32.mrf.mxu0  ;;  %v5703_v33 = vpop.f32.mrf.mxu1 }
  0xef   :  { %v5705_v34 = vpop.f32.mrf.mxu0  ;;  %3243 = vmatpush1.bf16.msra.mxu0 %v4935_v27  ;;  %v5707_v36 = vpop.f32.mrf.mxu1  ;;  %3356 = vmatpush1.bf16.msra.mxu1 %v4938_v29  ;;  %v4977_v27 = vld [vmem:[#allocation6 + $0x1e0] ss:$16 sps:$4 sm:$0xff]  }
  0xf0   :  { %3244 = vmatprep.subr.bf16.mxu0 %v4943_v30  ;;  %3357 = vmatprep.subr.bf16.mxu1 %v4946_v32  ;;  %v4980_v30 = vld [vmem:[#allocation6 + $0x3e0] ss:$16 sps:$4 sm:$0xff]   ;;  %v4985_v32 = vld [vmem:[#allocation6 + $0x1c4] ss:$16 sps:$4 sm:$0xff]  }
  0xf1   :  { %v5709_v39 = vpop.f32.mrf.mxu0  ;;  %4634 = vmatmul.mubr.msk.bf16.gmra.mxu0 %vm247_vm0, %v5613_v11  ;;  %v5713_v41 = vpop.f32.mrf.mxu1  ;;  %4642 = vmatmul.mubr.msk.bf16.gmra.mxu1 %vm247_vm0, %v5613_v11 }
  0xf2   :  { %1146 = vmatprep.mubr.bf16.mxu0 %v5385_v0  ;;  %1259 = vmatprep.mubr.bf16.mxu1 %v5385_v0 }
  0xf3   :  { %v5718_v42 = vpop.f32.mrf.mxu0  ;;  %3245 = vmatpush1.bf16.msra.mxu0 %v4941_v35  ;;  %v5721_v44 = vpop.f32.mrf.mxu1  ;;  %3358 = vmatpush1.bf16.msra.mxu1 %v4944_v37  ;;  %v4988_v37 = vld [vmem:[#allocation6 + $0x3c4] ss:$16 sps:$4 sm:$0xff]  }
  0xf4   :  { %3246 = vmatprep.subr.bf16.mxu0 %v4949_v38  ;;  %3359 = vmatprep.subr.bf16.mxu1 %v4952_v40 }
  0xf5   :  { %v5723_v47 = vpop.f32.mrf.mxu0  ;;  %v5725_v49 = vpop.f32.mrf.mxu1 }
  0xf7   :  { %v5727_v50 = vpop.f32.mrf.mxu0  ;;  %3247 = vmatpush1.bf16.msra.mxu0 %v4947_v43  ;;  %v5729_v52 = vpop.f32.mrf.mxu1  ;;  %3360 = vmatpush1.bf16.msra.mxu1 %v4950_v45  ;;  %v4983_v43 = vld [vmem:[#allocation6 + $0x1c0] ss:$16 sps:$4 sm:$0xff]  }
  0xf8   :  { %3248 = vmatprep.subr.bf16.mxu0 %v4955_v46  ;;  %3361 = vmatprep.subr.bf16.mxu1 %v4958_v48  ;;  %v4986_v46 = vld [vmem:[#allocation6 + $0x3c0] ss:$16 sps:$4 sm:$0xff]   ;;  %v4991_v48 = vld [vmem:[#allocation6 + $0x1a4] ss:$16 sps:$4 sm:$0xff]  }
  0xf9   :  { %v5731_v55 = vpop.f32.mrf.mxu0  ;;  %4635 = vmatmul.mubr.msk.bf16.gmra.mxu0 %vm247_vm0, %v5624_v12  ;;  %v5735_v57 = vpop.f32.mrf.mxu1  ;;  %4643 = vmatmul.mubr.msk.bf16.gmra.mxu1 %vm247_vm0, %v5624_v12  ;;  %v4971_v12 = vld [vmem:[#allocation6] ss:$16 sps:$4 sm:$0xff]  }
  0xfa   :  { %1156 = vmatprep.mubr.bf16.mxu0 %v5385_v0  ;;  %1269 = vmatprep.mubr.bf16.mxu1 %v5385_v0 }
  0xfb   :  { %v5740_v58 = vpop.f32.mrf.mxu0  ;;  %3249 = vmatpush1.bf16.msra.mxu0 %v4953_v51  ;;  %v5743_v60 = vpop.f32.mrf.mxu1  ;;  %3362 = vmatpush1.bf16.msra.mxu1 %v4956_v53  ;;  %v4994_v53 = vld [vmem:[#allocation6 + $0x3a4] ss:$16 sps:$4 sm:$0xff]  }
  0xfc   :  { %3250 = vmatprep.subr.bf16.mxu0 %v4961_v54  ;;  %3363 = vmatprep.subr.bf16.mxu1 %v4964_v56  ;;  %v4989_v56 = vld [vmem:[#allocation6 + $0x1a0] ss:$16 sps:$4 sm:$0xff]  }
  0xfd   :  { %v5745_v63 = vpop.f32.mrf.mxu0  ;;  %v5747_v2 = vpop.f32.mrf.mxu1 }
  0xff   :  { %v5749_v3 = vpop.f32.mrf.mxu0  ;;  %3251 = vmatpush1.bf16.msra.mxu0 %v4959_v59  ;;  %v5751_v5 = vpop.f32.mrf.mxu1  ;;  %3364 = vmatpush1.bf16.msra.mxu1 %v4962_v61  ;;  %v4992_v61 = vld [vmem:[#allocation6 + $0x3a0] ss:$16 sps:$4 sm:$0xff]  }
 0x100   :  { %3252 = vmatprep.subr.bf16.mxu0 %v4967_v62  ;;  %3365 = vmatprep.subr.bf16.mxu1 %v4970_v1  ;;  %v4997_v62 = vld [vmem:[#allocation6 + $0x184] ss:$16 sps:$4 sm:$0xff]  }
 0x101   :  { %v5753_v8 = vpop.f32.mrf.mxu0  ;;  %4636 = vmatmul.mubr.msk.bf16.gmra.mxu0 %vm247_vm0, %v5635_v15  ;;  %v5757_v10 = vpop.f32.mrf.mxu1  ;;  %4644 = vmatmul.mubr.msk.bf16.gmra.mxu1 %vm247_vm0, %v5635_v15 }
 0x102   :  { %1166 = vmatprep.mubr.bf16.mxu0 %v5385_v0  ;;  %1279 = vmatprep.mubr.bf16.mxu1 %v5385_v0 }
 0x103   :  { %v5762_v11 = vpop.f32.mrf.mxu0  ;;  %3253 = vmatpush1.bf16.msra.mxu0 %v4965_v4  ;;  %v5765_v13 = vpop.f32.mrf.mxu1  ;;  %3366 = vmatpush1.bf16.msra.mxu1 %v4968_v6  ;;  %v5000_v4 = vld [vmem:[#allocation6 + $0x384] ss:$16 sps:$4 sm:$0xff]  }
 0x104   :  { %3254 = vmatprep.subr.bf16.mxu0 %v4973_v7  ;;  %3367 = vmatprep.subr.bf16.mxu1 %v4976_v9  ;;  %v4995_v9 = vld [vmem:[#allocation6 + $0x180] ss:$16 sps:$4 sm:$0xff]  }
 0x105   :  { %v5767_v21 = vpop.f32.mrf.mxu0  ;;  %v5769_v24 = vpop.f32.mrf.mxu1 }
 0x107   :  { %v5771_v15 = vpop.f32.mrf.mxu0  ;;  %3255 = vmatpush1.bf16.msra.mxu0 %v4971_v12  ;;  %v5773_v29 = vpop.f32.mrf.mxu1  ;;  %3368 = vmatpush1.bf16.msra.mxu1 %v4974_v14  ;;  %v4998_v14 = vld [vmem:[#allocation6 + $0x380] ss:$16 sps:$4 sm:$0xff]  }
 0x108   :  { %3256 = vmatprep.subr.bf16.mxu0 %v4979_v20  ;;  %3369 = vmatprep.subr.bf16.mxu1 %v4982_v22  ;;  %v5003_v20 = vld [vmem:[#allocation6 + $0x164] ss:$16 sps:$4 sm:$0xff]  }
 0x109   :  { %v5775_v35 = vpop.f32.mrf.mxu0  ;;  %4637 = vmatmul.mubr.msk.bf16.gmra.mxu0 %vm247_vm0, %v5646_v16  ;;  %v5779_v38 = vpop.f32.mrf.mxu1  ;;  %4645 = vmatmul.mubr.msk.bf16.gmra.mxu1 %vm247_vm0, %v5646_v16 }
 0x10a   :  { %1176 = vmatprep.mubr.bf16.mxu0 %v5385_v0  ;;  %1289 = vmatprep.mubr.bf16.mxu1 %v5385_v0 }
 0x10b   :  { %v5784_v40 = vpop.f32.mrf.mxu0  ;;  %3257 = vmatpush2.bf16.msra.mxu0 %v4977_v27  ;;  %v5787_v45 = vpop.f32.mrf.mxu1  ;;  %3370 = vmatpush2.bf16.msra.mxu1 %v4980_v30  ;;  %v5006_v27 = vld [vmem:[#allocation6 + $0x364] ss:$16 sps:$4 sm:$0xff]  }
 0x10c   :  { %3258 = vmatprep.subr.bf16.mxu0 %v4985_v32  ;;  %3371 = vmatprep.subr.bf16.mxu1 %v4988_v37  ;;  %v5001_v32 = vld [vmem:[#allocation6 + $0x160] ss:$16 sps:$4 sm:$0xff]  }
 0x10d   :  { %v5789_v51 = vpop.f32.mrf.mxu0  ;;  %v5791_v54 = vpop.f32.mrf.mxu1 }
 0x10f   :  { %v5793_v16 = vpop.f32.mrf.mxu0  ;;  %3259 = vmatpush2.bf16.msra.mxu0 %v4983_v43  ;;  %v5795_v59 = vpop.f32.mrf.mxu1  ;;  %3372 = vmatpush2.bf16.msra.mxu1 %v4986_v46  ;;  %v5004_v43 = vld [vmem:[#allocation6 + $0x360] ss:$16 sps:$4 sm:$0xff]   ;;  %v5009_v46 = vld [vmem:[#allocation6 + $0x144] ss:$16 sps:$4 sm:$0xff]  }
 0x110   :  { %3260 = vmatprep.subr.bf16.mxu0 %v4991_v48  ;;  %3373 = vmatprep.subr.bf16.mxu1 %v4994_v53  ;;  %v5012_v53 = vld [vmem:[#allocation6 + $0x344] ss:$16 sps:$4 sm:$0xff]  }
 0x111   :  { %v5797_v1 = vpop.f32.mrf.mxu0  ;;  %4638 = vmatmul.mubr.msk.bf16.gmra.mxu0 %vm247_vm0, %v5657_v17  ;;  %v5801_v6 = vpop.f32.mrf.mxu1  ;;  %4646 = vmatmul.mubr.msk.bf16.gmra.mxu1 %vm247_vm0, %v5657_v17 }
 0x112   :  { %7179 = vst [vmem:[#allocation12_spill] sm:$0xff] %v5801_v6  ;;  %1186 = vmatprep.mubr.bf16.mxu0 %v5385_v0  ;;  %1299 = vmatprep.mubr.bf16.mxu1 %v5385_v0 }
 0x113   :  { %v5806_v7 = vpop.f32.mrf.mxu0  ;;  %3261 = vmatpush2.bf16.msra.mxu0 %v4989_v56  ;;  %v5809_v12 = vpop.f32.mrf.mxu1  ;;  %3374 = vmatpush2.bf16.msra.mxu1 %v4992_v61 }
 0x114   :  { %7180 = vst [vmem:[#allocation13_spill] sm:$0xff] %v5806_v7  ;;  %7181 = vst [vmem:[#allocation14_spill] sm:$0xff] %v5809_v12  ;;  %3262 = vmatprep.subr.bf16.mxu0 %v4997_v62  ;;  %3375 = vmatprep.subr.bf16.mxu1 %v5000_v4  ;;  %v5007_v62 = vld [vmem:[#allocation6 + $0x140] ss:$16 sps:$4 sm:$0xff]  }
 0x115   :  { %v5811_v22 = vpop.f32.mrf.mxu0  ;;  %v5813_v30 = vpop.f32.mrf.mxu1 }
 0x116   :  { %7182 = vst [vmem:[#allocation15_spill] sm:$0xff] %v5811_v22  ;;  %7183 = vst [vmem:[#allocation16_spill] sm:$0xff] %v5813_v30 }
 0x117   :  { %v5815_v17 = vpop.f32.mrf.mxu0  ;;  %3263 = vmatpush2.bf16.msra.mxu0 %v4995_v9  ;;  %v5817_v37 = vpop.f32.mrf.mxu1  ;;  %3376 = vmatpush2.bf16.msra.mxu1 %v4998_v14  ;;  %v5010_v9 = vld [vmem:[#allocation6 + $0x340] ss:$16 sps:$4 sm:$0xff]   ;;  %v5015_v14 = vld [vmem:[#allocation6 + $0x124] ss:$16 sps:$4 sm:$0xff]  }
 0x118   :  { %7184 = vst [vmem:[#allocation17_spill] sm:$0xff] %v5815_v17  ;;  %7185 = vst [vmem:[#allocation18_spill] sm:$0xff] %v5817_v37  ;;  %3264 = vmatprep.subr.bf16.mxu0 %v5003_v20  ;;  %3377 = vmatprep.subr.bf16.mxu1 %v5006_v27  ;;  %v5018_v27 = vld [vmem:[#allocation6 + $0x324] ss:$16 sps:$4 sm:$0xff]  }
 0x119   :  { %v5819_v48 = vpop.f32.mrf.mxu0  ;;  %4639 = vmatmul.mubr.msk.bf16.gmra.mxu0 %vm247_vm0, %v5668_v18  ;;  %v5823_v56 = vpop.f32.mrf.mxu1  ;;  %4647 = vmatmul.mubr.msk.bf16.gmra.mxu1 %vm247_vm0, %v5668_v18 }
 0x11a   :  { %7186 = vst [vmem:[#allocation19_spill] sm:$0xff] %v5819_v48  ;;  %7187 = vst [vmem:[#allocation20_spill] sm:$0xff] %v5823_v56  ;;  %1196 = vmatprep.mubr.bf16.mxu0 %v5385_v0  ;;  %1309 = vmatprep.mubr.bf16.mxu1 %v5385_v0  ;;  %v5016_v0 = vld [vmem:[#allocation6 + $0x320] ss:$16 sps:$4 sm:$0xff]  }
 0x11b   :  { %v5828_v61 = vpop.f32.mrf.mxu0  ;;  %3265 = vmatpush2.bf16.msra.mxu0 %v5001_v32  ;;  %v5831_v4 = vpop.f32.mrf.mxu1  ;;  %3378 = vmatpush2.bf16.msra.mxu1 %v5004_v43  ;;  %v5021_v32 = vld [vmem:[#allocation6 + $0x104] ss:$16 sps:$4 sm:$0xff]  }
 0x11c   :  { %7188 = vst [vmem:[#allocation21_spill] sm:$0xff] %v5828_v61  ;;  %7189 = vst [vmem:[#allocation22_spill] sm:$0xff] %v5831_v4  ;;  %3266 = vmatprep.subr.bf16.mxu0 %v5009_v46  ;;  %3379 = vmatprep.subr.bf16.mxu1 %v5012_v53  ;;  %v5013_v61 = vld [vmem:[#allocation6 + $0x120] ss:$16 sps:$4 sm:$0xff]   ;;  %v5024_v46 = vld [vmem:[#allocation6 + $0x304] ss:$16 sps:$4 sm:$0xff]  }
 0x11d   :  { %v5833_v20 = vpop.f32.mrf.mxu0  ;;  %v5835_v56 = vpop.f32.mrf.mxu1 }
 0x11e   :  { %7190 = vst [vmem:[#allocation23_spill] sm:$0xff] %v5833_v20  ;;  %7191 = vst [vmem:[#allocation24_spill] sm:$0xff] %v5835_v56 }
 0x11f   :  { %v5837_v18 = vpop.f32.mrf.mxu0  ;;  %3267 = vmatpush2.bf16.msra.mxu0 %v5007_v62  ;;  %v5839_v48 = vpop.f32.mrf.mxu1  ;;  %3380 = vmatpush2.bf16.msra.mxu1 %v5010_v9 }
 0x120   :  { %7192 = vst [vmem:[#allocation25_spill] sm:$0xff] %v5837_v18  ;;  %7193 = vst [vmem:[#allocation26_spill] sm:$0xff] %v5839_v48  ;;  %3268 = vmatprep.subr.bf16.mxu0 %v5015_v14  ;;  %3381 = vmatprep.subr.bf16.mxu1 %v5018_v27  ;;  %v5019_v48 = vld [vmem:[#allocation6 + $0x100] ss:$16 sps:$4 sm:$0xff]   ;;  %v5030_v27 = vld [vmem:[#allocation6 + $0x6e4] ss:$16 sps:$4 sm:$0xff]  }
 0x121   :  { %v5841_v43 = vpop.f32.mrf.mxu0  ;;  %4640 = vmatmul.mubr.msk.bf16.gmra.mxu0 %vm247_vm0, %v5679_v19  ;;  %v5845_v53 = vpop.f32.mrf.mxu1  ;;  %4648 = vmatmul.mubr.msk.bf16.gmra.mxu1 %vm247_vm0, %v5679_v19  ;;  %v5022_v14 = vld [vmem:[#allocation6 + $0x300] ss:$16 sps:$4 sm:$0xff]  }
 0x122   :  { %7194 = vst [vmem:[#allocation27_spill] sm:$0xff] %v5841_v43  ;;  %7195 = vst [vmem:[#allocation28_spill] sm:$0xff] %v5845_v53  ;;  %v5027_v43 = vld [vmem:[#allocation6 + $0x4e4] ss:$16 sps:$4 sm:$0xff]  }
 0x123   :  { %v5849_v62 = vpop.f32.mrf.mxu0  ;;  %3269 = vmatpush2.bf16.msra.mxu0 %v5013_v61  ;;  %v5851_v9 = vpop.f32.mrf.mxu1  ;;  %3382 = vmatpush2.bf16.msra.mxu1 %v5016_v0 }
 0x124   :  { %7196 = vst [vmem:[#allocation29_spill] sm:$0xff] %v5849_v62  ;;  %7197 = vst [vmem:[#allocation30_spill] sm:$0xff] %v5851_v9  ;;  %3270 = vmatprep.subr.bf16.mxu0 %v5021_v32  ;;  %3383 = vmatprep.subr.bf16.mxu1 %v5024_v46 }
 0x125   :  { %v5853_v18 = vpop.f32.mrf.mxu0  ;;  %v5855_v56 = vpop.f32.mrf.mxu1 }
 0x126   :  { %7198 = vst [vmem:[#allocation31_spill] sm:$0xff] %v5853_v18  ;;  %7199 = vst [vmem:[#allocation32_spill] sm:$0xff] %v5855_v56 }
 0x127   :  { %v5857_v53 = vpop.f32.mrf.mxu0  ;;  %3271 = vmatpush2.bf16.msra.mxu0 %v5019_v48  ;;  %v5859_v19 = vpop.f32.mrf.mxu1  ;;  %3384 = vmatpush2.bf16.msra.mxu1 %v5022_v14 }
 0x128   :  { %7200 = vst [vmem:[#allocation33_spill] sm:$0xff] %v5857_v53  ;;  %7201 = vst [vmem:[#allocation34_spill] sm:$0xff] %v5859_v19  ;;  %3466 = vmatprep.subr.bf16.mxu0 %v5027_v43  ;;  %3579 = vmatprep.subr.bf16.mxu1 %v5030_v27 }
 0x129   :  { %v5861_v61 = vpop.f32.mrf.mxu0  ;;  %v5863_v0 = vpop.f32.mrf.mxu1 }
 0x12a   :  { %7202 = vst [vmem:[#allocation35_spill] sm:$0xff] %v5861_v61  ;;  %7203 = vst [vmem:[#allocation36_spill] sm:$0xff] %v5863_v0 }
 0x12b   :  { %v5865_v32 = vpop.f32.mrf.mxu0  ;;  %v5867_v9 = vpop.f32.mrf.mxu1 }
 0x12c   :  { %7204 = vst [vmem:[#allocation37_spill] sm:$0xff] %v5865_v32  ;;  %7205 = vst [vmem:[#allocation38_spill] sm:$0xff] %v5867_v9 }
 0x12d   :  { %v5869_v46 = vpop.f32.mrf.mxu0  ;;  %v5871_v18 = vpop.f32.mrf.mxu1 }
 0x12e   :  { %7206 = vst [vmem:[#allocation39_spill] sm:$0xff] %v5869_v46  ;;  %7207 = vst [vmem:[#allocation40_spill] sm:$0xff] %v5871_v18 }
 0x12f   :  { %v5873_v56 = vpop.f32.mrf.mxu0  ;;  %v5875_v48 = vpop.f32.mrf.mxu1 }
 0x130   :  { %7208 = vst [vmem:[#allocation41_spill] sm:$0xff] %v5873_v56  ;;  %7209 = vst [vmem:[#allocation42_spill] sm:$0xff] %v5875_v48 }
 0x131   :  { %v5877_v19 = vpop.f32.mrf.mxu0  ;;  %v5879_v43 = vpop.f32.mrf.mxu1 }
 0x132   :  { %7210 = vst [vmem:[#allocation43_spill] sm:$0xff] %v5877_v19  ;;  %7211 = vst [vmem:[#allocation44_spill] sm:$0xff] %v5879_v43 }
 0x133   :  { %v5881_v14 = vpop.f32.mrf.mxu0  ;;  %v5883_v27 = vpop.f32.mrf.mxu1 }
 0x134   :  { %7212 = vst [vmem:[#allocation45_spill] sm:$0xff] %v5881_v14  ;;  %7213 = vst [vmem:[#allocation46_spill] sm:$0xff] %v5883_v27 }
 0x135   :  { %v5885_v0 = vpop.f32.mrf.mxu0  ;;  %v5887_v32 = vpop.f32.mrf.mxu1 }
 0x136   :  { %7214 = vst [vmem:[#allocation47_spill] sm:$0xff] %v5885_v0  ;;  %7215 = vst [vmem:[#allocation48_spill] sm:$0xff] %v5887_v32 }
 0x137   :  { %v5889_v9 = vpop.f32.mrf.mxu0  ;;  %v5891_v46 = vpop.f32.mrf.mxu1 }
 0x138   :  { %7216 = vst [vmem:[#allocation49_spill] sm:$0xff] %v5889_v9  ;;  %7217 = vst [vmem:[#allocation50_spill] sm:$0xff] %v5891_v46 }
 0x139   :  { %v5893_v18 = vpop.f32.mrf.mxu0  ;;  %v5895_v56 = vpop.f32.mrf.mxu1 }
 0x13a   :  { %7218 = vst [vmem:[#allocation51_spill] sm:$0xff] %v5893_v18  ;;  %7219 = vst [vmem:[#allocation52_spill] sm:$0xff] %v5895_v56 }
 0x13b   :  { %v5897_v48 = vpop.f32.mrf.mxu0  ;;  %v5899_v19 = vpop.f32.mrf.mxu1 }
 0x13c   :  { %7220 = vst [vmem:[#allocation53_spill] sm:$0xff] %v5897_v48  ;;  %7221 = vst [vmem:[#allocation54_spill] sm:$0xff] %v5899_v19 }
 0x13d   :  { %v5901_v43 = vpop.f32.mrf.mxu0  ;;  %v5903_v14 = vpop.f32.mrf.mxu1 }
 0x13e   :  { %7222 = vst [vmem:[#allocation55_spill] sm:$0xff] %v5901_v43  ;;  %7223 = vst [vmem:[#allocation56_spill] sm:$0xff] %v5903_v14 }
 0x13f   :  { %v5905_v27 = vpop.f32.mrf.mxu0  ;;  %v5907_v0 = vpop.f32.mrf.mxu1 }
 0x140   :  { %7224 = vst [vmem:[#allocation57_spill] sm:$0xff] %v5905_v27  ;;  %7225 = vst [vmem:[#allocation58_spill] sm:$0xff] %v5907_v0 }
 0x141   :  { %v5909_v32 = vpop.f32.mrf.mxu0  ;;  %v5911_v9 = vpop.f32.mrf.mxu1 }
 0x142   :  { %7226 = vst [vmem:[#allocation59_spill] sm:$0xff] %v5909_v32  ;;  %7227 = vst [vmem:[#allocation60_spill] sm:$0xff] %v5911_v9 }
 0x143   :  { %v5913_v46 = vpop.f32.mrf.mxu0  ;;  %v5915_v18 = vpop.f32.mrf.mxu1 }
 0x144   :  { %7228 = vst [vmem:[#allocation61_spill] sm:$0xff] %v5913_v46  ;;  %7229 = vst [vmem:[#allocation62_spill] sm:$0xff] %v5915_v18 }
 0x145   :  { %v5917_v56 = vpop.f32.mrf.mxu0  ;;  %v5919_v48 = vpop.f32.mrf.mxu1 }
 0x146   :  { %7230 = vst [vmem:[#allocation63_spill] sm:$0xff] %v5917_v56  ;;  %7231 = vst [vmem:[#allocation64_spill] sm:$0xff] %v5919_v48 }
 0x147   :  { %v5921_v19 = vpop.f32.mrf.mxu0  ;;  %v5923_v43 = vpop.f32.mrf.mxu1 }
 0x148   :  { %7232 = vst [vmem:[#allocation65_spill] sm:$0xff] %v5921_v19  ;;  %7233 = vst [vmem:[#allocation66_spill] sm:$0xff] %v5923_v43 }
 0x149   :  { %v5925_v14 = vpop.f32.mrf.mxu0  ;;  %v5927_v27 = vpop.f32.mrf.mxu1 }
 0x14a   :  { %7234 = vst [vmem:[#allocation67_spill] sm:$0xff] %v5925_v14  ;;  %7235 = vst [vmem:[#allocation68_spill] sm:$0xff] %v5927_v27 }
 0x14b   :  { %v5929_v0 = vpop.f32.mrf.mxu0  ;;  %v5931_v32 = vpop.f32.mrf.mxu1 }
 0x14c   :  { %7236 = vst [vmem:[#allocation69_spill] sm:$0xff] %v5929_v0  ;;  %7237 = vst [vmem:[#allocation70_spill] sm:$0xff] %v5931_v32 }
 0x14d   :  { %v5933_v9 = vpop.f32.mrf.mxu0  ;;  %v5935_v46 = vpop.f32.mrf.mxu1 }
 0x14e   :  { %7238 = vst [vmem:[#allocation71_spill] sm:$0xff] %v5933_v9  ;;  %7239 = vst [vmem:[#allocation72_spill] sm:$0xff] %v5935_v46 }
 0x14f   :  { %v5937_v18 = vpop.f32.mrf.mxu0  ;;  %v5939_v56 = vpop.f32.mrf.mxu1 }
 0x150   :  { %7240 = vst [vmem:[#allocation73_spill] sm:$0xff] %v5937_v18  ;;  %7241 = vst [vmem:[#allocation74_spill] sm:$0xff] %v5939_v56 }
 0x151   :  { %v5941_v48 = vpop.f32.mrf.mxu0  ;;  %v5943_v19 = vpop.f32.mrf.mxu1 }
 0x152   :  { %7242 = vst [vmem:[#allocation75_spill] sm:$0xff] %v5941_v48  ;;  %7243 = vst [vmem:[#allocation76_spill] sm:$0xff] %v5943_v19 }
 0x153   :  { %v5945_v43 = vpop.f32.mrf.mxu0  ;;  %v5947_v14 = vpop.f32.mrf.mxu1 }
 0x154   :  { %7244 = vst [vmem:[#allocation77_spill] sm:$0xff] %v5945_v43  ;;  %7245 = vst [vmem:[#allocation78_spill] sm:$0xff] %v5947_v14 }
 0x155   :  { %v5949_v27 = vpop.f32.mrf.mxu0  ;;  %v5951_v0 = vpop.f32.mrf.mxu1 }
 0x156   :  { %7246 = vst [vmem:[#allocation79_spill] sm:$0xff] %v5949_v27  ;;  %7247 = vst [vmem:[#allocation80_spill] sm:$0xff] %v5951_v0  ;;  %v7140_v27 = vlaneseq }
 0x157   :  { %v5953_v32 = vpop.f32.mrf.mxu0  ;;  %v5955_v9 = vpop.f32.mrf.mxu1 }
 0x158   :  { %7248 = vst [vmem:[#allocation81_spill] sm:$0xff] %v5953_v32  ;;  %7249 = vst [vmem:[#allocation82_spill] sm:$0xff] %v5955_v9 }
 0x159   :  { %v5957_v46 = vpop.f32.mrf.mxu0  ;;  %v5959_v18 = vpop.f32.mrf.mxu1 }
 0x15a   :  { %7250 = vst [vmem:[#allocation83_spill] sm:$0xff] %v5957_v46  ;;  %7251 = vst [vmem:[#allocation84_spill] sm:$0xff] %v5959_v18  ;;  %v5980_v18 = vshrl.u32 %v7140_v27, 7 }
 0x15b   :  { %v5961_v56 = vpop.f32.mrf.mxu0  ;;  %v5963_v48 = vpop.f32.mrf.mxu1 }
 0x15c   :  { %7252 = vst [vmem:[#allocation85_spill] sm:$0xff] %v5961_v56  ;;  %7253 = vst [vmem:[#allocation86_spill] sm:$0xff] %v5963_v48  ;;  %v6001_v27 = vsub.s32 1, %v5980_v18 }
 0x15d   :  { %v5965_v19 = vpop.f32.mrf.mxu0  ;;  %v5967_v43 = vpop.f32.mrf.mxu1  ;;  %7261 = vst [vmem:[#allocation94_spill] sm:$0xff] %v5980_v18 }
 0x15e   :  { %7254 = vst [vmem:[#allocation87_spill] sm:$0xff] %v5965_v19  ;;  %7255 = vst [vmem:[#allocation88_spill] sm:$0xff] %v5967_v43 }
 0x15f   :  { %v5969_v14 = vpop.f32.mrf.mxu0  ;;  %v5971_v0 = vpop.f32.mrf.mxu1  ;;  %7268 = vst [vmem:[#allocation101_spill] sm:$0xff] %v6001_v27 }
 0x160   :  { %7256 = vst [vmem:[#allocation89_spill] sm:$0xff] %v5969_v14  ;;  %7257 = vst [vmem:[#allocation90_spill] sm:$0xff] %v5971_v0  ;;  %v5991_v14 = vsub.s32 0, %v5980_v18 }
 0x161   :  { %v5973_v32 = vpop.f32.mrf.mxu0  ;;  %v5975_v9 = vpop.f32.mrf.mxu1 }
 0x162   :  { %7258 = vst [vmem:[#allocation91_spill] sm:$0xff] %v5973_v32  ;;  %7259 = vst [vmem:[#allocation92_spill] sm:$0xff] %v5975_v9  ;;  %v5998_v9 = vld [vmem:[%s7134_s4] sm:$0xff] }
 0x163   :  { %v5977_v46 = vpop.f32.mrf.mxu0  ;;  %v5982_v56 = vpop.f32.mrf.mxu1  ;;  %7266 = vst [vmem:[#allocation99_spill] sm:$0xff] %v5991_v14  ;;  %v6017_v53 = vrot.slane %v5998_v9, %v6001_v27 }
 0x164   :  { %7260 = vst [vmem:[#allocation93_spill] sm:$0xff] %v5977_v46  ;;  %7262 = vst [vmem:[#allocation95_spill] sm:$0xff] %v5982_v56 }
 0x165   :  { %v5984_v48 = vpop.f32.mrf.mxu0  ;;  %v5986_v19 = vpop.f32.mrf.mxu1 }
 0x166   :  { %7263 = vst [vmem:[#allocation96_spill] sm:$0xff] %v5984_v48  ;;  %7264 = vst [vmem:[#allocation97_spill] sm:$0xff] %v5986_v19  ;;  %v6004_v48 = vsub.s32 2, %v5980_v18  ;;  %v6007_v19 = vsub.s32 3, %v5980_v18 }
 0x167   :  { %v5988_v43 = vpop.f32.mrf.mxu0  ;;  %v5993_v0 = vpop.f32.mrf.mxu1 }
 0x168   :  { %7265 = vst [vmem:[#allocation98_spill] sm:$0xff] %v5988_v43  ;;  %7267 = vst [vmem:[#allocation100_spill] sm:$0xff] %v5993_v0  ;;  %v6012_v0 = vrot.slane %v5998_v9, %v5991_v14  ;;  %v6022_v4 = vrot.slane %v5998_v9, %v6004_v48 }
 0x169   :  { %v902_v56 = vpop.f32.mrf.mxu0  ;;  %7269 = vst [vmem:[#allocation102_spill] sm:$0xff] %v6004_v48  ;;  %7270 = vst [vmem:[#allocation103_spill] sm:$0xff] %v6007_v19  ;;  %v1015_v43 = vpop.f32.mrf.mxu1 }
 0x16a   :  { %v903_v46 = vadd.f32 %v902_v56, %v5687_v23  ;;  %v1016_v20 = vadd.f32 %v1015_v43, %v5691_v25  ;;  %v6027_v56 = vrot.slane %v5998_v9, %v6007_v19 }
 0x16b   :  { %v904_v32 = vpop.f32.mrf.mxu0  ;;  %v1017_v62 = vpop.f32.mrf.mxu1 }
 0x16c   :  { %v905_v61 = vadd.f32 %v904_v32, %v5696_v26  ;;  %v1018_v23 = vadd.f32 %v1017_v62, %v5699_v28  ;;  %v1362_v27 = vadd.f32 %v6012_v0, %v903_v46  ;;  %v1364_v62 = vadd.f32 %v6022_v4, %v1016_v20 }
 0x16d   :  { %v906_v14 = vpop.f32.mrf.mxu0  ;;  %v1019_v32 = vpop.f32.mrf.mxu1 }
 0x16e   :  { %v907_v26 = vadd.f32 %v906_v14, %v5701_v31  ;;  %v1020_v37 = vadd.f32 %v1019_v32, %v5703_v33  ;;  %v1363_v25 = vadd.f32 %v6017_v53, %v905_v61  ;;  %v1365_v19 = vadd.f32 %v6027_v56, %v1018_v23 }
 0x16f   :  { %v908_v17 = vpop.f32.mrf.mxu0  ;;  %v1021_v28 = vpop.f32.mrf.mxu1  ;;  %v1490_v22 = vmax.f32 %v1362_v27, 0.0 }
 0x170   :  { %v1370_v43 = vadd.f32 %v6012_v0, %v907_v26  ;;  %v909_v48 = vadd.f32 %v908_v17, %v5705_v34  ;;  %v1372_v30 = vadd.f32 %v6022_v4, %v1020_v37  ;;  %v1022_v31 = vadd.f32 %v1021_v28, %v5707_v36 }
 0x171   :  { %v912_v14 = vpop.f32.mrf.mxu0  ;;  %v1025_v32 = vpop.f32.mrf.mxu1  ;;  %v1491_v12 = vmax.f32 %v1363_v25, 0.0  ;;  %v1492_v36 = vmax.f32 %v1364_v62, 0.0  ;;  %v1493_v28 = vmax.f32 %v1365_v19, 0.0  ;;  %v5025_v25 = vld [vmem:[#allocation6 + $0x4e0] ss:$16 sps:$4 sm:$0xff]  }
 0x172   :  { %v1498_v46 = vmax.f32 %v1370_v43, 0.0  ;;  %v1371_v33 = vadd.f32 %v6017_v53, %v909_v48  ;;  %v1500_v61 = vmax.f32 %v1372_v30, 0.0  ;;  %v1373_v26 = vadd.f32 %v6027_v56, %v1022_v31 }
 0x173   :  { %v913_v34 = vadd.f32 %v912_v14, %v5709_v39  ;;  %v914_v17 = vpop.f32.mrf.mxu0  ;;  %v1026_v23 = vadd.f32 %v1025_v32, %v5713_v41  ;;  %v1027_v7 = vpop.f32.mrf.mxu1 }
 0x174   :  { %v1499_v20 = vmax.f32 %v1371_v33, 0.0  ;;  %v915_v37 = vadd.f32 %v914_v17, %v5718_v42  ;;  %v1501_v43 = vmax.f32 %v1373_v26, 0.0  ;;  %v1028_v48 = vadd.f32 %v1027_v7, %v5721_v44  ;;  %v5028_v33 = vld [vmem:[#allocation6 + $0x6e0] ss:$16 sps:$4 sm:$0xff]   ;;  %v5033_v44 = vld [vmem:[#allocation6 + $0x4c4] ss:$16 sps:$4 sm:$0xff]  }
 0x175   :  { %v916_v6 = vpop.f32.mrf.mxu0  ;;  %v6045_v27 = vpack.c.bf16 %v1498_v46, %v1490_v22  ;;  %v1029_v31 = vpop.f32.mrf.mxu1  ;;  %v6050_v14 = vpack.c.bf16 %v1500_v61, %v1492_v36  ;;  %v1378_v41 = vadd.f32 %v6012_v0, %v913_v34  ;;  %v1380_v7 = vadd.f32 %v6022_v4, %v1026_v23  ;;  %v5036_v46 = vld [vmem:[#allocation6 + $0x6c4] ss:$16 sps:$4 sm:$0xff]   ;;  %v5031_v23 = vld [vmem:[#allocation6 + $0x4c0] ss:$16 sps:$4 sm:$0xff]  }
 0x176   :  { %v917_v30 = vadd.f32 %v916_v6, %v5723_v47  ;;  %v6048_v39 = vpack.c.bf16 %v1499_v20, %v1491_v12  ;;  %v1030_v42 = vadd.f32 %v1029_v31, %v5725_v49  ;;  %v6054_v19 = vpack.c.bf16 %v1501_v43, %v1493_v28 }
 0x177   :  { %v918_v62 = vpop.f32.mrf.mxu0  ;;  %v1379_v22 = vadd.f32 %v6017_v53, %v915_v37  ;;  %v1031_v12 = vpop.f32.mrf.mxu1  ;;  %v1381_v32 = vadd.f32 %v6027_v56, %v1028_v48  ;;  %v1506_v37 = vmax.f32 %v1378_v41, 0.0  ;;  %v5034_v48 = vld [vmem:[#allocation6 + $0x6c0] ss:$16 sps:$4 sm:$0xff]   ;;  %v1508_v31 = vmax.f32 %v1380_v7, 0.0 }
 0x178   :  { %v1386_v47 = vadd.f32 %v6012_v0, %v917_v30  ;;  %v919_v6 = vadd.f32 %v918_v62, %v5727_v50  ;;  %3272 = vmatprep.mubr.bf16.mxu0 %v6048_v39  ;;  %v1388_v49 = vadd.f32 %v6022_v4, %v1030_v42  ;;  %v1032_v61 = vadd.f32 %v1031_v12, %v5729_v52  ;;  %v5039_v30 = vld [vmem:[#allocation6 + $0x4a4] ss:$16 sps:$4 sm:$0xff]  }
 0x179   :  { %3385 = vmatprep.mubr.bf16.mxu1 %v6054_v19  ;;  %v922_v26 = vpop.f32.mrf.mxu0  ;;  %3273 = vmatmul.mubr.bf16.vlgmr.msra.gmra.mxu0 %v6045_v27  ;;  %v1035_v20 = vpop.f32.mrf.mxu1  ;;  %v1507_v42 = vmax.f32 %v1379_v22, 0.0 }
 0x17a   :  { %v1514_v34 = vmax.f32 %v1386_v47, 0.0  ;;  %v1387_v17 = vadd.f32 %v6017_v53, %v919_v6  ;;  %v923_v50 = vadd.f32 %v922_v26, %v5731_v55  ;;  %3386 = vmatmul.mubr.bf16.vlgmr.msra.gmra.mxu1 %v6050_v14  ;;  %3467 = vmatpush1.bf16.msra.mxu0 %v5025_v25  ;;  %v1516_v36 = vmax.f32 %v1388_v49, 0.0  ;;  %v5042_v25 = vld [vmem:[#allocation6 + $0x6a4] ss:$16 sps:$4 sm:$0xff]  }
 0x17b   :  { %v1389_v28 = vadd.f32 %v6027_v56, %v1032_v61  ;;  %v1036_v52 = vadd.f32 %v1035_v20, %v5735_v57  ;;  %3580 = vmatpush1.bf16.msra.mxu1 %v5028_v33  ;;  %v924_v43 = vpop.f32.mrf.mxu0  ;;  %3468 = vmatprep.subr.bf16.mxu0 %v5033_v44  ;;  %v1037_v47 = vpop.f32.mrf.mxu1  ;;  %v1509_v6 = vmax.f32 %v1381_v32, 0.0 }
 0x17c   :  { %v1515_v62 = vmax.f32 %v1387_v17, 0.0  ;;  %v925_v55 = vadd.f32 %v924_v43, %v5740_v58  ;;  %3581 = vmatprep.subr.bf16.mxu1 %v5036_v46  ;;  %v6072_v41 = vpack.c.bf16 %v1514_v34, %v1506_v37  ;;  %v1038_v49 = vadd.f32 %v1037_v47, %v5743_v60  ;;  %v5037_v58 = vld [vmem:[#allocation6 + $0x4a0] ss:$16 sps:$4 sm:$0xff]   ;;  %v5045_v17 = vld [vmem:[#allocation6 + $0x484] ss:$16 sps:$4 sm:$0xff]  }
 0x17d   :  { %v1517_v12 = vmax.f32 %v1389_v28, 0.0  ;;  %v926_v57 = vpop.f32.mrf.mxu0  ;;  %v6075_v33 = vpack.c.bf16 %v1516_v36, %v1508_v31  ;;  %v1394_v44 = vadd.f32 %v6012_v0, %v923_v50  ;;  %v1039_v22 = vpop.f32.mrf.mxu1  ;;  %v1396_v46 = vadd.f32 %v6022_v4, %v1036_v52  ;;  %v5040_v60 = vld [vmem:[#allocation6 + $0x6a0] ss:$16 sps:$4 sm:$0xff]   ;;  %v5048_v37 = vld [vmem:[#allocation6 + $0x684] ss:$16 sps:$4 sm:$0xff]  }
 0x17e   :  { %v927_v7 = vadd.f32 %v926_v57, %v5745_v63  ;;  %3469 = vmatpush1.bf16.msra.mxu0 %v5031_v23  ;;  %v6079_v61 = vpack.c.bf16 %v1515_v62, %v1507_v42  ;;  %v1040_v32 = vadd.f32 %v1039_v22, %v5747_v2  ;;  %v1395_v50 = vadd.f32 %v6017_v53, %v925_v55  ;;  %v5043_v31 = vld [vmem:[#allocation6 + $0x480] ss:$16 sps:$4 sm:$0xff]  }
 0x17f   :  { %3582 = vmatpush1.bf16.msra.mxu1 %v5034_v48  ;;  %v928_v26 = vpop.f32.mrf.mxu0  ;;  %v6083_v34 = vpack.c.bf16 %v1517_v12, %v1509_v6  ;;  %3470 = vmatprep.subr.bf16.mxu0 %v5039_v30  ;;  %v1041_v23 = vpop.f32.mrf.mxu1  ;;  %v1397_v2 = vadd.f32 %v6027_v56, %v1038_v49  ;;  %v1340_v42 = vsub.s32 4, %v5980_v18  ;;  %v1522_v62 = vmax.f32 %v1394_v44, 0.0  ;;  %v5046_v6 = vld [vmem:[#allocation6 + $0x680] ss:$16 sps:$4 sm:$0xff]   ;;  %v5051_v12 = vld [vmem:[#allocation6 + $0x464] ss:$16 sps:$4 sm:$0xff]  }
 0x180   :  { %v1402_v63 = vadd.f32 %v6012_v0, %v927_v7  ;;  %v929_v20 = vadd.f32 %v928_v26, %v5749_v3  ;;  %3282 = vmatprep.mubr.bf16.mxu0 %v6079_v61  ;;  %3583 = vmatprep.subr.bf16.mxu1 %v5042_v25  ;;  %v1404_v36 = vadd.f32 %v6022_v4, %v1040_v32  ;;  %v1524_v49 = vmax.f32 %v1396_v46, 0.0 }
 0x181   :  { %v1042_v28 = vadd.f32 %v1041_v23, %v5751_v5  ;;  %3395 = vmatprep.mubr.bf16.mxu1 %v6083_v34  ;;  %v932_v52 = vpop.f32.mrf.mxu0  ;;  %3283 = vmatmul.mubr.bf16.gmra.mxu0 %v6072_v41  ;;  %v1045_v30 = vpop.f32.mrf.mxu1  ;;  %v1525_v32 = vmax.f32 %v1397_v2, 0.0 }
 0x182   :  { %v1530_v43 = vmax.f32 %v1402_v63, 0.0  ;;  %v1403_v48 = vadd.f32 %v6017_v53, %v929_v20  ;;  %v933_v3 = vadd.f32 %v932_v52, %v5753_v8  ;;  %3396 = vmatmul.mubr.bf16.gmra.mxu1 %v6075_v33  ;;  %3471 = vmatpush1.bf16.msra.mxu0 %v5037_v58  ;;  %v1532_v55 = vmax.f32 %v1404_v36, 0.0  ;;  %v5054_v58 = vld [vmem:[#allocation6 + $0x664] ss:$16 sps:$4 sm:$0xff]  }
 0x183   :  { %v1405_v5 = vadd.f32 %v6027_v56, %v1042_v28  ;;  %v1046_v47 = vadd.f32 %v1045_v30, %v5757_v10  ;;  %3584 = vmatpush1.bf16.msra.mxu1 %v5040_v60  ;;  %v934_v25 = vpop.f32.mrf.mxu0  ;;  %3472 = vmatprep.subr.bf16.mxu0 %v5045_v17  ;;  %v1523_v8 = vmax.f32 %v1395_v50, 0.0  ;;  %v1047_v22 = vpop.f32.mrf.mxu1  ;;  %v5057_v28 = vld [vmem:[#allocation6 + $0x444] ss:$16 sps:$4 sm:$0xff]  }
 0x184   :  { %v1531_v57 = vmax.f32 %v1403_v48, 0.0  ;;  %v935_v7 = vadd.f32 %v934_v25, %v5762_v11  ;;  %3585 = vmatprep.subr.bf16.mxu1 %v5048_v37  ;;  %v6101_v44 = vpack.c.bf16 %v1530_v43, %v1522_v62  ;;  %v1048_v63 = vadd.f32 %v1047_v22, %v5765_v13  ;;  %v5049_v11 = vld [vmem:[#allocation6 + $0x460] ss:$16 sps:$4 sm:$0xff]  }
 0x185   :  { %v1533_v26 = vmax.f32 %v1405_v5, 0.0  ;;  %v936_v10 = vpop.f32.mrf.mxu0  ;;  %v6104_v60 = vpack.c.bf16 %v1532_v55, %v1524_v49  ;;  %v1410_v17 = vadd.f32 %v6012_v0, %v933_v3  ;;  %v1049_v50 = vpop.f32.mrf.mxu1  ;;  %v1412_v23 = vadd.f32 %v6022_v4, %v1046_v47  ;;  %v5052_v13 = vld [vmem:[#allocation6 + $0x660] ss:$16 sps:$4 sm:$0xff]   ;;  %v5060_v3 = vld [vmem:[#allocation6 + $0x644] ss:$16 sps:$4 sm:$0xff]  }
 0x186   :  { %v937_v46 = vadd.f32 %v936_v10, %v5767_v21  ;;  %3473 = vmatpush1.bf16.msra.mxu0 %v5043_v31  ;;  %v6108_v20 = vpack.c.bf16 %v1531_v57, %v1523_v8  ;;  %v1050_v37 = vadd.f32 %v1049_v50, %v5769_v24  ;;  %v1411_v52 = vadd.f32 %v6017_v53, %v935_v7  ;;  %v5058_v22 = vld [vmem:[#allocation6 + $0x640] ss:$16 sps:$4 sm:$0xff]  }
 0x187   :  { %3586 = vmatpush1.bf16.msra.mxu1 %v5046_v6  ;;  %v938_v2 = vpop.f32.mrf.mxu0  ;;  %v6112_v36 = vpack.c.bf16 %v1533_v26, %v1525_v32  ;;  %3474 = vmatprep.subr.bf16.mxu0 %v5051_v12  ;;  %v1051_v48 = vpop.f32.mrf.mxu1  ;;  %v1413_v24 = vadd.f32 %v6027_v56, %v1048_v63  ;;  %v1348_v55 = vsub.s32 6, %v5980_v18  ;;  %v5055_v6 = vld [vmem:[#allocation6 + $0x440] ss:$16 sps:$4 sm:$0xff]   ;;  %v6128_v12 = vrot.slane %v5998_v9, %v1340_v42  ;;  %v5066_v42 = vld [vmem:[#allocation6 + $0x624] ss:$16 sps:$4 sm:$0xff]  }
 0x188   :  { %v1418_v21 = vadd.f32 %v6012_v0, %v937_v46  ;;  %v939_v43 = vadd.f32 %v938_v2, %v5771_v15  ;;  %3292 = vmatprep.mubr.bf16.mxu0 %v6108_v20  ;;  %3587 = vmatprep.subr.bf16.mxu1 %v5054_v58  ;;  %v1420_v30 = vadd.f32 %v6022_v4, %v1050_v37  ;;  %v5063_v58 = vld [vmem:[#allocation6 + $0x424] ss:$16 sps:$4 sm:$0xff]   ;;  %v1539_v32 = vmax.f32 %v1411_v52, 0.0 }
 0x189   :  { %v1052_v31 = vadd.f32 %v1051_v48, %v5773_v29  ;;  %3405 = vmatprep.mubr.bf16.mxu1 %v6112_v36  ;;  %v942_v62 = vpop.f32.mrf.mxu0  ;;  %3293 = vmatmul.mubr.bf16.gmra.mxu0 %v6101_v44  ;;  %v1055_v25 = vpop.f32.mrf.mxu1  ;;  %v1538_v29 = vmax.f32 %v1410_v17, 0.0  ;;  %v1541_v46 = vmax.f32 %v1413_v24, 0.0 }
 0x18a   :  { %v1546_v5 = vmax.f32 %v1418_v21, 0.0  ;;  %v1419_v15 = vadd.f32 %v6017_v53, %v939_v43  ;;  %v943_v47 = vadd.f32 %v942_v62, %v5775_v35  ;;  %3406 = vmatmul.mubr.bf16.gmra.mxu1 %v6104_v60  ;;  %3475 = vmatpush1.bf16.msra.mxu0 %v5049_v11  ;;  %v1548_v49 = vmax.f32 %v1420_v30, 0.0  ;;  %v5072_v62 = vld [vmem:[#allocation6 + $0x604] ss:$16 sps:$4 sm:$0xff]  }
 0x18b   :  { %v1421_v8 = vadd.f32 %v6027_v56, %v1052_v31  ;;  %v1056_v57 = vadd.f32 %v1055_v25, %v5779_v38  ;;  %3588 = vmatpush1.bf16.msra.mxu1 %v5052_v13  ;;  %v944_v7 = vpop.f32.mrf.mxu0  ;;  %3476 = vmatprep.subr.bf16.mxu0 %v5057_v28  ;;  %v1540_v35 = vmax.f32 %v1412_v23, 0.0  ;;  %v1057_v10 = vpop.f32.mrf.mxu1 }
 0x18c   :  { %v1547_v26 = vmax.f32 %v1419_v15, 0.0  ;;  %v945_v63 = vadd.f32 %v944_v7, %v5784_v40  ;;  %3589 = vmatprep.subr.bf16.mxu1 %v5060_v3  ;;  %v6133_v17 = vpack.c.bf16 %v1546_v5, %v1538_v29  ;;  %v1058_v11 = vadd.f32 %v1057_v10, %v5787_v45  ;;  %v5061_v40 = vld [vmem:[#allocation6 + $0x420] ss:$16 sps:$4 sm:$0xff]   ;;  %v5069_v3 = vld [vmem:[#allocation6 + $0x404] ss:$16 sps:$4 sm:$0xff]  }
 0x18d   :  { %v1549_v50 = vmax.f32 %v1421_v8, 0.0  ;;  %v946_v38 = vpop.f32.mrf.mxu0  ;;  %v6136_v37 = vpack.c.bf16 %v1548_v49, %v1540_v35  ;;  %v1426_v2 = vadd.f32 %v6012_v0, %v943_v47  ;;  %v1059_v13 = vpop.f32.mrf.mxu1  ;;  %v1428_v52 = vadd.f32 %v6022_v4, %v1056_v57  ;;  %v5064_v45 = vld [vmem:[#allocation6 + $0x620] ss:$16 sps:$4 sm:$0xff]  }
 0x18e   :  { %v947_v23 = vadd.f32 %v946_v38, %v5789_v51  ;;  %3477 = vmatpush1.bf16.msra.mxu0 %v5055_v6  ;;  %v6140_v28 = vpack.c.bf16 %v1547_v26, %v1539_v32  ;;  %v1060_v21 = vadd.f32 %v1059_v13, %v5791_v54  ;;  %v1427_v24 = vadd.f32 %v6017_v53, %v945_v63  ;;  %v5067_v49 = vld [vmem:[#allocation6 + $0x400] ss:$16 sps:$4 sm:$0xff]   ;;  %v5075_v32 = vld [vmem:[#allocation6 + $0x5e4] ss:$16 sps:$4 sm:$0xff]  }
 0x18f   :  { %3590 = vmatpush1.bf16.msra.mxu1 %v5058_v22  ;;  %v948_v43 = vpop.f32.mrf.mxu0  ;;  %v6144_v48 = vpack.c.bf16 %v1549_v50, %v1541_v46  ;;  %3478 = vmatprep.subr.bf16.mxu0 %v5063_v58  ;;  %v1061_v31 = vpop.f32.mrf.mxu1  ;;  %v1429_v54 = vadd.f32 %v6027_v56, %v1058_v11  ;;  %v6161_v8 = vrot.slane %v5998_v9, %v1348_v55  ;;  %v7271_v22 = vld [vmem:[#allocation12_spill] sm:$0xff]  ;;  %v1556_v26 = vmax.f32 %v1428_v52, 0.0 }
 0x190   :  { %v1434_v51 = vadd.f32 %v6012_v0, %v947_v23  ;;  %v949_v30 = vadd.f32 %v948_v43, %v5793_v16  ;;  %3302 = vmatprep.mubr.bf16.mxu0 %v6140_v28  ;;  %3591 = vmatprep.subr.bf16.mxu1 %v5066_v42  ;;  %v1436_v5 = vadd.f32 %v6022_v4, %v1060_v21  ;;  %v1555_v63 = vmax.f32 %v1427_v24, 0.0  ;;  %v7272_v42 = vld [vmem:[#allocation13_spill] sm:$0xff]  ;;  %v5078_v55 = vld [vmem:[#allocation6 + $0x7e4] ss:$16 sps:$4 sm:$0xff]  }
 0x191   :  { %v1062_v15 = vadd.f32 %v1061_v31, %v5795_v59  ;;  %3415 = vmatprep.mubr.bf16.mxu1 %v6144_v48  ;;  %v952_v47 = vpop.f32.mrf.mxu0  ;;  %3303 = vmatmul.mubr.bf16.gmra.mxu0 %v6133_v17  ;;  %v1065_v29 = vpop.f32.mrf.mxu1  ;;  %v1554_v59 = vmax.f32 %v1426_v2, 0.0  ;;  %v1557_v11 = vmax.f32 %v1429_v54, 0.0  ;;  %v7273_v23 = vld [vmem:[#allocation14_spill] sm:$0xff]  ;;  %v7275_v31 = vld [vmem:[#allocation16_spill] sm:$0xff] }
 0x192   :  { %v1562_v25 = vmax.f32 %v1434_v51, 0.0  ;;  %v1435_v6 = vadd.f32 %v6017_v53, %v949_v30  ;;  %v953_v16 = vadd.f32 %v952_v47, %v5797_v1  ;;  %3416 = vmatmul.mubr.bf16.gmra.mxu1 %v6136_v37  ;;  %3479 = vmatpush1.bf16.msra.mxu0 %v5061_v40  ;;  %v1564_v57 = vmax.f32 %v1436_v5, 0.0  ;;  %v5070_v1 = vld [vmem:[#allocation6 + $0x600] ss:$16 sps:$4 sm:$0xff]   ;;  %v5081_v47 = vld [vmem:[#allocation6 + $0x5c4] ss:$16 sps:$4 sm:$0xff]  }
 0x193   :  { %v1437_v7 = vadd.f32 %v6027_v56, %v1062_v15  ;;  %v1066_v58 = vadd.f32 %v1065_v29, %v7271_v22  ;;  %3592 = vmatpush1.bf16.msra.mxu1 %v5064_v45  ;;  %v954_v35 = vpop.f32.mrf.mxu0  ;;  %3480 = vmatprep.subr.bf16.mxu0 %v5069_v3  ;;  %v1067_v50 = vpop.f32.mrf.mxu1  ;;  %v7274_v45 = vld [vmem:[#allocation15_spill] sm:$0xff]  ;;  %v7277_v22 = vld [vmem:[#allocation18_spill] sm:$0xff] }
 0x194   :  { %v1563_v10 = vmax.f32 %v1435_v6, 0.0  ;;  %v955_v46 = vadd.f32 %v954_v35, %v7272_v42  ;;  %3593 = vmatprep.subr.bf16.mxu1 %v5072_v62  ;;  %v6166_v38 = vpack.c.bf16 %v1562_v25, %v1554_v59  ;;  %v1068_v13 = vadd.f32 %v1067_v50, %v7273_v23  ;;  %v5073_v51 = vld [vmem:[#allocation6 + $0x5e0] ss:$16 sps:$4 sm:$0xff]   ;;  %v5084_v59 = vld [vmem:[#allocation6 + $0x7c4] ss:$16 sps:$4 sm:$0xff]  }
 0x195   :  { %v1565_v2 = vmax.f32 %v1437_v7, 0.0  ;;  %v956_v40 = vpop.f32.mrf.mxu0  ;;  %v6169_v21 = vpack.c.bf16 %v1564_v57, %v1556_v26  ;;  %v1442_v43 = vadd.f32 %v6012_v0, %v953_v16  ;;  %v1069_v3 = vpop.f32.mrf.mxu1  ;;  %v1444_v30 = vadd.f32 %v6022_v4, %v1066_v58  ;;  %v5076_v15 = vld [vmem:[#allocation6 + $0x7e0] ss:$16 sps:$4 sm:$0xff]  }
 0x196   :  { %v957_v52 = vadd.f32 %v956_v40, %v7274_v45  ;;  %3481 = vmatpush1.bf16.msra.mxu0 %v5067_v49  ;;  %v6173_v24 = vpack.c.bf16 %v1563_v10, %v1555_v63  ;;  %v1070_v62 = vadd.f32 %v1069_v3, %v7275_v31  ;;  %v1443_v25 = vadd.f32 %v6017_v53, %v955_v46  ;;  %v7276_v16 = vld [vmem:[#allocation17_spill] sm:$0xff]  ;;  %v7278_v26 = vld [vmem:[#allocation19_spill] sm:$0xff]  ;;  %v5087_v45 = vld [vmem:[#allocation6 + $0x5a4] ss:$16 sps:$4 sm:$0xff]  }
 0x197   :  { %3594 = vmatpush1.bf16.msra.mxu1 %v5070_v1  ;;  %v958_v54 = vpop.f32.mrf.mxu0  ;;  %v6177_v5 = vpack.c.bf16 %v1565_v2, %v1557_v11  ;;  %3482 = vmatprep.subr.bf16.mxu0 %v5075_v32  ;;  %v1071_v49 = vpop.f32.mrf.mxu1  ;;  %v1445_v57 = vadd.f32 %v6027_v56, %v1068_v13  ;;  %v5079_v42 = vld [vmem:[#allocation6 + $0x5c0] ss:$16 sps:$4 sm:$0xff]   ;;  %v1344_v46 = vsub.s32 5, %v5980_v18  ;;  %v1570_v50 = vmax.f32 %v1442_v43, 0.0 }
 0x198   :  { %v1450_v6 = vadd.f32 %v6012_v0, %v957_v52  ;;  %v959_v29 = vadd.f32 %v958_v54, %v7276_v16  ;;  %3312 = vmatprep.mubr.bf16.mxu0 %v6173_v24  ;;  %3595 = vmatprep.subr.bf16.mxu1 %v5078_v55  ;;  %v1452_v7 = vadd.f32 %v6022_v4, %v1070_v62  ;;  %v7279_v2 = vld [vmem:[#allocation20_spill] sm:$0xff]  ;;  %v1572_v52 = vmax.f32 %v1444_v30, 0.0  ;;  %v7280_v62 = vld [vmem:[#allocation21_spill] sm:$0xff] }
 0x199   :  { %v1072_v58 = vadd.f32 %v1071_v49, %v7277_v22  ;;  %3425 = vmatprep.mubr.bf16.mxu1 %v6177_v5  ;;  %v962_v35 = vpop.f32.mrf.mxu0  ;;  %3313 = vmatmul.mubr.bf16.gmra.mxu0 %v6166_v38  ;;  %v1075_v10 = vpop.f32.mrf.mxu1  ;;  %v5082_v40 = vld [vmem:[#allocation6 + $0x7c0] ss:$16 sps:$4 sm:$0xff]   ;;  %v1571_v3 = vmax.f32 %v1443_v25, 0.0  ;;  %v1573_v16 = vmax.f32 %v1445_v57, 0.0 }
 0x19a   :  { %v1578_v1 = vmax.f32 %v1450_v6, 0.0  ;;  %v1451_v32 = vadd.f32 %v6017_v53, %v959_v29  ;;  %v963_v63 = vadd.f32 %v962_v35, %v7278_v26  ;;  %3426 = vmatmul.mubr.bf16.gmra.mxu1 %v6169_v21  ;;  %3483 = vmatpush2.bf16.msra.mxu0 %v5073_v51  ;;  %v1580_v55 = vmax.f32 %v1452_v7, 0.0  ;;  %v5090_v6 = vld [vmem:[#allocation6 + $0x7a4] ss:$16 sps:$4 sm:$0xff]  }
 0x19b   :  { %v1453_v11 = vadd.f32 %v6027_v56, %v1072_v58  ;;  %v1076_v23 = vadd.f32 %v1075_v10, %v7279_v2  ;;  %3596 = vmatpush2.bf16.msra.mxu1 %v5076_v15  ;;  %v964_v13 = vpop.f32.mrf.mxu0  ;;  %3484 = vmatprep.subr.bf16.mxu0 %v5081_v47  ;;  %v1077_v51 = vpop.f32.mrf.mxu1  ;;  %v7281_v49 = vld [vmem:[#allocation22_spill] sm:$0xff]  ;;  %v7282_v58 = vld [vmem:[#allocation23_spill] sm:$0xff]  ;;  %v7283_v57 = vld [vmem:[#allocation24_spill] sm:$0xff] }
 0x19c   :  { %v1579_v31 = vmax.f32 %v1451_v32, 0.0  ;;  %v965_v54 = vadd.f32 %v964_v13, %v7280_v62  ;;  %3597 = vmatprep.subr.bf16.mxu1 %v5084_v59  ;;  %v6195_v43 = vpack.c.bf16 %v1578_v1, %v1570_v50  ;;  %v1078_v7 = vadd.f32 %v1077_v51, %v7281_v49  ;;  %v5085_v32 = vld [vmem:[#allocation6 + $0x5a0] ss:$16 sps:$4 sm:$0xff]  }
 0x19d   :  { %v1581_v29 = vmax.f32 %v1453_v11, 0.0  ;;  %v966_v22 = vpop.f32.mrf.mxu0  ;;  %v6198_v15 = vpack.c.bf16 %v1580_v55, %v1572_v52  ;;  %v1458_v47 = vadd.f32 %v6012_v0, %v963_v63  ;;  %v1079_v25 = vpop.f32.mrf.mxu1  ;;  %v1460_v59 = vadd.f32 %v6022_v4, %v1076_v23  ;;  %v5088_v50 = vld [vmem:[#allocation6 + $0x7a0] ss:$16 sps:$4 sm:$0xff]   ;;  %v5093_v55 = vld [vmem:[#allocation6 + $0x584] ss:$16 sps:$4 sm:$0xff]  }
 0x19e   :  { %v967_v30 = vadd.f32 %v966_v22, %v7282_v58  ;;  %3485 = vmatpush2.bf16.msra.mxu0 %v5079_v42  ;;  %v6202_v35 = vpack.c.bf16 %v1579_v31, %v1571_v3  ;;  %v1080_v1 = vadd.f32 %v1079_v25, %v7283_v57  ;;  %v1459_v63 = vadd.f32 %v6017_v53, %v965_v54  ;;  %v7284_v2 = vld [vmem:[#allocation25_spill] sm:$0xff]  ;;  %v5096_v23 = vld [vmem:[#allocation6 + $0x784] ss:$16 sps:$4 sm:$0xff]  }
 0x19f   :  { %3598 = vmatpush2.bf16.msra.mxu1 %v5082_v40  ;;  %v968_v26 = vpop.f32.mrf.mxu0  ;;  %v6206_v10 = vpack.c.bf16 %v1581_v29, %v1573_v16  ;;  %3486 = vmatprep.subr.bf16.mxu0 %v5087_v45  ;;  %v1081_v13 = vpop.f32.mrf.mxu1  ;;  %v1461_v52 = vadd.f32 %v6027_v56, %v1078_v7  ;;  %v7285_v3 = vld [vmem:[#allocation26_spill] sm:$0xff]  ;;  %v7286_v16 = vld [vmem:[#allocation27_spill] sm:$0xff]  ;;  %v6222_v7 = vrot.slane %v5998_v9, %v1344_v46  ;;  %v1586_v22 = vmax.f32 %v1458_v47, 0.0  ;;  %v7287_v25 = vld [vmem:[#allocation28_spill] sm:$0xff] }
 0x1a0   :  { %v1466_v11 = vadd.f32 %v6012_v0, %v967_v30  ;;  %v969_v42 = vadd.f32 %v968_v26, %v7284_v2  ;;  %3322 = vmatprep.mubr.bf16.mxu0 %v6202_v35  ;;  %3599 = vmatprep.subr.bf16.mxu1 %v5090_v6  ;;  %v1468_v40 = vadd.f32 %v6022_v4, %v1080_v1  ;;  %v5091_v49 = vld [vmem:[#allocation6 + $0x580] ss:$16 sps:$4 sm:$0xff]   ;;  %v1588_v2 = vmax.f32 %v1460_v59, 0.0  ;;  %v5102_v46 = vld [vmem:[#allocation6 + $0x764] ss:$16 sps:$4 sm:$0xff]  }
 0x1a1   :  { %v1082_v31 = vadd.f32 %v1081_v13, %v7285_v3  ;;  %3435 = vmatprep.mubr.bf16.mxu1 %v6206_v10  ;;  %v972_v45 = vpop.f32.mrf.mxu0  ;;  %3323 = vmatmul.mubr.bf16.gmra.mxu0 %v6195_v43  ;;  %v1085_v6 = vpop.f32.mrf.mxu1  ;;  %v5094_v26 = vld [vmem:[#allocation6 + $0x780] ss:$16 sps:$4 sm:$0xff]  }
 0x1a2   :  { %v1594_v54 = vmax.f32 %v1466_v11, 0.0  ;;  %v1467_v51 = vadd.f32 %v6017_v53, %v969_v42  ;;  %v973_v29 = vadd.f32 %v972_v45, %v7286_v16  ;;  %3436 = vmatmul.mubr.bf16.gmra.mxu1 %v6198_v15  ;;  %3487 = vmatpush2.bf16.msra.mxu0 %v5085_v32  ;;  %v1596_v58 = vmax.f32 %v1468_v40, 0.0  ;;  %v5099_v11 = vld [vmem:[#allocation6 + $0x564] ss:$16 sps:$4 sm:$0xff]   ;;  %v7288_v3 = vld [vmem:[#allocation29_spill] sm:$0xff] }
 0x1a3   :  { %v1469_v30 = vadd.f32 %v6027_v56, %v1082_v31  ;;  %v1086_v57 = vadd.f32 %v1085_v6, %v7287_v25  ;;  %3600 = vmatpush2.bf16.msra.mxu1 %v5088_v50  ;;  %v974_v1 = vpop.f32.mrf.mxu0  ;;  %3488 = vmatprep.subr.bf16.mxu0 %v5093_v55  ;;  %v1587_v42 = vmax.f32 %v1459_v63, 0.0  ;;  %v1087_v45 = vpop.f32.mrf.mxu1  ;;  %v1589_v16 = vmax.f32 %v1461_v52, 0.0  ;;  %v7289_v31 = vld [vmem:[#allocation30_spill] sm:$0xff]  ;;  %v7290_v25 = vld [vmem:[#allocation31_spill] sm:$0xff]  ;;  %v7291_v52 = vld [vmem:[#allocation32_spill] sm:$0xff] }
 0x1a4   :  { %v1595_v13 = vmax.f32 %v1467_v51, 0.0  ;;  %v975_v32 = vadd.f32 %v974_v1, %v7288_v3  ;;  %3601 = vmatprep.subr.bf16.mxu1 %v5096_v23  ;;  %v6227_v47 = vpack.c.bf16 %v1594_v54, %v1586_v22  ;;  %v1088_v62 = vadd.f32 %v1087_v45, %v7289_v31  ;;  %v5097_v1 = vld [vmem:[#allocation6 + $0x560] ss:$16 sps:$4 sm:$0xff]  }
 0x1a5   :  { %v1597_v40 = vmax.f32 %v1469_v30, 0.0  ;;  %v976_v6 = vpop.f32.mrf.mxu0  ;;  %v6230_v50 = vpack.c.bf16 %v1596_v58, %v1588_v2  ;;  %v1474_v55 = vadd.f32 %v6012_v0, %v973_v29  ;;  %v1089_v63 = vpop.f32.mrf.mxu1  ;;  %v1476_v23 = vadd.f32 %v6022_v4, %v1086_v57  ;;  %v5100_v58 = vld [vmem:[#allocation6 + $0x760] ss:$16 sps:$4 sm:$0xff]   ;;  %v5105_v2 = vld [vmem:[#allocation6 + $0x544] ss:$16 sps:$4 sm:$0xff]  }
 0x1a6   :  { %v977_v59 = vadd.f32 %v976_v6, %v7290_v25  ;;  %3489 = vmatpush2.bf16.msra.mxu0 %v5091_v49  ;;  %v6234_v51 = vpack.c.bf16 %v1595_v13, %v1587_v42  ;;  %v1090_v54 = vadd.f32 %v1089_v63, %v7291_v52  ;;  %v1475_v29 = vadd.f32 %v6017_v53, %v975_v32  ;;  %v7292_v45 = vld [vmem:[#allocation33_spill] sm:$0xff]  ;;  %v5108_v57 = vld [vmem:[#allocation6 + $0x744] ss:$16 sps:$4 sm:$0xff]   ;;  %v7294_v31 = vld [vmem:[#allocation35_spill] sm:$0xff] }
 0x1a7   :  { %3602 = vmatpush2.bf16.msra.mxu1 %v5094_v26  ;;  %v978_v22 = vpop.f32.mrf.mxu0  ;;  %v6238_v30 = vpack.c.bf16 %v1597_v40, %v1589_v16  ;;  %3490 = vmatprep.subr.bf16.mxu0 %v5099_v11  ;;  %v1091_v42 = vpop.f32.mrf.mxu1  ;;  %v1477_v13 = vadd.f32 %v6027_v56, %v1088_v62  ;;  %v7293_v16 = vld [vmem:[#allocation34_spill] sm:$0xff]  ;;  %v7295_v62 = vsub.s32 7, %v5980_v18 }
 0x1a8   :  { %v1482_v3 = vadd.f32 %v6012_v0, %v977_v59  ;;  %v979_v49 = vadd.f32 %v978_v22, %v7292_v45  ;;  %3332 = vmatprep.mubr.bf16.mxu0 %v6234_v51  ;;  %3603 = vmatprep.subr.bf16.mxu1 %v5102_v46  ;;  %v1484_v26 = vadd.f32 %v6022_v4, %v1090_v54  ;;  %v5103_v46 = vld [vmem:[#allocation6 + $0x540] ss:$16 sps:$4 sm:$0xff]   ;;  %v1602_v59 = vmax.f32 %v1474_v55, 0.0  ;;  %v5111_v45 = vld [vmem:[#allocation6 + $0x524] ss:$16 sps:$4 sm:$0xff]  }
 0x1a9   :  { %v1092_v40 = vadd.f32 %v1091_v42, %v7293_v16  ;;  %3445 = vmatprep.mubr.bf16.mxu1 %v6238_v30  ;;  %v1128_v11 = vpop.f32.mrf.mxu0  ;;  %3333 = vmatmul.mubr.bf16.gmra.mxu0 %v6227_v47  ;;  %v1241_v25 = vpop.f32.mrf.mxu1  ;;  %v6255_v4 = vrot.slane %v5998_v9, %v7295_v62  ;;  %v7296_v54 = vld [vmem:[#allocation36_spill] sm:$0xff]  ;;  %v1603_v42 = vmax.f32 %v1475_v29, 0.0  ;;  %v7297_v16 = vld [vmem:[#allocation37_spill] sm:$0xff]  ;;  %v1605_v62 = vmax.f32 %v1477_v13, 0.0 }
 0x1aa   :  { %v1610_v32 = vmax.f32 %v1482_v3, 0.0  ;;  %v1483_v0 = vadd.f32 %v6017_v53, %v979_v49  ;;  %v1129_v6 = vadd.f32 %v1128_v11, %v7294_v31  ;;  %3446 = vmatmul.mubr.bf16.gmra.mxu1 %v6230_v50  ;;  %3491 = vmatpush2.bf16.msra.mxu0 %v5097_v1  ;;  %v1612_v63 = vmax.f32 %v1484_v26, 0.0  ;;  %v5106_v3 = vld [vmem:[#allocation6 + $0x740] ss:$16 sps:$4 sm:$0xff]   ;;  %v5114_v9 = vld [vmem:[#allocation6 + $0x724] ss:$16 sps:$4 sm:$0xff]  }
 0x1ab   :  { %v1485_v52 = vadd.f32 %v6027_v56, %v1092_v40  ;;  %v1242_v22 = vadd.f32 %v1241_v25, %v7296_v54  ;;  %3604 = vmatpush2.bf16.msra.mxu1 %v5100_v58  ;;  %v1130_v53 = vpop.f32.mrf.mxu0  ;;  %3492 = vmatprep.subr.bf16.mxu0 %v5105_v2  ;;  %v1604_v49 = vmax.f32 %v1476_v23, 0.0  ;;  %v1243_v31 = vpop.f32.mrf.mxu1  ;;  %v7299_v56 = vld [vmem:[#allocation38_spill] sm:$0xff]  ;;  %v7301_v54 = vld [vmem:[#allocation39_spill] sm:$0xff]  ;;  %v7303_v13 = vld [vmem:[#allocation40_spill] sm:$0xff] }
 0x1ac   :  { %v1611_v1 = vmax.f32 %v1483_v0, 0.0  ;;  %v1131_v11 = vadd.f32 %v1130_v53, %v7297_v16  ;;  %3605 = vmatprep.subr.bf16.mxu1 %v5108_v57  ;;  %v6260_v55 = vpack.c.bf16 %v1610_v32, %v1602_v59  ;;  %v1244_v40 = vadd.f32 %v1243_v31, %v7299_v56  ;;  %v5109_v53 = vld [vmem:[#allocation6 + $0x520] ss:$16 sps:$4 sm:$0xff]  }
 0x1ad   :  { %v1613_v26 = vmax.f32 %v1485_v52, 0.0  ;;  %v1132_v25 = vpop.f32.mrf.mxu0  ;;  %v6263_v58 = vpack.c.bf16 %v1612_v63, %v1604_v49  ;;  %v1366_v2 = vadd.f32 %v6128_v12, %v1129_v6  ;;  %v1245_v29 = vpop.f32.mrf.mxu1  ;;  %v1368_v57 = vadd.f32 %v6161_v8, %v1242_v22  ;;  %v5112_v63 = vld [vmem:[#allocation6 + $0x720] ss:$16 sps:$4 sm:$0xff]   ;;  %v5117_v49 = vld [vmem:[#allocation6 + $0x504] ss:$16 sps:$4 sm:$0xff]  }
 0x1ae   :  { %7298 = vst [vmem:[#allocation12_spill] sm:$0xff] %v6260_v55  ;;  %v1133_v23 = vadd.f32 %v1132_v25, %v7301_v54  ;;  %3493 = vmatpush2.bf16.msra.mxu0 %v5103_v46  ;;  %v6267_v0 = vpack.c.bf16 %v1611_v1, %v1603_v42  ;;  %v1246_v32 = vadd.f32 %v1245_v29, %v7303_v13  ;;  %v7305_v31 = vld [vmem:[#allocation41_spill] sm:$0xff]  ;;  %v5120_v22 = vld [vmem:[#allocation6 + $0x704] ss:$16 sps:$4 sm:$0xff]   ;;  %v7307_v25 = vld [vmem:[#allocation43_spill] sm:$0xff] }
 0x1af   :  { %7300 = vst [vmem:[#allocation13_spill] sm:$0xff] %v6263_v58  ;;  %3606 = vmatpush2.bf16.msra.mxu1 %v5106_v3  ;;  %v1134_v59 = vpop.f32.mrf.mxu0  ;;  %v6271_v52 = vpack.c.bf16 %v1613_v26, %v1605_v62  ;;  %3494 = vmatprep.subr.bf16.mxu0 %v5111_v45  ;;  %v1367_v6 = vadd.f32 %v6222_v7, %v1131_v11  ;;  %v1247_v42 = vpop.f32.mrf.mxu1  ;;  %v7306_v62 = vld [vmem:[#allocation42_spill] sm:$0xff] }
 0x1b0   :  { %7302 = vst [vmem:[#allocation14_spill] sm:$0xff] %v6267_v0  ;;  %v1374_v16 = vadd.f32 %v6128_v12, %v1133_v23  ;;  %v1135_v46 = vadd.f32 %v1134_v59, %v7305_v31  ;;  %3342 = vmatprep.mubr.bf16.mxu0 %v6267_v0  ;;  %3607 = vmatprep.subr.bf16.mxu1 %v5114_v9  ;;  %v5115_v9 = vld [vmem:[#allocation6 + $0x500] ss:$16 sps:$4 sm:$0xff]  }
 0x1b1   :  { %7304 = vst [vmem:[#allocation15_spill] sm:$0xff] %v6271_v52  ;;  %v1369_v1 = vadd.f32 %v6255_v4, %v1244_v40  ;;  %v1376_v3 = vadd.f32 %v6161_v8, %v1246_v32  ;;  %v1248_v26 = vadd.f32 %v1247_v42, %v7306_v62  ;;  %3455 = vmatprep.mubr.bf16.mxu1 %v6271_v52  ;;  %v1138_v45 = vpop.f32.mrf.mxu0  ;;  %v1251_v23 = vpop.f32.mrf.mxu1  ;;  %v1494_v40 = vmax.f32 %v1366_v2, 0.0  ;;  %v7308_v32 = vld [vmem:[#allocation44_spill] sm:$0xff] }
 0x1b2   :  { %3343 = vmatmul.mubr.bf16.gmra.mxu0 %v6260_v55  ;;  %v1502_v11 = vmax.f32 %v1374_v16, 0.0  ;;  %v1375_v56 = vadd.f32 %v6222_v7, %v1135_v46  ;;  %v1139_v54 = vadd.f32 %v1138_v45, %v7307_v25  ;;  %3456 = vmatmul.mubr.bf16.gmra.mxu1 %v6263_v58  ;;  %v1252_v59 = vadd.f32 %v1251_v23, %v7308_v32  ;;  %v5118_v42 = vld [vmem:[#allocation6 + $0x700] ss:$16 sps:$4 sm:$0xff]   ;;  %v5123_v16 = vld [vmem:[#allocation6 + $0xec] ss:$16 sps:$4 sm:$0xff]  }
 0x1b3   :  { %3495 = vmatpush2.bf16.msra.mxu0 %v5109_v53  ;;  %v1504_v29 = vmax.f32 %v1376_v3, 0.0  ;;  %v1377_v13 = vadd.f32 %v6255_v4, %v1248_v26  ;;  %3608 = vmatpush2.bf16.msra.mxu1 %v5112_v63  ;;  %v1140_v31 = vpop.f32.mrf.mxu0  ;;  %v1496_v62 = vmax.f32 %v1368_v57, 0.0  ;;  %v1495_v46 = vmax.f32 %v1367_v6, 0.0  ;;  %v7309_v45 = vld [vmem:[#allocation45_spill] sm:$0xff]  ;;  %v1253_v55 = vpop.f32.mrf.mxu1  ;;  %v7311_v26 = vld [vmem:[#allocation46_spill] sm:$0xff]  ;;  %v7313_v32 = vld [vmem:[#allocation47_spill] sm:$0xff] }
 0x1b4   :  { %3496 = vmatprep.subr.bf16.mxu0 %v5117_v49  ;;  %v1503_v18 = vmax.f32 %v1375_v56, 0.0  ;;  %v1141_v25 = vadd.f32 %v1140_v31, %v7309_v45  ;;  %3609 = vmatprep.subr.bf16.mxu1 %v5120_v22  ;;  %v5126_v53 = vld [vmem:[#allocation6 + $0x2ec] ss:$16 sps:$4 sm:$0xff]   ;;  %v1497_v58 = vmax.f32 %v1369_v1, 0.0  ;;  %v6288_v2 = vpack.c.bf16 %v1502_v11, %v1494_v40  ;;  %v5121_v31 = vld [vmem:[#allocation6 + $0xe8] ss:$16 sps:$4 sm:$0xff]  }
 0x1b5   :  { %v1505_v3 = vmax.f32 %v1377_v13, 0.0  ;;  %v1254_v52 = vadd.f32 %v1253_v55, %v7311_v26  ;;  %v1142_v23 = vpop.f32.mrf.mxu0  ;;  %v6291_v63 = vpack.c.bf16 %v1504_v29, %v1496_v62  ;;  %v1382_v49 = vadd.f32 %v6128_v12, %v1139_v54  ;;  %v1255_v6 = vpop.f32.mrf.mxu1  ;;  %v7315_v1 = vld [vmem:[#allocation48_spill] sm:$0xff]  ;;  %v5129_v29 = vld [vmem:[#allocation6 + $0xcc] ss:$16 sps:$4 sm:$0xff]  }
 0x1b6   :  { %7310 = vst [vmem:[#allocation16_spill] sm:$0xff] %v6288_v2  ;;  %v1143_v57 = vadd.f32 %v1142_v23, %v7313_v32  ;;  %v6295_v56 = vpack.c.bf16 %v1503_v18, %v1495_v46  ;;  %v1384_v22 = vadd.f32 %v6161_v8, %v1252_v59  ;;  %v1256_v11 = vadd.f32 %v1255_v6, %v7315_v1  ;;  %v5124_v55 = vld [vmem:[#allocation6 + $0x2e8] ss:$16 sps:$4 sm:$0xff]   ;;  %v5132_v59 = vld [vmem:[#allocation6 + $0x2cc] ss:$16 sps:$4 sm:$0xff]  }
 0x1b7   :  { %7312 = vst [vmem:[#allocation17_spill] sm:$0xff] %v6291_v63  ;;  %3497 = vmatpush2.bf16.msra.mxu0 %v5115_v9  ;;  %3610 = vmatpush2.bf16.msra.mxu1 %v5118_v42  ;;  %v1144_v40 = vpop.f32.mrf.mxu0  ;;  %v6299_v13 = vpack.c.bf16 %v1505_v3, %v1497_v58  ;;  %v1383_v54 = vadd.f32 %v6222_v7, %v1141_v25  ;;  %v7317_v45 = vld [vmem:[#allocation49_spill] sm:$0xff]  ;;  %v1257_v18 = vpop.f32.mrf.mxu1  ;;  %v7318_v58 = vld [vmem:[#allocation50_spill] sm:$0xff]  ;;  %v7319_v23 = vld [vmem:[#allocation51_spill] sm:$0xff] }
 0x1b8   :  { %7314 = vst [vmem:[#allocation18_spill] sm:$0xff] %v6295_v56  ;;  %3692 = vmatprep.subr.bf16.mxu0 %v5123_v16  ;;  %v1390_v62 = vadd.f32 %v6128_v12, %v1143_v57  ;;  %v1145_v9 = vadd.f32 %v1144_v40, %v7317_v45  ;;  %3498 = vmatprep.mubr.bf16.mxu0 %v6295_v56  ;;  %v7383_v0 = vld [vmem:[#allocation96_spill] sm:$0xff] }
 0x1b9   :  { %7316 = vst [vmem:[#allocation19_spill] sm:$0xff] %v6299_v13  ;;  %3805 = vmatprep.subr.bf16.mxu1 %v5126_v53  ;;  %v1385_v46 = vadd.f32 %v6255_v4, %v1254_v52  ;;  %v1392_v42 = vadd.f32 %v6161_v8, %v1256_v11  ;;  %v1258_v3 = vadd.f32 %v1257_v18, %v7318_v58  ;;  %v1148_v16 = vpop.f32.mrf.mxu0  ;;  %v1261_v57 = vpop.f32.mrf.mxu1  ;;  %v5127_v53 = vld [vmem:[#allocation6 + $0xc8] ss:$16 sps:$4 sm:$0xff]   ;;  %v1510_v52 = vmax.f32 %v1382_v49, 0.0 }
 0x1ba   :  { %3611 = vmatprep.mubr.bf16.mxu1 %v6299_v13  ;;  %3499 = vmatmul.mubr.bf16.vlgmr.msra.gmra.mxu0 %v6288_v2  ;;  %v1518_v25 = vmax.f32 %v1390_v62, 0.0  ;;  %v1391_v26 = vadd.f32 %v6222_v7, %v1145_v9  ;;  %v1149_v32 = vadd.f32 %v1148_v16, %v7319_v23  ;;  %v7320_v11 = vld [vmem:[#allocation52_spill] sm:$0xff]  ;;  %v5135_v62 = vld [vmem:[#allocation6 + $0xac] ss:$16 sps:$4 sm:$0xff]   ;;  %v1512_v58 = vmax.f32 %v1384_v22, 0.0 }
 0x1bb   :  { %3612 = vmatmul.mubr.bf16.vlgmr.msra.gmra.mxu1 %v6291_v63  ;;  %3693 = vmatpush1.bf16.msra.mxu0 %v5121_v31  ;;  %v1520_v6 = vmax.f32 %v1392_v42, 0.0  ;;  %v1393_v1 = vadd.f32 %v6255_v4, %v1258_v3  ;;  %v1262_v40 = vadd.f32 %v1261_v57, %v7320_v11  ;;  %v1150_v45 = vpop.f32.mrf.mxu0  ;;  %v5130_v18 = vld [vmem:[#allocation6 + $0x2c8] ss:$16 sps:$4 sm:$0xff]   ;;  %v1511_v9 = vmax.f32 %v1383_v54, 0.0  ;;  %v1263_v13 = vpop.f32.mrf.mxu1  ;;  %v5138_v31 = vld [vmem:[#allocation6 + $0x2ac] ss:$16 sps:$4 sm:$0xff]  }
 0x1bc   :  { %3806 = vmatpush1.bf16.msra.mxu1 %v5124_v55  ;;  %3694 = vmatprep.subr.bf16.mxu0 %v5129_v29  ;;  %v1519_v2 = vmax.f32 %v1391_v26, 0.0  ;;  %v7321_v16 = vld [vmem:[#allocation53_spill] sm:$0xff]  ;;  %v1513_v63 = vmax.f32 %v1385_v46, 0.0  ;;  %v6316_v49 = vpack.c.bf16 %v1518_v25, %v1510_v52  ;;  %v7323_v3 = vld [vmem:[#allocation54_spill] sm:$0xff]  ;;  %v1398_v29 = vadd.f32 %v6128_v12, %v1149_v32  ;;  %v7325_v11 = vld [vmem:[#allocation55_spill] sm:$0xff] }
 0x1bd   :  { %v1151_v23 = vadd.f32 %v1150_v45, %v7321_v16  ;;  %3807 = vmatprep.subr.bf16.mxu1 %v5132_v59  ;;  %v1521_v42 = vmax.f32 %v1393_v1, 0.0  ;;  %v1264_v56 = vadd.f32 %v1263_v13, %v7323_v3  ;;  %v1152_v57 = vpop.f32.mrf.mxu0  ;;  %v6319_v55 = vpack.c.bf16 %v1520_v6, %v1512_v58  ;;  %v1265_v54 = vpop.f32.mrf.mxu1  ;;  %v5133_v45 = vld [vmem:[#allocation6 + $0xa8] ss:$16 sps:$4 sm:$0xff]   ;;  %v5141_v6 = vld [vmem:[#allocation6 + $0x8c] ss:$16 sps:$4 sm:$0xff]  }
 0x1be   :  { %7322 = vst [vmem:[#allocation20_spill] sm:$0xff] %v6316_v49  ;;  %v1153_v22 = vadd.f32 %v1152_v57, %v7325_v11  ;;  %v6323_v26 = vpack.c.bf16 %v1519_v2, %v1511_v9  ;;  %v1400_v59 = vadd.f32 %v6161_v8, %v1262_v40  ;;  %v7327_v46 = vld [vmem:[#allocation56_spill] sm:$0xff]  ;;  %v7329_v16 = vld [vmem:[#allocation57_spill] sm:$0xff]  ;;  %v7331_v57 = vld [vmem:[#allocation59_spill] sm:$0xff] }
 0x1bf   :  { %7324 = vst [vmem:[#allocation21_spill] sm:$0xff] %v6319_v55  ;;  %3695 = vmatpush1.bf16.msra.mxu0 %v5127_v53  ;;  %v1266_v25 = vadd.f32 %v1265_v54, %v7327_v46  ;;  %v1154_v52 = vpop.f32.mrf.mxu0  ;;  %v6327_v1 = vpack.c.bf16 %v1521_v42, %v1513_v63  ;;  %v5136_v13 = vld [vmem:[#allocation6 + $0x2a8] ss:$16 sps:$4 sm:$0xff]   ;;  %v1399_v32 = vadd.f32 %v6222_v7, %v1151_v23  ;;  %v1267_v2 = vpop.f32.mrf.mxu1  ;;  %v5144_v40 = vld [vmem:[#allocation6 + $0x28c] ss:$16 sps:$4 sm:$0xff]  }
 0x1c0   :  { %7326 = vst [vmem:[#allocation22_spill] sm:$0xff] %v6323_v26  ;;  %3808 = vmatpush1.bf16.msra.mxu1 %v5130_v18  ;;  %3696 = vmatprep.subr.bf16.mxu0 %v5135_v62  ;;  %v1406_v58 = vadd.f32 %v6128_v12, %v1153_v22  ;;  %v1155_v53 = vadd.f32 %v1154_v52, %v7329_v16  ;;  %v7330_v63 = vld [vmem:[#allocation58_spill] sm:$0xff] }
 0x1c1   :  { %7328 = vst [vmem:[#allocation23_spill] sm:$0xff] %v6327_v1  ;;  %3508 = vmatprep.mubr.bf16.mxu0 %v6323_v26  ;;  %3809 = vmatprep.subr.bf16.mxu1 %v5138_v31  ;;  %v1401_v9 = vadd.f32 %v6255_v4, %v1264_v56  ;;  %v1408_v18 = vadd.f32 %v6161_v8, %v1266_v25  ;;  %v1158_v62 = vpop.f32.mrf.mxu0  ;;  %v1271_v22 = vpop.f32.mrf.mxu1  ;;  %v5139_v31 = vld [vmem:[#allocation6 + $0x88] ss:$16 sps:$4 sm:$0xff]   ;;  %v1526_v56 = vmax.f32 %v1398_v29, 0.0 }
 0x1c2   :  { %v1268_v42 = vadd.f32 %v1267_v2, %v7330_v63  ;;  %3621 = vmatprep.mubr.bf16.mxu1 %v6327_v1  ;;  %3509 = vmatmul.mubr.bf16.gmra.mxu0 %v6316_v49  ;;  %v1534_v23 = vmax.f32 %v1406_v58, 0.0  ;;  %v1407_v3 = vadd.f32 %v6222_v7, %v1155_v53  ;;  %v1159_v11 = vadd.f32 %v1158_v62, %v7331_v57  ;;  %v7332_v25 = vld [vmem:[#allocation60_spill] sm:$0xff]  ;;  %v5147_v58 = vld [vmem:[#allocation6 + $0x6c] ss:$16 sps:$4 sm:$0xff]  }
 0x1c3   :  { %3622 = vmatmul.mubr.bf16.gmra.mxu1 %v6319_v55  ;;  %3697 = vmatpush1.bf16.msra.mxu0 %v5133_v45  ;;  %v1536_v54 = vmax.f32 %v1408_v18, 0.0  ;;  %v1272_v52 = vadd.f32 %v1271_v22, %v7332_v25  ;;  %v1160_v16 = vpop.f32.mrf.mxu0  ;;  %v5142_v2 = vld [vmem:[#allocation6 + $0x288] ss:$16 sps:$4 sm:$0xff]   ;;  %v1528_v63 = vmax.f32 %v1400_v59, 0.0  ;;  %v1527_v53 = vmax.f32 %v1399_v32, 0.0  ;;  %v1273_v1 = vpop.f32.mrf.mxu1 }
 0x1c4   :  { %v1409_v46 = vadd.f32 %v6255_v4, %v1268_v42  ;;  %3810 = vmatpush1.bf16.msra.mxu1 %v5136_v13  ;;  %3698 = vmatprep.subr.bf16.mxu0 %v5141_v6  ;;  %v1535_v49 = vmax.f32 %v1407_v3, 0.0  ;;  %v7333_v62 = vld [vmem:[#allocation61_spill] sm:$0xff]  ;;  %v1529_v55 = vmax.f32 %v1401_v9, 0.0  ;;  %v6344_v29 = vpack.c.bf16 %v1534_v23, %v1526_v56  ;;  %v7335_v42 = vld [vmem:[#allocation62_spill] sm:$0xff]  ;;  %v7337_v25 = vld [vmem:[#allocation63_spill] sm:$0xff] }
 0x1c5   :  { %v1161_v57 = vadd.f32 %v1160_v16, %v7333_v62  ;;  %3811 = vmatprep.subr.bf16.mxu1 %v5144_v40  ;;  %v5150_v45 = vld [vmem:[#allocation6 + $0x26c] ss:$16 sps:$4 sm:$0xff]   ;;  %v1274_v26 = vadd.f32 %v1273_v1, %v7335_v42  ;;  %v1162_v22 = vpop.f32.mrf.mxu0  ;;  %v6347_v13 = vpack.c.bf16 %v1536_v54, %v1528_v63  ;;  %v1414_v6 = vadd.f32 %v6128_v12, %v1159_v11  ;;  %v1275_v32 = vpop.f32.mrf.mxu1  ;;  %v5145_v16 = vld [vmem:[#allocation6 + $0x68] ss:$16 sps:$4 sm:$0xff]  }
 0x1c6   :  { %7334 = vst [vmem:[#allocation24_spill] sm:$0xff] %v6344_v29  ;;  %v1537_v18 = vmax.f32 %v1409_v46, 0.0  ;;  %v1163_v59 = vadd.f32 %v1162_v22, %v7337_v25  ;;  %v6351_v3 = vpack.c.bf16 %v1535_v49, %v1527_v53  ;;  %v1416_v40 = vadd.f32 %v6161_v8, %v1272_v52  ;;  %v7339_v9 = vld [vmem:[#allocation64_spill] sm:$0xff]  ;;  %v5153_v54 = vld [vmem:[#allocation6 + $0x4c] ss:$16 sps:$4 sm:$0xff]  }
 0x1c7   :  { %7336 = vst [vmem:[#allocation25_spill] sm:$0xff] %v6347_v13  ;;  %3699 = vmatpush1.bf16.msra.mxu0 %v5139_v31  ;;  %v1276_v23 = vadd.f32 %v1275_v32, %v7339_v9  ;;  %v1164_v56 = vpop.f32.mrf.mxu0  ;;  %v5148_v1 = vld [vmem:[#allocation6 + $0x268] ss:$16 sps:$4 sm:$0xff]   ;;  %v1415_v11 = vadd.f32 %v6222_v7, %v1161_v57  ;;  %v1277_v49 = vpop.f32.mrf.mxu1  ;;  %v5156_v52 = vld [vmem:[#allocation6 + $0x24c] ss:$16 sps:$4 sm:$0xff]   ;;  %v1417_v53 = vadd.f32 %v6255_v4, %v1274_v26  ;;  %v1542_v26 = vmax.f32 %v1414_v6, 0.0 }
 0x1c8   :  { %7338 = vst [vmem:[#allocation26_spill] sm:$0xff] %v6351_v3  ;;  %3812 = vmatpush1.bf16.msra.mxu1 %v5142_v2  ;;  %v6355_v46 = vpack.c.bf16 %v1537_v18, %v1529_v55  ;;  %3700 = vmatprep.subr.bf16.mxu0 %v5147_v58  ;;  %v1422_v63 = vadd.f32 %v6128_v12, %v1163_v59  ;;  %v7341_v62 = vld [vmem:[#allocation65_spill] sm:$0xff]  ;;  %v7342_v55 = vld [vmem:[#allocation66_spill] sm:$0xff]  ;;  %v7343_v22 = vld [vmem:[#allocation67_spill] sm:$0xff] }
 0x1c9   :  { %v1165_v31 = vadd.f32 %v1164_v56, %v7341_v62  ;;  %3518 = vmatprep.mubr.bf16.mxu0 %v6351_v3  ;;  %3813 = vmatprep.subr.bf16.mxu1 %v5150_v45  ;;  %v1424_v2 = vadd.f32 %v6161_v8, %v1276_v23  ;;  %v1278_v18 = vadd.f32 %v1277_v49, %v7342_v55  ;;  %v1168_v58 = vpop.f32.mrf.mxu0  ;;  %v1281_v59 = vpop.f32.mrf.mxu1  ;;  %v5151_v45 = vld [vmem:[#allocation6 + $0x48] ss:$16 sps:$4 sm:$0xff]   ;;  %v1544_v55 = vmax.f32 %v1416_v40, 0.0 }
 0x1ca   :  { %7340 = vst [vmem:[#allocation27_spill] sm:$0xff] %v6355_v46  ;;  %3631 = vmatprep.mubr.bf16.mxu1 %v6355_v46  ;;  %3519 = vmatmul.mubr.bf16.gmra.mxu0 %v6344_v29  ;;  %v1550_v57 = vmax.f32 %v1422_v63, 0.0  ;;  %v1169_v25 = vadd.f32 %v1168_v58, %v7343_v22  ;;  %v7344_v23 = vld [vmem:[#allocation68_spill] sm:$0xff]  ;;  %v5159_v63 = vld [vmem:[#allocation6 + $0x2c] ss:$16 sps:$4 sm:$0xff]  }
 0x1cb   :  { %v1423_v42 = vadd.f32 %v6222_v7, %v1165_v31  ;;  %3632 = vmatmul.mubr.bf16.gmra.mxu1 %v6347_v13  ;;  %3701 = vmatpush1.bf16.msra.mxu0 %v5145_v16  ;;  %v1552_v32 = vmax.f32 %v1424_v2, 0.0  ;;  %v1425_v9 = vadd.f32 %v6255_v4, %v1278_v18  ;;  %v1282_v56 = vadd.f32 %v1281_v59, %v7344_v23  ;;  %v1170_v62 = vpop.f32.mrf.mxu0  ;;  %v5154_v49 = vld [vmem:[#allocation6 + $0x248] ss:$16 sps:$4 sm:$0xff]   ;;  %v1283_v46 = vpop.f32.mrf.mxu1  ;;  %v5162_v16 = vld [vmem:[#allocation6 + $0x22c] ss:$16 sps:$4 sm:$0xff]  }
 0x1cc   :  { %3814 = vmatpush1.bf16.msra.mxu1 %v5148_v1  ;;  %3702 = vmatprep.subr.bf16.mxu0 %v5153_v54  ;;  %v1543_v31 = vmax.f32 %v1415_v11, 0.0  ;;  %v7345_v58 = vld [vmem:[#allocation69_spill] sm:$0xff]  ;;  %v1545_v13 = vmax.f32 %v1417_v53, 0.0  ;;  %v6372_v6 = vpack.c.bf16 %v1550_v57, %v1542_v26  ;;  %v7347_v18 = vld [vmem:[#allocation70_spill] sm:$0xff]  ;;  %v1430_v54 = vadd.f32 %v6128_v12, %v1169_v25  ;;  %v7349_v23 = vld [vmem:[#allocation71_spill] sm:$0xff] }
 0x1cd   :  { %v1551_v29 = vmax.f32 %v1423_v42, 0.0  ;;  %v1171_v22 = vadd.f32 %v1170_v62, %v7345_v58  ;;  %3815 = vmatprep.subr.bf16.mxu1 %v5156_v52  ;;  %v1553_v2 = vmax.f32 %v1425_v9, 0.0  ;;  %v1284_v3 = vadd.f32 %v1283_v46, %v7347_v18  ;;  %v1172_v59 = vpop.f32.mrf.mxu0  ;;  %v1285_v11 = vpop.f32.mrf.mxu1  ;;  %v5157_v62 = vld [vmem:[#allocation6 + $0x28] ss:$16 sps:$4 sm:$0xff]  }
 0x1ce   :  { %7346 = vst [vmem:[#allocation28_spill] sm:$0xff] %v6372_v6  ;;  %v6375_v1 = vpack.c.bf16 %v1552_v32, %v1544_v55  ;;  %v1173_v40 = vadd.f32 %v1172_v59, %v7349_v23  ;;  %v1432_v52 = vadd.f32 %v6161_v8, %v1282_v56  ;;  %v7351_v53 = vld [vmem:[#allocation72_spill] sm:$0xff]  ;;  %v5165_v32 = vld [vmem:[#allocation6 + $0xc] ss:$16 sps:$4 sm:$0xff]  }
 0x1cf   :  { %3703 = vmatpush1.bf16.msra.mxu0 %v5151_v45  ;;  %v6379_v42 = vpack.c.bf16 %v1551_v29, %v1543_v31  ;;  %v1286_v57 = vadd.f32 %v1285_v11, %v7351_v53  ;;  %v1174_v26 = vpop.f32.mrf.mxu0  ;;  %v6383_v9 = vpack.c.bf16 %v1553_v2, %v1545_v13  ;;  %v5160_v46 = vld [vmem:[#allocation6 + $0x228] ss:$16 sps:$4 sm:$0xff]   ;;  %v1431_v25 = vadd.f32 %v6222_v7, %v1171_v22  ;;  %v1287_v29 = vpop.f32.mrf.mxu1  ;;  %v5168_v56 = vld [vmem:[#allocation6 + $0x20c] ss:$16 sps:$4 sm:$0xff]  }
 0x1d0   :  { %7348 = vst [vmem:[#allocation29_spill] sm:$0xff] %v6375_v1  ;;  %3816 = vmatpush1.bf16.msra.mxu1 %v5154_v49  ;;  %3704 = vmatprep.subr.bf16.mxu0 %v5159_v63  ;;  %v1438_v55 = vadd.f32 %v6128_v12, %v1173_v40  ;;  %v7353_v58 = vld [vmem:[#allocation73_spill] sm:$0xff]  ;;  %v1433_v31 = vadd.f32 %v6255_v4, %v1284_v3  ;;  %v7354_v13 = vld [vmem:[#allocation74_spill] sm:$0xff]  ;;  %v7355_v59 = vld [vmem:[#allocation75_spill] sm:$0xff]  ;;  %v1558_v3 = vmax.f32 %v1430_v54, 0.0 }
 0x1d1   :  { %7350 = vst [vmem:[#allocation30_spill] sm:$0xff] %v6379_v42  ;;  %7352 = vst [vmem:[#allocation31_spill] sm:$0xff] %v6383_v9  ;;  %v1175_v45 = vadd.f32 %v1174_v26, %v7353_v58  ;;  %3528 = vmatprep.mubr.bf16.mxu0 %v6379_v42  ;;  %3817 = vmatprep.subr.bf16.mxu1 %v5162_v16  ;;  %v1440_v49 = vadd.f32 %v6161_v8, %v1286_v57  ;;  %v1178_v63 = vpop.f32.mrf.mxu0  ;;  %v1291_v40 = vpop.f32.mrf.mxu1  ;;  %v5163_v16 = vld [vmem:[#allocation6 + $0x8] ss:$16 sps:$4 sm:$0xff]  }
 0x1d2   :  { %v1288_v2 = vadd.f32 %v1287_v29, %v7354_v13  ;;  %3641 = vmatprep.mubr.bf16.mxu1 %v6383_v9  ;;  %3529 = vmatmul.mubr.bf16.gmra.mxu0 %v6372_v6  ;;  %v1566_v22 = vmax.f32 %v1438_v55, 0.0  ;;  %v1179_v23 = vadd.f32 %v1178_v63, %v7355_v59  ;;  %v7356_v57 = vld [vmem:[#allocation76_spill] sm:$0xff]  ;;  %v5171_v55 = vld [vmem:[#allocation6 + $0x1ec] ss:$16 sps:$4 sm:$0xff]   ;;  %v1560_v13 = vmax.f32 %v1432_v52, 0.0 }
 0x1d3   :  { %v1439_v18 = vadd.f32 %v6222_v7, %v1175_v45  ;;  %3642 = vmatmul.mubr.bf16.gmra.mxu1 %v6375_v1  ;;  %3705 = vmatpush1.bf16.msra.mxu0 %v5157_v62  ;;  %v1568_v11 = vmax.f32 %v1440_v49, 0.0  ;;  %v1292_v26 = vadd.f32 %v1291_v40, %v7356_v57  ;;  %v1180_v58 = vpop.f32.mrf.mxu0  ;;  %v5166_v29 = vld [vmem:[#allocation6 + $0x208] ss:$16 sps:$4 sm:$0xff]   ;;  %v1559_v45 = vmax.f32 %v1431_v25, 0.0  ;;  %v1293_v9 = vpop.f32.mrf.mxu1  ;;  %v5174_v62 = vld [vmem:[#allocation6 + $0x3ec] ss:$16 sps:$4 sm:$0xff]  }
 0x1d4   :  { %v1441_v53 = vadd.f32 %v6255_v4, %v1288_v2  ;;  %3818 = vmatpush1.bf16.msra.mxu1 %v5160_v46  ;;  %3706 = vmatprep.subr.bf16.mxu0 %v5165_v32  ;;  %v7357_v63 = vld [vmem:[#allocation77_spill] sm:$0xff]  ;;  %v1561_v1 = vmax.f32 %v1433_v31, 0.0  ;;  %v6400_v54 = vpack.c.bf16 %v1566_v22, %v1558_v3  ;;  %v7359_v2 = vld [vmem:[#allocation78_spill] sm:$0xff]  ;;  %v1446_v32 = vadd.f32 %v6128_v12, %v1179_v23  ;;  %v7361_v57 = vld [vmem:[#allocation79_spill] sm:$0xff] }
 0x1d5   :  { %v1567_v6 = vmax.f32 %v1439_v18, 0.0  ;;  %v1181_v59 = vadd.f32 %v1180_v58, %v7357_v63  ;;  %3819 = vmatprep.subr.bf16.mxu1 %v5168_v56  ;;  %v1294_v42 = vadd.f32 %v1293_v9, %v7359_v2  ;;  %v1182_v40 = vpop.f32.mrf.mxu0  ;;  %v6403_v46 = vpack.c.bf16 %v1568_v11, %v1560_v13  ;;  %v1295_v25 = vpop.f32.mrf.mxu1  ;;  %v5169_v58 = vld [vmem:[#allocation6 + $0x1e8] ss:$16 sps:$4 sm:$0xff]   ;;  %v5177_v11 = vld [vmem:[#allocation6 + $0x1cc] ss:$16 sps:$4 sm:$0xff]  }
 0x1d6   :  { %7358 = vst [vmem:[#allocation32_spill] sm:$0xff] %v6400_v54  ;;  %v1569_v49 = vmax.f32 %v1441_v53, 0.0  ;;  %v1183_v52 = vadd.f32 %v1182_v40, %v7361_v57  ;;  %v1448_v56 = vadd.f32 %v6161_v8, %v1292_v26  ;;  %v7363_v31 = vld [vmem:[#allocation80_spill] sm:$0xff]  ;;  %v7365_v63 = vld [vmem:[#allocation81_spill] sm:$0xff]  ;;  %v7367_v40 = vld [vmem:[#allocation83_spill] sm:$0xff] }
 0x1d7   :  { %7360 = vst [vmem:[#allocation33_spill] sm:$0xff] %v6403_v46  ;;  %3707 = vmatpush1.bf16.msra.mxu0 %v5163_v16  ;;  %v6407_v18 = vpack.c.bf16 %v1567_v6, %v1559_v45  ;;  %v1296_v22 = vadd.f32 %v1295_v25, %v7363_v31  ;;  %v1184_v3 = vpop.f32.mrf.mxu0  ;;  %v5172_v9 = vld [vmem:[#allocation6 + $0x3e8] ss:$16 sps:$4 sm:$0xff]   ;;  %v1447_v23 = vadd.f32 %v6222_v7, %v1181_v59  ;;  %v1297_v6 = vpop.f32.mrf.mxu1  ;;  %v5180_v26 = vld [vmem:[#allocation6 + $0x3cc] ss:$16 sps:$4 sm:$0xff]  }
 0x1d8   :  { %3820 = vmatpush1.bf16.msra.mxu1 %v5166_v29  ;;  %v6411_v53 = vpack.c.bf16 %v1569_v49, %v1561_v1  ;;  %3708 = vmatprep.subr.bf16.mxu0 %v5171_v55  ;;  %v1454_v13 = vadd.f32 %v6128_v12, %v1183_v52  ;;  %v1185_v16 = vadd.f32 %v1184_v3, %v7365_v63  ;;  %v7366_v1 = vld [vmem:[#allocation82_spill] sm:$0xff] }
 0x1d9   :  { %7362 = vst [vmem:[#allocation34_spill] sm:$0xff] %v6407_v18  ;;  %3538 = vmatprep.mubr.bf16.mxu0 %v6407_v18  ;;  %3821 = vmatprep.subr.bf16.mxu1 %v5174_v62  ;;  %v1449_v45 = vadd.f32 %v6255_v4, %v1294_v42  ;;  %v1456_v29 = vadd.f32 %v6161_v8, %v1296_v22  ;;  %v1188_v55 = vpop.f32.mrf.mxu0  ;;  %v1301_v52 = vpop.f32.mrf.mxu1  ;;  %v5175_v62 = vld [vmem:[#allocation6 + $0x1c8] ss:$16 sps:$4 sm:$0xff]   ;;  %v1574_v42 = vmax.f32 %v1446_v32, 0.0 }
 0x1da   :  { %7364 = vst [vmem:[#allocation35_spill] sm:$0xff] %v6411_v53  ;;  %v1298_v49 = vadd.f32 %v1297_v6, %v7366_v1  ;;  %3651 = vmatprep.mubr.bf16.mxu1 %v6411_v53  ;;  %3539 = vmatmul.mubr.bf16.gmra.mxu0 %v6400_v54  ;;  %v1582_v59 = vmax.f32 %v1454_v13, 0.0  ;;  %v1455_v2 = vadd.f32 %v6222_v7, %v1185_v16  ;;  %v7368_v22 = vld [vmem:[#allocation84_spill] sm:$0xff]  ;;  %v5183_v13 = vld [vmem:[#allocation6 + $0x1ac] ss:$16 sps:$4 sm:$0xff]   ;;  %v1576_v1 = vmax.f32 %v1448_v56, 0.0 }
 0x1db   :  { %v1189_v57 = vadd.f32 %v1188_v55, %v7367_v40  ;;  %3652 = vmatmul.mubr.bf16.gmra.mxu1 %v6403_v46  ;;  %3709 = vmatpush2.bf16.msra.mxu0 %v5169_v58  ;;  %v1584_v25 = vmax.f32 %v1456_v29, 0.0  ;;  %v1302_v3 = vadd.f32 %v1301_v52, %v7368_v22  ;;  %v1190_v63 = vpop.f32.mrf.mxu0  ;;  %v5178_v6 = vld [vmem:[#allocation6 + $0x3c8] ss:$16 sps:$4 sm:$0xff]   ;;  %v1575_v16 = vmax.f32 %v1447_v23, 0.0  ;;  %v1303_v53 = vpop.f32.mrf.mxu1  ;;  %v5186_v58 = vld [vmem:[#allocation6 + $0x3ac] ss:$16 sps:$4 sm:$0xff]  }
 0x1dc   :  { %v1457_v31 = vadd.f32 %v6255_v4, %v1298_v49  ;;  %3822 = vmatpush2.bf16.msra.mxu1 %v5172_v9  ;;  %3710 = vmatprep.subr.bf16.mxu0 %v5177_v11  ;;  %v1583_v54 = vmax.f32 %v1455_v2, 0.0  ;;  %v7369_v55 = vld [vmem:[#allocation85_spill] sm:$0xff]  ;;  %v1577_v46 = vmax.f32 %v1449_v45, 0.0  ;;  %v6428_v32 = vpack.c.bf16 %v1582_v59, %v1574_v42  ;;  %v7371_v49 = vld [vmem:[#allocation86_spill] sm:$0xff]  ;;  %v7373_v22 = vld [vmem:[#allocation87_spill] sm:$0xff] }
 0x1dd   :  { %v1191_v40 = vadd.f32 %v1190_v63, %v7369_v55  ;;  %3823 = vmatprep.subr.bf16.mxu1 %v5180_v26  ;;  %v1304_v18 = vadd.f32 %v1303_v53, %v7371_v49  ;;  %v1192_v52 = vpop.f32.mrf.mxu0  ;;  %v6431_v9 = vpack.c.bf16 %v1584_v25, %v1576_v1  ;;  %v1462_v11 = vadd.f32 %v6128_v12, %v1189_v57  ;;  %v1305_v23 = vpop.f32.mrf.mxu1  ;;  %v5181_v63 = vld [vmem:[#allocation6 + $0x1a8] ss:$16 sps:$4 sm:$0xff]   ;;  %v5189_v25 = vld [vmem:[#allocation6 + $0x18c] ss:$16 sps:$4 sm:$0xff]  }
 0x1de   :  { %7370 = vst [vmem:[#allocation36_spill] sm:$0xff] %v6428_v32  ;;  %v1585_v29 = vmax.f32 %v1457_v31, 0.0  ;;  %v1193_v56 = vadd.f32 %v1192_v52, %v7373_v22  ;;  %v6435_v2 = vpack.c.bf16 %v1583_v54, %v1575_v16  ;;  %v1464_v26 = vadd.f32 %v6161_v8, %v1302_v3  ;;  %v7375_v45 = vld [vmem:[#allocation88_spill] sm:$0xff]  ;;  %v7377_v55 = vld [vmem:[#allocation89_spill] sm:$0xff]  ;;  %v7379_v52 = vld [vmem:[#allocation91_spill] sm:$0xff] }
 0x1df   :  { %7372 = vst [vmem:[#allocation37_spill] sm:$0xff] %v6431_v9  ;;  %3711 = vmatpush2.bf16.msra.mxu0 %v5175_v62  ;;  %v1306_v59 = vadd.f32 %v1305_v23, %v7375_v45  ;;  %v1194_v42 = vpop.f32.mrf.mxu0  ;;  %v5184_v53 = vld [vmem:[#allocation6 + $0x3a8] ss:$16 sps:$4 sm:$0xff]   ;;  %v1463_v57 = vadd.f32 %v6222_v7, %v1191_v40  ;;  %v1307_v54 = vpop.f32.mrf.mxu1  ;;  %v5192_v3 = vld [vmem:[#allocation6 + $0x38c] ss:$16 sps:$4 sm:$0xff]   ;;  %v1465_v16 = vadd.f32 %v6255_v4, %v1304_v18  ;;  %v1590_v18 = vmax.f32 %v1462_v11, 0.0 }
 0x1e0   :  { %7374 = vst [vmem:[#allocation38_spill] sm:$0xff] %v6435_v2  ;;  %3824 = vmatpush2.bf16.msra.mxu1 %v5178_v6  ;;  %v6439_v31 = vpack.c.bf16 %v1585_v29, %v1577_v46  ;;  %3712 = vmatprep.subr.bf16.mxu0 %v5183_v13  ;;  %v1470_v1 = vadd.f32 %v6128_v12, %v1193_v56  ;;  %v7378_v46 = vld [vmem:[#allocation90_spill] sm:$0xff] }
 0x1e1   :  { %v1195_v62 = vadd.f32 %v1194_v42, %v7377_v55  ;;  %3548 = vmatprep.mubr.bf16.mxu0 %v6435_v2  ;;  %3825 = vmatprep.subr.bf16.mxu1 %v5186_v58  ;;  %v1472_v6 = vadd.f32 %v6161_v8, %v1306_v59  ;;  %v1308_v29 = vadd.f32 %v1307_v54, %v7378_v46  ;;  %v1198_v13 = vpop.f32.mrf.mxu0  ;;  %v1311_v56 = vpop.f32.mrf.mxu1  ;;  %v5187_v58 = vld [vmem:[#allocation6 + $0x188] ss:$16 sps:$4 sm:$0xff]   ;;  %v5195_v55 = vld [vmem:[#allocation6 + $0x16c] ss:$16 sps:$4 sm:$0xff]   ;;  %v1592_v54 = vmax.f32 %v1464_v26, 0.0 }
 0x1e2   :  { %7376 = vst [vmem:[#allocation39_spill] sm:$0xff] %v6439_v31  ;;  %3661 = vmatprep.mubr.bf16.mxu1 %v6439_v31  ;;  %3549 = vmatmul.mubr.bf16.gmra.mxu0 %v6428_v32  ;;  %v1598_v40 = vmax.f32 %v1470_v1, 0.0  ;;  %v1199_v22 = vadd.f32 %v1198_v13, %v7379_v52  ;;  %v5190_v42 = vld [vmem:[#allocation6 + $0x388] ss:$16 sps:$4 sm:$0xff]   ;;  %v1591_v1 = vmax.f32 %v1463_v57, 0.0 }
 0x1e3   :  { %v1471_v49 = vadd.f32 %v6222_v7, %v1195_v62  ;;  %3662 = vmatmul.mubr.bf16.gmra.mxu1 %v6431_v9  ;;  %3713 = vmatpush2.bf16.msra.mxu0 %v5181_v63  ;;  %v1600_v23 = vmax.f32 %v1472_v6, 0.0  ;;  %v1473_v45 = vadd.f32 %v6255_v4, %v1308_v29  ;;  %v1200_v59 = vpop.f32.mrf.mxu0  ;;  %v7380_v62 = vld [vmem:[#allocation93_spill] sm:$0xff]  ;;  %v1313_v13 = vpop.f32.mrf.mxu1  ;;  %v1593_v9 = vmax.f32 %v1465_v16, 0.0  ;;  %v7381_v31 = vld [vmem:[#allocation92_spill] sm:$0xff]  ;;  %v7382_v6 = vld [vmem:[#allocation95_spill] sm:$0xff] }
 0x1e4   :  { %3826 = vmatpush2.bf16.msra.mxu1 %v5184_v53  ;;  %3714 = vmatprep.subr.bf16.mxu0 %v5189_v25  ;;  %v1201_v32 = vadd.f32 %v1200_v59, %v7380_v62  ;;  %v5198_v52 = vld [vmem:[#allocation6 + $0x36c] ss:$16 sps:$4 sm:$0xff]   ;;  %v1312_v11 = vadd.f32 %v1311_v56, %v7381_v31  ;;  %v1314_v2 = vadd.f32 %v1313_v13, %v7382_v6  ;;  %v5193_v59 = vld [vmem:[#allocation6 + $0x168] ss:$16 sps:$4 sm:$0xff]  }
 0x1e5   :  { %v1599_v46 = vmax.f32 %v1471_v49, 0.0  ;;  %3827 = vmatprep.subr.bf16.mxu1 %v5192_v3  ;;  %v1601_v63 = vmax.f32 %v1473_v45, 0.0  ;;  %v1202_v29 = vpop.f32.mrf.mxu0  ;;  %v6457_v53 = vpack.c.bf16 %v1598_v40, %v1590_v18  ;;  %v1478_v25 = vadd.f32 %v6128_v12, %v1199_v22  ;;  %v1315_v57 = vpop.f32.mrf.mxu1  ;;  %v7384_v16 = vld [vmem:[#allocation97_spill] sm:$0xff]  ;;  %v7385_v62 = vld [vmem:[#allocation98_spill] sm:$0xff] }
 0x1e6   :  { %v1203_v26 = vadd.f32 %v1202_v29, %v7383_v0  ;;  %v6463_v3 = vpack.c.bf16 %v1600_v23, %v1592_v54  ;;  %v1316_v45 = vadd.f32 %v1315_v57, %v7384_v16  ;;  %v5196_v40 = vld [vmem:[#allocation6 + $0x368] ss:$16 sps:$4 sm:$0xff]   ;;  %v5201_v18 = vld [vmem:[#allocation6 + $0x14c] ss:$16 sps:$4 sm:$0xff]   ;;  %v1479_v22 = vadd.f32 %v6222_v7, %v1201_v32 }
 0x1e7   :  { %3715 = vmatpush2.bf16.msra.mxu0 %v5187_v58  ;;  %v6461_v49 = vpack.c.bf16 %v1599_v46, %v1591_v1  ;;  %v1204_v31 = vpop.f32.mrf.mxu0  ;;  %v6466_v56 = vpack.c.bf16 %v1601_v63, %v1593_v9  ;;  %v1317_v1 = vpop.f32.mrf.mxu1  ;;  %v5204_v23 = vld [vmem:[#allocation6 + $0x34c] ss:$16 sps:$4 sm:$0xff]   ;;  %v1481_v54 = vadd.f32 %v6255_v4, %v1314_v2  ;;  %v7386_v9 = vld [vmem:[#allocation100_spill] sm:$0xff]  ;;  %v1480_v32 = vadd.f32 %v6161_v8, %v1312_v11 }
 0x1e8   :  { %3828 = vmatpush2.bf16.msra.mxu1 %v5190_v42  ;;  %3716 = vmatprep.subr.bf16.mxu0 %v5195_v55  ;;  %v1486_v0 = vadd.f32 %v6128_v12, %v1203_v26  ;;  %v1205_v58 = vadd.f32 %v1204_v31, %v7385_v62  ;;  %v1488_v42 = vadd.f32 %v6161_v8, %v1316_v45  ;;  %v5199_v55 = vld [vmem:[#allocation6 + $0x148] ss:$16 sps:$4 sm:$0xff]   ;;  %v5207_v63 = vld [vmem:[#allocation6 + $0x12c] ss:$16 sps:$4 sm:$0xff]   ;;  %v1607_v6 = vmax.f32 %v1479_v22, 0.0 }
 0x1e9   :  { %3558 = vmatprep.mubr.bf16.mxu0 %v6461_v49  ;;  %3829 = vmatprep.subr.bf16.mxu1 %v5198_v52  ;;  %v1318_v46 = vadd.f32 %v1317_v1, %v7386_v9  ;;  %v5202_v2 = vld [vmem:[#allocation6 + $0x348] ss:$16 sps:$4 sm:$0xff]   ;;  %v5210_v57 = vld [vmem:[#allocation6 + $0x32c] ss:$16 sps:$4 sm:$0xff]   ;;  %v1606_v16 = vmax.f32 %v1478_v25, 0.0  ;;  %v1609_v8 = vmax.f32 %v1481_v54, 0.0 }
 0x1ea   :  { %3671 = vmatprep.mubr.bf16.mxu1 %v6466_v56  ;;  %3559 = vmatmul.mubr.bf16.gmra.mxu0 %v6457_v53  ;;  %v1487_v12 = vadd.f32 %v6222_v7, %v1205_v58  ;;  %v1614_v13 = vmax.f32 %v1486_v0, 0.0  ;;  %v1616_v29 = vmax.f32 %v1488_v42, 0.0  ;;  %v1608_v7 = vmax.f32 %v1480_v32, 0.0  ;;  %v5213_v25 = vld [vmem:[#allocation6 + $0x10c] ss:$16 sps:$4 sm:$0xff]  }
 0x1eb   :  { %3672 = vmatmul.mubr.bf16.gmra.mxu1 %v6463_v3  ;;  %3717 = vmatpush2.bf16.msra.mxu0 %v5193_v59  ;;  %v1489_v52 = vadd.f32 %v6255_v4, %v1318_v46  ;;  %v5205_v59 = vld [vmem:[#allocation6 + $0x128] ss:$16 sps:$4 sm:$0xff]   ;;  %v5216_v22 = vld [vmem:[#allocation6 + $0x30c] ss:$16 sps:$4 sm:$0xff]  }
 0x1ec   :  { %3830 = vmatpush2.bf16.msra.mxu1 %v5196_v40  ;;  %3718 = vmatprep.subr.bf16.mxu0 %v5201_v18  ;;  %v1615_v26 = vmax.f32 %v1487_v12, 0.0  ;;  %v6483_v31 = vpack.c.bf16 %v1614_v13, %v1606_v16  ;;  %v5208_v40 = vld [vmem:[#allocation6 + $0x328] ss:$16 sps:$4 sm:$0xff]   ;;  %v6487_v18 = vpack.c.bf16 %v1616_v29, %v1608_v7  ;;  %v5219_v58 = vld [vmem:[#allocation6 + $0x4ec] ss:$16 sps:$4 sm:$0xff]  }
 0x1ed   :  { %3831 = vmatprep.subr.bf16.mxu1 %v5204_v23  ;;  %v1617_v11 = vmax.f32 %v1489_v52, 0.0  ;;  %v5211_v0 = vld [vmem:[#allocation6 + $0x108] ss:$16 sps:$4 sm:$0xff]   ;;  %v5222_v1 = vld [vmem:[#allocation6 + $0x6ec] ss:$16 sps:$4 sm:$0xff]  }
 0x1ee   :  { %v6481_v45 = vpack.c.bf16 %v1615_v26, %v1607_v6  ;;  %v5214_v62 = vld [vmem:[#allocation6 + $0x308] ss:$16 sps:$4 sm:$0xff]   ;;  %v5225_v42 = vld [vmem:[#allocation6 + $0x4cc] ss:$16 sps:$4 sm:$0xff]  }
 0x1ef   :  { %3719 = vmatpush2.bf16.msra.mxu0 %v5199_v55  ;;  %v6485_v4 = vpack.c.bf16 %v1617_v11, %v1609_v8  ;;  %v5217_v23 = vld [vmem:[#allocation6 + $0x4e8] ss:$16 sps:$4 sm:$0xff]   ;;  %v5228_v9 = vld [vmem:[#allocation6 + $0x6cc] ss:$16 sps:$4 sm:$0xff]  }
 0x1f0   :  { %3832 = vmatpush2.bf16.msra.mxu1 %v5202_v2  ;;  %3720 = vmatprep.subr.bf16.mxu0 %v5207_v63  ;;  %v5220_v54 = vld [vmem:[#allocation6 + $0x6e8] ss:$16 sps:$4 sm:$0xff]   ;;  %v5231_v46 = vld [vmem:[#allocation6 + $0x4ac] ss:$16 sps:$4 sm:$0xff]  }
 0x1f1   :  { %3568 = vmatprep.mubr.bf16.mxu0 %v6481_v45  ;;  %3833 = vmatprep.subr.bf16.mxu1 %v5210_v57  ;;  %v5234_v32 = vld [vmem:[#allocation6 + $0x6ac] ss:$16 sps:$4 sm:$0xff]   ;;  %v5229_v12 = vld [vmem:[#allocation6 + $0x4a8] ss:$16 sps:$4 sm:$0xff]  }
 0x1f2   :  { %3681 = vmatprep.mubr.bf16.mxu1 %v6485_v4  ;;  %3569 = vmatmul.mubr.bf16.gmra.mxu0 %v6483_v31  ;;  %v5237_v55 = vld [vmem:[#allocation6 + $0x48c] ss:$16 sps:$4 sm:$0xff]   ;;  %v5241_v2 = vld [vmem:[#allocation6 + $0x468] ss:$16 sps:$4 sm:$0xff]  }
 0x1f3   :  { %3682 = vmatmul.mubr.bf16.gmra.mxu1 %v6487_v18  ;;  %3721 = vmatpush2.bf16.msra.mxu0 %v5205_v59  ;;  %v5243_v13 = vld [vmem:[#allocation6 + $0x46c] ss:$16 sps:$4 sm:$0xff]   ;;  %v5253_v26 = vld [vmem:[#allocation6 + $0x428] ss:$16 sps:$4 sm:$0xff]  }
 0x1f4   :  { %3724 = vmatprep.mubr.bf16.mxu0 %v6048_v39  ;;  %3834 = vmatpush2.bf16.msra.mxu1 %v5208_v40  ;;  %v5223_v39 = vld [vmem:[#allocation6 + $0x4c8] ss:$16 sps:$4 sm:$0xff]   ;;  %v5246_v52 = vld [vmem:[#allocation6 + $0x66c] ss:$16 sps:$4 sm:$0xff]  }
 0x1f5   :  { %3837 = vmatprep.mubr.bf16.mxu1 %v6054_v19  ;;  %3722 = vmatprep.subr.bf16.mxu0 %v5213_v25  ;;  %v5226_v19 = vld [vmem:[#allocation6 + $0x6c8] ss:$16 sps:$4 sm:$0xff]   ;;  %v5249_v63 = vld [vmem:[#allocation6 + $0x44c] ss:$16 sps:$4 sm:$0xff]  }
 0x1f6   :  { %3835 = vmatprep.subr.bf16.mxu1 %v5216_v22  ;;  %v5255_v6 = vld [vmem:[#allocation6 + $0x42c] ss:$16 sps:$4 sm:$0xff]   ;;  %v5265_v11 = vld [vmem:[#allocation6 + $0x5e8] ss:$16 sps:$4 sm:$0xff]  }
 0x1f7   :  { %3723 = vmatpush2.bf16.msra.mxu0 %v5211_v0  ;;  %v5258_v29 = vld [vmem:[#allocation6 + $0x62c] ss:$16 sps:$4 sm:$0xff]   ;;  %v5277_v25 = vld [vmem:[#allocation6 + $0x5a8] ss:$16 sps:$4 sm:$0xff]  }
 0x1f8   :  { %3836 = vmatpush2.bf16.msra.mxu1 %v5214_v62  ;;  %3918 = vmatprep.subr.bf16.mxu0 %v5219_v58  ;;  %v5261_v57 = vld [vmem:[#allocation6 + $0x40c] ss:$16 sps:$4 sm:$0xff]   ;;  %v5289_v58 = vld [vmem:[#allocation6 + $0x568] ss:$16 sps:$4 sm:$0xff]  }
 0x1f9   :  { %4031 = vmatprep.subr.bf16.mxu1 %v5222_v1  ;;  %v5267_v16 = vld [vmem:[#allocation6 + $0x5ec] ss:$16 sps:$4 sm:$0xff]  }
 0x1fa   :  { %3725 = vmatmul.mubr.bf16.vlgmr.msra.gmra.mxu0 %v6045_v27  ;;  %v5232_v27 = vld [vmem:[#allocation6 + $0x6a8] ss:$16 sps:$4 sm:$0xff]   ;;  %v5270_v8 = vld [vmem:[#allocation6 + $0x7ec] ss:$16 sps:$4 sm:$0xff]  }
 0x1fb   :  { %3838 = vmatmul.mubr.bf16.vlgmr.msra.gmra.mxu1 %v6050_v14  ;;  %3734 = vmatprep.mubr.bf16.mxu0 %v6079_v61  ;;  %v5240_v14 = vld [vmem:[#allocation6 + $0x68c] ss:$16 sps:$4 sm:$0xff]   ;;  %v5235_v61 = vld [vmem:[#allocation6 + $0x488] ss:$16 sps:$4 sm:$0xff]  }
 0x1fc   :  { %3847 = vmatprep.mubr.bf16.mxu1 %v6083_v34  ;;  %3919 = vmatpush1.bf16.msra.mxu0 %v5217_v23  ;;  %v5238_v34 = vld [vmem:[#allocation6 + $0x688] ss:$16 sps:$4 sm:$0xff]   ;;  %v5273_v7 = vld [vmem:[#allocation6 + $0x5cc] ss:$16 sps:$4 sm:$0xff]  }
 0x1fd   :  { %4032 = vmatpush1.bf16.msra.mxu1 %v5220_v54  ;;  %3920 = vmatprep.subr.bf16.mxu0 %v5225_v42  ;;  %v5279_v59 = vld [vmem:[#allocation6 + $0x5ac] ss:$16 sps:$4 sm:$0xff]   ;;  %v5295_v23 = vld [vmem:[#allocation6 + $0x548] ss:$16 sps:$4 sm:$0xff]  }
 0x1fe   :  { %4033 = vmatprep.subr.bf16.mxu1 %v5228_v9  ;;  %v5282_v40 = vld [vmem:[#allocation6 + $0x7ac] ss:$16 sps:$4 sm:$0xff]   ;;  %v5298_v54 = vld [vmem:[#allocation6 + $0x748] ss:$16 sps:$4 sm:$0xff]  }
 0x1ff   :  { %v5285_v22 = vld [vmem:[#allocation6 + $0x58c] ss:$16 sps:$4 sm:$0xff]  }
 0x200   :  { %3921 = vmatpush1.bf16.msra.mxu0 %v5223_v39  ;;  %v5291_v0 = vld [vmem:[#allocation6 + $0x56c] ss:$16 sps:$4 sm:$0xff]   ;;  %v5301_v39 = vld [vmem:[#allocation6 + $0x528] ss:$16 sps:$4 sm:$0xff]  }
 0x201   :  { %4034 = vmatpush1.bf16.msra.mxu1 %v5226_v19  ;;  %3922 = vmatprep.subr.bf16.mxu0 %v5231_v46  ;;  %v5294_v62 = vld [vmem:[#allocation6 + $0x76c] ss:$16 sps:$4 sm:$0xff]   ;;  %v7389_v46 = vld [vmem:[#allocation12_spill] sm:$0xff] }
 0x202   :  { %3735 = vmatmul.mubr.bf16.gmra.mxu0 %v6072_v41  ;;  %4035 = vmatprep.subr.bf16.mxu1 %v5234_v32  ;;  %v5244_v41 = vld [vmem:[#allocation6 + $0x668] ss:$16 sps:$4 sm:$0xff]   ;;  %v5297_v1 = vld [vmem:[#allocation6 + $0x54c] ss:$16 sps:$4 sm:$0xff]  }
 0x203   :  { %3848 = vmatmul.mubr.bf16.gmra.mxu1 %v6075_v33  ;;  %3744 = vmatprep.mubr.bf16.mxu0 %v6108_v20  ;;  %v5252_v33 = vld [vmem:[#allocation6 + $0x64c] ss:$16 sps:$4 sm:$0xff]   ;;  %v5247_v20 = vld [vmem:[#allocation6 + $0x448] ss:$16 sps:$4 sm:$0xff]  }
 0x204   :  { %3857 = vmatprep.mubr.bf16.mxu1 %v6112_v36  ;;  %3923 = vmatpush1.bf16.msra.mxu0 %v5229_v12  ;;  %v5250_v36 = vld [vmem:[#allocation6 + $0x648] ss:$16 sps:$4 sm:$0xff]   ;;  %v5303_v42 = vld [vmem:[#allocation6 + $0x52c] ss:$16 sps:$4 sm:$0xff]  }
 0x205   :  { %4036 = vmatpush1.bf16.msra.mxu1 %v5232_v27  ;;  %3924 = vmatprep.subr.bf16.mxu0 %v5237_v55  ;;  %v5306_v9 = vld [vmem:[#allocation6 + $0x72c] ss:$16 sps:$4 sm:$0xff]   ;;  %v7391_v12 = vld [vmem:[#allocation18_spill] sm:$0xff] }
 0x206   :  { %4037 = vmatprep.subr.bf16.mxu1 %v5240_v14  ;;  %v5309_v19 = vld [vmem:[#allocation6 + $0x50c] ss:$16 sps:$4 sm:$0xff]   ;;  %v5307_v55 = vld [vmem:[#allocation6 + $0x508] ss:$16 sps:$4 sm:$0xff]   ;;  %v6530_v14 = vld [vmem:[%s7136_s6] sm:$0xf] }
 0x207   :  { %v7390_v32 = vld [vmem:[#allocation13_spill] sm:$0xff]  ;;  %v7392_v27 = vld [vmem:[#allocation19_spill] sm:$0xff] }
 0x208   :  { %3925 = vmatpush1.bf16.msra.mxu0 %v5235_v61  ;;  %v5310_v61 = vld [vmem:[#allocation6 + $0x708] ss:$16 sps:$4 sm:$0xff]  }
 0x209   :  { %4038 = vmatpush1.bf16.msra.mxu1 %v5238_v34  ;;  %3926 = vmatprep.subr.bf16.mxu0 %v5243_v13  ;;  %v7393_v34 = vld [vmem:[#allocation99_spill] sm:$0xff] }
 0x20a   :  { %3745 = vmatmul.mubr.bf16.gmra.mxu0 %v6101_v44  ;;  %4039 = vmatprep.subr.bf16.mxu1 %v5246_v52  ;;  %v5256_v44 = vld [vmem:[#allocation6 + $0x628] ss:$16 sps:$4 sm:$0xff]   ;;  %v6534_v13 = vrot.slane %v6530_v14, %v7393_v34 }
 0x20b   :  { %3858 = vmatmul.mubr.bf16.gmra.mxu1 %v6104_v60  ;;  %3754 = vmatprep.mubr.bf16.mxu0 %v6140_v28  ;;  %v5264_v60 = vld [vmem:[#allocation6 + $0x60c] ss:$16 sps:$4 sm:$0xff]   ;;  %v5259_v28 = vld [vmem:[#allocation6 + $0x408] ss:$16 sps:$4 sm:$0xff]  }
 0x20c   :  { %3867 = vmatprep.mubr.bf16.mxu1 %v6144_v48  ;;  %3927 = vmatpush1.bf16.msra.mxu0 %v5241_v2  ;;  %v5262_v48 = vld [vmem:[#allocation6 + $0x608] ss:$16 sps:$4 sm:$0xff]  }
 0x20d   :  { %4040 = vmatpush1.bf16.msra.mxu1 %v5244_v41  ;;  %3928 = vmatprep.subr.bf16.mxu0 %v5249_v63  ;;  %v7394_v52 = vld [vmem:[#allocation101_spill] sm:$0xff] }
 0x20e   :  { %4041 = vmatprep.subr.bf16.mxu1 %v5252_v33  ;;  %v6538_v2 = vrot.slane %v6530_v14, %v7394_v52 }
 0x210   :  { %3929 = vmatpush1.bf16.msra.mxu0 %v5247_v20  ;;  %v7395_v20 = vld [vmem:[#allocation16_spill] sm:$0xff] }
 0x211   :  { %4042 = vmatpush1.bf16.msra.mxu1 %v5250_v36  ;;  %3930 = vmatprep.subr.bf16.mxu0 %v5255_v6  ;;  %v7396_v36 = vld [vmem:[#allocation17_spill] sm:$0xff]  ;;  %v7397_v6 = vld [vmem:[#allocation22_spill] sm:$0xff] }
 0x212   :  { %3755 = vmatmul.mubr.bf16.gmra.mxu0 %v6133_v17  ;;  %4043 = vmatprep.subr.bf16.mxu1 %v5258_v29  ;;  %v5268_v17 = vld [vmem:[#allocation6 + $0x7e8] ss:$16 sps:$4 sm:$0xff]  }
 0x213   :  { %3868 = vmatmul.mubr.bf16.gmra.mxu1 %v6136_v37  ;;  %3764 = vmatprep.mubr.bf16.mxu0 %v6173_v24  ;;  %v5276_v37 = vld [vmem:[#allocation6 + $0x7cc] ss:$16 sps:$4 sm:$0xff]   ;;  %v5271_v24 = vld [vmem:[#allocation6 + $0x5c8] ss:$16 sps:$4 sm:$0xff]  }
 0x214   :  { %3877 = vmatprep.mubr.bf16.mxu1 %v6177_v5  ;;  %3931 = vmatpush1.bf16.msra.mxu0 %v5253_v26  ;;  %v5274_v5 = vld [vmem:[#allocation6 + $0x7c8] ss:$16 sps:$4 sm:$0xff]  }
 0x215   :  { %4044 = vmatpush1.bf16.msra.mxu1 %v5256_v44  ;;  %3932 = vmatprep.subr.bf16.mxu0 %v5261_v57  ;;  %v7398_v44 = vld [vmem:[#allocation23_spill] sm:$0xff] }
 0x216   :  { %4045 = vmatprep.subr.bf16.mxu1 %v5264_v60 }
 0x218   :  { %3933 = vmatpush1.bf16.msra.mxu0 %v5259_v28 }
 0x219   :  { %4046 = vmatpush1.bf16.msra.mxu1 %v5262_v48  ;;  %3934 = vmatprep.subr.bf16.mxu0 %v5267_v16 }
 0x21a   :  { %3765 = vmatmul.mubr.bf16.gmra.mxu0 %v6166_v38  ;;  %4047 = vmatprep.subr.bf16.mxu1 %v5270_v8  ;;  %v5280_v38 = vld [vmem:[#allocation6 + $0x7a8] ss:$16 sps:$4 sm:$0xff]  }
 0x21b   :  { %3878 = vmatmul.mubr.bf16.gmra.mxu1 %v6169_v21  ;;  %3774 = vmatprep.mubr.bf16.mxu0 %v6202_v35  ;;  %v5288_v21 = vld [vmem:[#allocation6 + $0x78c] ss:$16 sps:$4 sm:$0xff]   ;;  %v5283_v35 = vld [vmem:[#allocation6 + $0x588] ss:$16 sps:$4 sm:$0xff]  }
 0x21c   :  { %3887 = vmatprep.mubr.bf16.mxu1 %v6206_v10  ;;  %3935 = vmatpush2.bf16.msra.mxu0 %v5265_v11  ;;  %v5286_v10 = vld [vmem:[#allocation6 + $0x788] ss:$16 sps:$4 sm:$0xff]  }
 0x21d   :  { %4048 = vmatpush2.bf16.msra.mxu1 %v5268_v17  ;;  %3936 = vmatprep.subr.bf16.mxu0 %v5273_v7 }
 0x21e   :  { %4049 = vmatprep.subr.bf16.mxu1 %v5276_v37 }
 0x220   :  { %3937 = vmatpush2.bf16.msra.mxu0 %v5271_v24 }
 0x221   :  { %4050 = vmatpush2.bf16.msra.mxu1 %v5274_v5  ;;  %3938 = vmatprep.subr.bf16.mxu0 %v5279_v59 }
 0x222   :  { %3775 = vmatmul.mubr.bf16.gmra.mxu0 %v6195_v43  ;;  %4051 = vmatprep.subr.bf16.mxu1 %v5282_v40  ;;  %v5292_v43 = vld [vmem:[#allocation6 + $0x768] ss:$16 sps:$4 sm:$0xff]  }
 0x223   :  { %3888 = vmatmul.mubr.bf16.gmra.mxu1 %v6198_v15  ;;  %3784 = vmatprep.mubr.bf16.mxu0 %v6234_v51  ;;  %v5300_v15 = vld [vmem:[#allocation6 + $0x74c] ss:$16 sps:$4 sm:$0xff]   ;;  %v7387_v51 = vld [vmem:[#allocation14_spill] sm:$0xff] }
 0x224   :  { %3897 = vmatprep.mubr.bf16.mxu1 %v6238_v30  ;;  %3939 = vmatpush2.bf16.msra.mxu0 %v5277_v25  ;;  %v7388_v30 = vld [vmem:[#allocation15_spill] sm:$0xff]  ;;  %v7399_v25 = vld [vmem:[#allocation20_spill] sm:$0xff] }
 0x225   :  { %4052 = vmatpush2.bf16.msra.mxu1 %v5280_v38  ;;  %3940 = vmatprep.subr.bf16.mxu0 %v5285_v22  ;;  %v7400_v38 = vld [vmem:[#allocation21_spill] sm:$0xff]  ;;  %v7401_v22 = vld [vmem:[#allocation26_spill] sm:$0xff] }
 0x226   :  { %4053 = vmatprep.subr.bf16.mxu1 %v5288_v21 }
 0x228   :  { %3941 = vmatpush2.bf16.msra.mxu0 %v5283_v35 }
 0x229   :  { %4054 = vmatpush2.bf16.msra.mxu1 %v5286_v10  ;;  %3942 = vmatprep.subr.bf16.mxu0 %v5291_v0  ;;  %v7402_v10 = vld [vmem:[#allocation27_spill] sm:$0xff] }
 0x22a   :  { %3785 = vmatmul.mubr.bf16.gmra.mxu0 %v6227_v47  ;;  %4055 = vmatprep.subr.bf16.mxu1 %v5294_v62  ;;  %v5304_v47 = vld [vmem:[#allocation6 + $0x728] ss:$16 sps:$4 sm:$0xff]  }
 0x22b   :  { %3898 = vmatmul.mubr.bf16.gmra.mxu1 %v6230_v50  ;;  %3794 = vmatprep.mubr.bf16.mxu0 %v7387_v51  ;;  %v5312_v50 = vld [vmem:[#allocation6 + $0x70c] ss:$16 sps:$4 sm:$0xff]  }
 0x22c   :  { %3907 = vmatprep.mubr.bf16.mxu1 %v7388_v30  ;;  %3943 = vmatpush2.bf16.msra.mxu0 %v5289_v58 }
 0x22d   :  { %4056 = vmatpush2.bf16.msra.mxu1 %v5292_v43  ;;  %3944 = vmatprep.subr.bf16.mxu0 %v5297_v1 }
 0x22e   :  { %4057 = vmatprep.subr.bf16.mxu1 %v5300_v15 }
 0x230   :  { %3945 = vmatpush2.bf16.msra.mxu0 %v5295_v23 }
 0x231   :  { %4058 = vmatpush2.bf16.msra.mxu1 %v5298_v54  ;;  %3946 = vmatprep.subr.bf16.mxu0 %v5303_v42 }
 0x232   :  { %3795 = vmatmul.mubr.bf16.gmra.mxu0 %v7389_v46  ;;  %4059 = vmatprep.subr.bf16.mxu1 %v5306_v9  ;;  %v7404_v46 = vld [vmem:[#allocation25_spill] sm:$0xff] }
 0x233   :  { %3908 = vmatmul.mubr.bf16.gmra.mxu1 %v7390_v32  ;;  %3950 = vmatprep.mubr.bf16.mxu0 %v7391_v12 }
 0x234   :  { %3947 = vmatpush2.bf16.msra.mxu0 %v5301_v39  ;;  %4063 = vmatprep.mubr.bf16.mxu1 %v7392_v27  ;;  %v7406_v27 = vld [vmem:[#allocation31_spill] sm:$0xff] }
 0x235   :  { %4060 = vmatpush2.bf16.msra.mxu1 %v5304_v47  ;;  %3948 = vmatprep.subr.bf16.mxu0 %v5309_v19  ;;  %v7403_v19 = vld [vmem:[#allocation24_spill] sm:$0xff] }
 0x236   :  { %4061 = vmatprep.subr.bf16.mxu1 %v5312_v50  ;;  %v7405_v50 = vld [vmem:[#allocation30_spill] sm:$0xff] }
 0x238   :  { %3949 = vmatpush2.bf16.msra.mxu0 %v5307_v55 }
 0x239   :  { %4062 = vmatpush2.bf16.msra.mxu1 %v5310_v61  ;;  %v3274_v41 = vpop.f32.mrf.mxu0 }
 0x23a   :  { %v3275_v63 = vadd.f32 %v3274_v41, %v6534_v13  ;;  %v3387_v33 = vpop.f32.mrf.mxu1 }
 0x23b   :  { %3951 = vmatmul.mubr.bf16.vlgmr.msra.gmra.mxu0 %v7395_v20  ;;  %v3276_v29 = vpop.f32.mrf.mxu0 }
 0x23c   :  { %4064 = vmatmul.mubr.bf16.vlgmr.msra.gmra.mxu1 %v7396_v36  ;;  %3960 = vmatprep.mubr.bf16.mxu0 %v7397_v6  ;;  %v6544_v26 = vadd.f32 %v3387_v33, %v3275_v63  ;;  %v3277_v57 = vadd.f32 %v3276_v29, %v6538_v2  ;;  %v3389_v60 = vpop.f32.mrf.mxu1 }
 0x23d   :  { %4073 = vmatprep.mubr.bf16.mxu1 %v7398_v44  ;;  %v3278_v28 = vpop.f32.mrf.mxu0 }
 0x23e   :  { %v6548_v48 = vadd.f32 %v3389_v60, %v3277_v57  ;;  %v3279_v16 = vadd.f32 %v3278_v28, %v6534_v13  ;;  %v3391_v8 = vpop.f32.mrf.mxu1 }
 0x23f   :  { %v3280_v11 = vpop.f32.mrf.mxu0 }
 0x240   :  { %v6551_v17 = vadd.f32 %v3391_v8, %v3279_v16  ;;  %v3281_v7 = vadd.f32 %v3280_v11, %v6538_v2  ;;  %v3393_v37 = vpop.f32.mrf.mxu1  ;;  %v7407_v8 = vld [vmem:[#allocation28_spill] sm:$0xff]  ;;  %v7408_v11 = vld [vmem:[#allocation29_spill] sm:$0xff] }
 0x241   :  { %v3284_v24 = vpop.f32.mrf.mxu0 }
 0x242   :  { %v6554_v5 = vadd.f32 %v3393_v37, %v3281_v7  ;;  %v3285_v59 = vadd.f32 %v3284_v24, %v6534_v13  ;;  %v3397_v40 = vpop.f32.mrf.mxu1  ;;  %v7409_v7 = vld [vmem:[#allocation34_spill] sm:$0xff] }
 0x243   :  { %3961 = vmatmul.mubr.bf16.gmra.mxu0 %v7399_v25  ;;  %v3286_v21 = vpop.f32.mrf.mxu0 }
 0x244   :  { %4074 = vmatmul.mubr.bf16.gmra.mxu1 %v7400_v38  ;;  %3970 = vmatprep.mubr.bf16.mxu0 %v7401_v22  ;;  %v6560_v35 = vadd.f32 %v3397_v40, %v3285_v59  ;;  %v3287_v0 = vadd.f32 %v3286_v21, %v6538_v2  ;;  %v3399_v62 = vpop.f32.mrf.mxu1  ;;  %v7410_v59 = vld [vmem:[#allocation35_spill] sm:$0xff] }
 0x245   :  { %4083 = vmatprep.mubr.bf16.mxu1 %v7402_v10  ;;  %v3288_v58 = vpop.f32.mrf.mxu0 }
 0x246   :  { %v6564_v43 = vadd.f32 %v3399_v62, %v3287_v0  ;;  %v3289_v1 = vadd.f32 %v3288_v58, %v6534_v13  ;;  %v3401_v15 = vpop.f32.mrf.mxu1 }
 0x247   :  { %v3290_v51 = vpop.f32.mrf.mxu0 }
 0x248   :  { %v6567_v30 = vadd.f32 %v3401_v15, %v3289_v1  ;;  %v3291_v23 = vadd.f32 %v3290_v51, %v6538_v2  ;;  %v3403_v54 = vpop.f32.mrf.mxu1 }
 0x249   :  { %v3294_v42 = vpop.f32.mrf.mxu0 }
 0x24a   :  { %v6570_v9 = vadd.f32 %v3403_v54, %v3291_v23  ;;  %v3295_v39 = vadd.f32 %v3294_v42, %v6534_v13  ;;  %v3407_v47 = vpop.f32.mrf.mxu1  ;;  %v7411_v42 = vld [vmem:[#allocation32_spill] sm:$0xff] }
 0x24b   :  { %3971 = vmatmul.mubr.bf16.gmra.mxu0 %v7403_v19  ;;  %v3296_v32 = vpop.f32.mrf.mxu0 }
 0x24c   :  { %4084 = vmatmul.mubr.bf16.gmra.mxu1 %v7404_v46  ;;  %3980 = vmatprep.mubr.bf16.mxu0 %v7405_v50  ;;  %v6576_v12 = vadd.f32 %v3407_v47, %v3295_v39  ;;  %v3297_v55 = vadd.f32 %v3296_v32, %v6538_v2  ;;  %v3409_v61 = vpop.f32.mrf.mxu1  ;;  %v7412_v39 = vld [vmem:[#allocation33_spill] sm:$0xff]  ;;  %v7413_v47 = vld [vmem:[#allocation38_spill] sm:$0xff]  ;;  %v7414_v50 = vld [vmem:[#allocation39_spill] sm:$0xff] }
 0x24d   :  { %4093 = vmatprep.mubr.bf16.mxu1 %v7406_v27  ;;  %v3298_v41 = vpop.f32.mrf.mxu0 }
 0x24e   :  { %v6580_v63 = vadd.f32 %v3409_v61, %v3297_v55  ;;  %v3299_v33 = vadd.f32 %v3298_v41, %v6534_v13  ;;  %v3411_v20 = vpop.f32.mrf.mxu1 }
 0x24f   :  { %v3300_v36 = vpop.f32.mrf.mxu0 }
 0x250   :  { %v6583_v6 = vadd.f32 %v3411_v20, %v3299_v33  ;;  %v3301_v29 = vadd.f32 %v3300_v36, %v6538_v2  ;;  %v3413_v44 = vpop.f32.mrf.mxu1 }
 0x251   :  { %v3304_v57 = vpop.f32.mrf.mxu0 }
 0x252   :  { %v6586_v60 = vadd.f32 %v3413_v44, %v3301_v29  ;;  %v3305_v28 = vadd.f32 %v3304_v57, %v6534_v13  ;;  %v3417_v16 = vpop.f32.mrf.mxu1 }
 0x253   :  { %3981 = vmatmul.mubr.bf16.gmra.mxu0 %v7407_v8  ;;  %v3306_v37 = vpop.f32.mrf.mxu0 }
 0x254   :  { %4094 = vmatmul.mubr.bf16.gmra.mxu1 %v7408_v11  ;;  %3990 = vmatprep.mubr.bf16.mxu0 %v7409_v7  ;;  %v6592_v24 = vadd.f32 %v3417_v16, %v3305_v28  ;;  %v3307_v40 = vadd.f32 %v3306_v37, %v6538_v2  ;;  %v3419_v25 = vpop.f32.mrf.mxu1  ;;  %v7415_v11 = vld [vmem:[#allocation36_spill] sm:$0xff]  ;;  %v7416_v7 = vld [vmem:[#allocation37_spill] sm:$0xff] }
 0x255   :  { %4103 = vmatprep.mubr.bf16.mxu1 %v7410_v59  ;;  %v3308_v38 = vpop.f32.mrf.mxu0 }
 0x256   :  { %v6596_v22 = vadd.f32 %v3419_v25, %v3307_v40  ;;  %v3309_v21 = vadd.f32 %v3308_v38, %v6534_v13  ;;  %v3421_v10 = vpop.f32.mrf.mxu1 }
 0x257   :  { %v3310_v0 = vpop.f32.mrf.mxu0 }
 0x258   :  { %v6599_v62 = vadd.f32 %v3421_v10, %v3309_v21  ;;  %v3311_v58 = vadd.f32 %v3310_v0, %v6538_v2  ;;  %v3423_v1 = vpop.f32.mrf.mxu1 }
 0x259   :  { %v3314_v15 = vpop.f32.mrf.mxu0 }
 0x25a   :  { %v6602_v51 = vadd.f32 %v3423_v1, %v3311_v58  ;;  %v3315_v23 = vadd.f32 %v3314_v15, %v6534_v13  ;;  %v3427_v54 = vpop.f32.mrf.mxu1 }
 0x25b   :  { %3991 = vmatmul.mubr.bf16.gmra.mxu0 %v7411_v42  ;;  %v3316_v19 = vpop.f32.mrf.mxu0 }
 0x25c   :  { %4104 = vmatmul.mubr.bf16.gmra.mxu1 %v7412_v39  ;;  %4000 = vmatprep.mubr.bf16.mxu0 %v7413_v47  ;;  %v6608_v46 = vadd.f32 %v3427_v54, %v3315_v23  ;;  %v3317_v32 = vadd.f32 %v3316_v19, %v6538_v2  ;;  %v3429_v27 = vpop.f32.mrf.mxu1 }
 0x25d   :  { %4113 = vmatprep.mubr.bf16.mxu1 %v7414_v50  ;;  %v3318_v55 = vpop.f32.mrf.mxu0 }
 0x25e   :  { %v6612_v61 = vadd.f32 %v3429_v27, %v3317_v32  ;;  %v3319_v41 = vadd.f32 %v3318_v55, %v6534_v13  ;;  %v3431_v33 = vpop.f32.mrf.mxu1 }
 0x25f   :  { %v3320_v20 = vpop.f32.mrf.mxu0 }
 0x260   :  { %v6615_v36 = vadd.f32 %v3431_v33, %v3319_v41  ;;  %v3321_v29 = vadd.f32 %v3320_v20, %v6538_v2  ;;  %v3433_v44 = vpop.f32.mrf.mxu1 }
 0x261   :  { %v3324_v57 = vpop.f32.mrf.mxu0 }
 0x262   :  { %v6618_v28 = vadd.f32 %v3433_v44, %v3321_v29  ;;  %v3325_v16 = vadd.f32 %v3324_v57, %v6534_v13  ;;  %v3437_v8 = vpop.f32.mrf.mxu1 }
 0x263   :  { %4001 = vmatmul.mubr.bf16.gmra.mxu0 %v7415_v11  ;;  %v3326_v37 = vpop.f32.mrf.mxu0 }
 0x264   :  { %4114 = vmatmul.mubr.bf16.gmra.mxu1 %v7416_v7  ;;  %4010 = vmatprep.mubr.bf16.mxu0 %v6461_v49  ;;  %v6624_v59 = vadd.f32 %v3437_v8, %v3325_v16  ;;  %v3327_v40 = vadd.f32 %v3326_v37, %v6538_v2  ;;  %v3439_v25 = vpop.f32.mrf.mxu1 }
 0x265   :  { %4123 = vmatprep.mubr.bf16.mxu1 %v6466_v56  ;;  %v3328_v38 = vpop.f32.mrf.mxu0 }
 0x266   :  { %v6628_v21 = vadd.f32 %v3439_v25, %v3327_v40  ;;  %v3329_v10 = vadd.f32 %v3328_v38, %v6534_v13  ;;  %v3441_v0 = vpop.f32.mrf.mxu1 }
 0x267   :  { %v3330_v58 = vpop.f32.mrf.mxu0 }
 0x268   :  { %v6631_v1 = vadd.f32 %v3441_v0, %v3329_v10  ;;  %v3331_v15 = vadd.f32 %v3330_v58, %v6538_v2  ;;  %v3443_v49 = vpop.f32.mrf.mxu1 }
 0x269   :  { %v3334_v23 = vpop.f32.mrf.mxu0 }
 0x26a   :  { %v6634_v54 = vadd.f32 %v3443_v49, %v3331_v15  ;;  %v3335_v56 = vadd.f32 %v3334_v23, %v6534_v13  ;;  %v3447_v42 = vpop.f32.mrf.mxu1 }
 0x26b   :  { %4011 = vmatmul.mubr.bf16.gmra.mxu0 %v6457_v53  ;;  %v3336_v39 = vpop.f32.mrf.mxu0 }
 0x26c   :  { %4124 = vmatmul.mubr.bf16.gmra.mxu1 %v6463_v3  ;;  %4020 = vmatprep.mubr.bf16.mxu0 %v6481_v45  ;;  %v6640_v47 = vadd.f32 %v3447_v42, %v3335_v56  ;;  %v3337_v19 = vadd.f32 %v3336_v39, %v6538_v2  ;;  %v3449_v50 = vpop.f32.mrf.mxu1  ;;  %v6670_v42 = vld [vmem:[%s7137_s7] sm:$0xf] }
 0x26d   :  { %4133 = vmatprep.mubr.bf16.mxu1 %v6485_v4  ;;  %v3338_v32 = vpop.f32.mrf.mxu0 }
 0x26e   :  { %v6644_v27 = vadd.f32 %v3449_v50, %v3337_v19  ;;  %v3339_v55 = vadd.f32 %v3338_v32, %v6534_v13  ;;  %v3451_v41 = vpop.f32.mrf.mxu1 }
 0x26f   :  { %v3340_v33 = vpop.f32.mrf.mxu0 }
 0x270   :  { %v6647_v53 = vadd.f32 %v3451_v41, %v3339_v55  ;;  %v3341_v3 = vadd.f32 %v3340_v33, %v6538_v2  ;;  %v3453_v45 = vpop.f32.mrf.mxu1  ;;  %v6680_v41 = vrot.slane %v6670_v42, %v7393_v34 }
 0x272   :  { %v3344_v20 = vpop.f32.mrf.mxu0  ;;  %v6650_v29 = vadd.f32 %v3453_v45, %v3341_v3  ;;  %v3457_v44 = vpop.f32.mrf.mxu1 }
 0x273   :  { %v3345_v4 = vadd.f32 %v3344_v20, %v6534_v13  ;;  %4021 = vmatmul.mubr.bf16.gmra.mxu0 %v6483_v31 }
 0x274   :  { %4134 = vmatmul.mubr.bf16.gmra.mxu1 %v6487_v18  ;;  %v3346_v57 = vpop.f32.mrf.mxu0  ;;  %v3459_v11 = vpop.f32.mrf.mxu1 }
 0x275   :  { %v6655_v16 = vadd.f32 %v3457_v44, %v3345_v4  ;;  %v3347_v8 = vadd.f32 %v3346_v57, %v6538_v2 }
 0x276   :  { %v3348_v7 = vpop.f32.mrf.mxu0  ;;  %v3461_v25 = vpop.f32.mrf.mxu1 }
 0x277   :  { %v6658_v37 = vadd.f32 %v3459_v11, %v3347_v8  ;;  %v3349_v40 = vadd.f32 %v3348_v7, %v6534_v13 }
 0x278   :  { %v3350_v38 = vpop.f32.mrf.mxu0  ;;  %v3463_v31 = vpop.f32.mrf.mxu1 }
 0x279   :  { %v6661_v10 = vadd.f32 %v3461_v25, %v3349_v40  ;;  %v3351_v0 = vadd.f32 %v3350_v38, %v6538_v2  ;;  %v6675_v2 = vrot.slane %v6670_v42, %v7394_v52 }
 0x27a   :  { %v3500_v58 = vpop.f32.mrf.mxu0 }
 0x27b   :  { %v6664_v18 = vadd.f32 %v3463_v31, %v3351_v0  ;;  %v3501_v15 = vadd.f32 %v3500_v58, %v6544_v26  ;;  %v3613_v49 = vpop.f32.mrf.mxu1 }
 0x27c   :  { %v3502_v23 = vpop.f32.mrf.mxu0 }
 0x27d   :  { %v3614_v56 = vadd.f32 %v3613_v49, %v3501_v15  ;;  %v3503_v13 = vadd.f32 %v3502_v23, %v6548_v48  ;;  %v3615_v39 = vpop.f32.mrf.mxu1 }
 0x27e   :  { %v3504_v19 = vpop.f32.mrf.mxu0 }
 0x27f   :  { %v3616_v50 = vadd.f32 %v3615_v39, %v3503_v13  ;;  %v3505_v32 = vadd.f32 %v3504_v19, %v6551_v17  ;;  %v3617_v26 = vpop.f32.mrf.mxu1  ;;  %v4144_v55 = vmax.f32 %v3614_v56, 0.0 }
 0x280   :  { %v3506_v33 = vpop.f32.mrf.mxu0 }
 0x281   :  { %v4145_v3 = vmax.f32 %v3616_v50, 0.0  ;;  %v3618_v45 = vadd.f32 %v3617_v26, %v3505_v32  ;;  %v3507_v48 = vadd.f32 %v3506_v33, %v6554_v5  ;;  %v3619_v20 = vpop.f32.mrf.mxu1  ;;  %v4230_v11 = vmul.f32 %v6680_v41, %v4144_v55 }
 0x282   :  { %v3510_v4 = vpop.f32.mrf.mxu0 }
 0x283   :  { %v4231_v44 = vmul.f32 %v6675_v2, %v4145_v3  ;;  %v4148_v57 = vmax.f32 %v3618_v45, 0.0  ;;  %v3620_v52 = vadd.f32 %v3619_v20, %v3507_v48  ;;  %v3511_v8 = vadd.f32 %v3510_v4, %v6560_v35  ;;  %v3623_v17 = vpop.f32.mrf.mxu1 }
 0x284   :  { %v3512_v7 = vpop.f32.mrf.mxu0 }
 0x285   :  { %v4149_v40 = vmax.f32 %v3620_v52, 0.0  ;;  %v3624_v34 = vadd.f32 %v3623_v17, %v3511_v8  ;;  %v3513_v25 = vadd.f32 %v3512_v7, %v6564_v43  ;;  %v3625_v38 = vpop.f32.mrf.mxu1  ;;  %v4234_v0 = vmul.f32 %v6680_v41, %v4148_v57 }
 0x286   :  { %v3514_v5 = vpop.f32.mrf.mxu0  ;;  %v6688_v31 = vadd.f32 %v4231_v44, %v4230_v11 }
 0x287   :  { %v4235_v58 = vmul.f32 %v6675_v2, %v4149_v40  ;;  %v4152_v15 = vmax.f32 %v3624_v34, 0.0  ;;  %v3626_v49 = vadd.f32 %v3625_v38, %v3513_v25  ;;  %v3515_v35 = vadd.f32 %v3514_v5, %v6567_v30  ;;  %v3627_v23 = vpop.f32.mrf.mxu1 }
 0x288   :  { %v3516_v56 = vpop.f32.mrf.mxu0 }
 0x289   :  { %v6692_v13 = vadd.f32 %v4235_v58, %v4234_v0  ;;  %v4153_v39 = vmax.f32 %v3626_v49, 0.0  ;;  %v3628_v19 = vadd.f32 %v3627_v23, %v3515_v35  ;;  %v3629_v50 = vpop.f32.mrf.mxu1  ;;  %v3517_v43 = vadd.f32 %v3516_v56, %v6570_v9 }
 0x28a   :  { %v3520_v32 = vpop.f32.mrf.mxu0  ;;  %v4238_v26 = vmul.f32 %v6680_v41, %v4152_v15 }
 0x28b   :  { %v4239_v55 = vmul.f32 %v6675_v2, %v4153_v39  ;;  %v3521_v33 = vadd.f32 %v3520_v32, %v6576_v12  ;;  %v3633_v3 = vpop.f32.mrf.mxu1  ;;  %v4156_v45 = vmax.f32 %v3628_v19, 0.0  ;;  %v3630_v48 = vadd.f32 %v3629_v50, %v3517_v43 }
 0x28c   :  { %v3522_v30 = vpop.f32.mrf.mxu0 }
 0x28d   :  { %v3634_v20 = vadd.f32 %v3633_v3, %v3521_v33  ;;  %v3523_v4 = vadd.f32 %v3522_v30, %v6580_v63  ;;  %v3635_v44 = vpop.f32.mrf.mxu1  ;;  %v6699_v57 = vadd.f32 %v4239_v55, %v4238_v26  ;;  %v4157_v52 = vmax.f32 %v3630_v48, 0.0 }
 0x28e   :  { %v3524_v8 = vpop.f32.mrf.mxu0  ;;  %v4242_v40 = vmul.f32 %v6680_v41, %v4156_v45 }
 0x28f   :  { %v4160_v9 = vmax.f32 %v3634_v20, 0.0  ;;  %v3636_v17 = vadd.f32 %v3635_v44, %v3523_v4  ;;  %v3525_v11 = vadd.f32 %v3524_v8, %v6583_v6  ;;  %v3637_v7 = vpop.f32.mrf.mxu1  ;;  %v4243_v12 = vmul.f32 %v6675_v2, %v4157_v52 }
 0x290   :  { %v3526_v34 = vpop.f32.mrf.mxu0 }
 0x291   :  { %v4161_v25 = vmax.f32 %v3636_v17, 0.0  ;;  %v3638_v38 = vadd.f32 %v3637_v7, %v3525_v11  ;;  %v3527_v0 = vadd.f32 %v3526_v34, %v6586_v60  ;;  %v3639_v63 = vpop.f32.mrf.mxu1  ;;  %v6705_v5 = vadd.f32 %v4243_v12, %v4242_v40 }
 0x292   :  { %v4246_v58 = vmul.f32 %v6680_v41, %v4160_v9  ;;  %v3530_v15 = vpop.f32.mrf.mxu0 }
 0x293   :  { %v4247_v49 = vmul.f32 %v6675_v2, %v4161_v25  ;;  %v4164_v35 = vmax.f32 %v3638_v38, 0.0  ;;  %v3640_v6 = vadd.f32 %v3639_v63, %v3527_v0  ;;  %v3531_v23 = vadd.f32 %v3530_v15, %v6592_v24  ;;  %v3643_v56 = vpop.f32.mrf.mxu1 }
 0x294   :  { %v3532_v39 = vpop.f32.mrf.mxu0 }
 0x295   :  { %v6710_v19 = vadd.f32 %v4247_v49, %v4246_v58  ;;  %v4165_v50 = vmax.f32 %v3640_v6, 0.0  ;;  %v3644_v43 = vadd.f32 %v3643_v56, %v3531_v23  ;;  %v3645_v32 = vpop.f32.mrf.mxu1  ;;  %v3533_v60 = vadd.f32 %v3532_v39, %v6596_v22 }
 0x296   :  { %v3534_v26 = vpop.f32.mrf.mxu0  ;;  %v4250_v55 = vmul.f32 %v6680_v41, %v4164_v35 }
 0x297   :  { %v4251_v33 = vmul.f32 %v6675_v2, %v4165_v50  ;;  %v3535_v3 = vadd.f32 %v3534_v26, %v6599_v62  ;;  %v3647_v45 = vpop.f32.mrf.mxu1  ;;  %v4168_v48 = vmax.f32 %v3644_v43, 0.0  ;;  %v3646_v30 = vadd.f32 %v3645_v32, %v3533_v60 }
 0x298   :  { %v3536_v24 = vpop.f32.mrf.mxu0 }
 0x299   :  { %v6716_v20 = vadd.f32 %v4251_v33, %v4250_v55  ;;  %v3648_v4 = vadd.f32 %v3647_v45, %v3535_v3  ;;  %v3537_v44 = vadd.f32 %v3536_v24, %v6602_v51  ;;  %v3649_v52 = vpop.f32.mrf.mxu1  ;;  %v4169_v8 = vmax.f32 %v3646_v30, 0.0 }
 0x29a   :  { %v3540_v9 = vpop.f32.mrf.mxu0  ;;  %v4254_v40 = vmul.f32 %v6680_v41, %v4168_v48 }
 0x29b   :  { %v4172_v22 = vmax.f32 %v3648_v4, 0.0  ;;  %v3650_v17 = vadd.f32 %v3649_v52, %v3537_v44  ;;  %v3541_v11 = vadd.f32 %v3540_v9, %v6608_v46  ;;  %v3653_v7 = vpop.f32.mrf.mxu1  ;;  %v4255_v62 = vmul.f32 %v6675_v2, %v4169_v8 }
 0x29c   :  { %v3542_v12 = vpop.f32.mrf.mxu0 }
 0x29d   :  { %v4173_v34 = vmax.f32 %v3650_v17, 0.0  ;;  %v3654_v25 = vadd.f32 %v3653_v7, %v3541_v11  ;;  %v3543_v38 = vadd.f32 %v3542_v12, %v6612_v61  ;;  %v3655_v0 = vpop.f32.mrf.mxu1  ;;  %v6723_v63 = vadd.f32 %v4255_v62, %v4254_v40 }
 0x29e   :  { %v4258_v51 = vmul.f32 %v6680_v41, %v4172_v22  ;;  %v3544_v58 = vpop.f32.mrf.mxu0 }
 0x29f   :  { %7417 = vst [vmem:[#allocation40_spill] sm:$0xff] %v6723_v63  ;;  %v4259_v15 = vmul.f32 %v6675_v2, %v4173_v34  ;;  %v4176_v49 = vmax.f32 %v3654_v25, 0.0  ;;  %v3656_v46 = vadd.f32 %v3655_v0, %v3543_v38  ;;  %v3545_v35 = vadd.f32 %v3544_v58, %v6615_v36  ;;  %v3657_v6 = vpop.f32.mrf.mxu1 }
 0x2a0   :  { %v3546_v23 = vpop.f32.mrf.mxu0 }
 0x2a1   :  { %v6728_v56 = vadd.f32 %v4259_v15, %v4258_v51  ;;  %v4177_v39 = vmax.f32 %v3656_v46, 0.0  ;;  %v3658_v50 = vadd.f32 %v3657_v6, %v3545_v35  ;;  %v3659_v43 = vpop.f32.mrf.mxu1  ;;  %v3547_v61 = vadd.f32 %v3546_v23, %v6618_v28 }
 0x2a2   :  { %v3550_v32 = vpop.f32.mrf.mxu0  ;;  %v4262_v60 = vmul.f32 %v6680_v41, %v4176_v49 }
 0x2a3   :  { %7418 = vst [vmem:[#allocation41_spill] sm:$0xff] %v6728_v56  ;;  %v4263_v26 = vmul.f32 %v6675_v2, %v4177_v39  ;;  %v3551_v55 = vadd.f32 %v3550_v32, %v6624_v59  ;;  %v3663_v33 = vpop.f32.mrf.mxu1  ;;  %v4180_v3 = vmax.f32 %v3658_v50, 0.0  ;;  %v3660_v45 = vadd.f32 %v3659_v43, %v3547_v61 }
 0x2a4   :  { %v3552_v36 = vpop.f32.mrf.mxu0 }
 0x2a5   :  { %v6734_v48 = vadd.f32 %v4263_v26, %v4262_v60  ;;  %v3664_v30 = vadd.f32 %v3663_v33, %v3551_v55  ;;  %v3553_v24 = vadd.f32 %v3552_v36, %v6628_v21  ;;  %v3665_v4 = vpop.f32.mrf.mxu1  ;;  %v4181_v44 = vmax.f32 %v3660_v45, 0.0 }
 0x2a6   :  { %v3554_v52 = vpop.f32.mrf.mxu0  ;;  %v4266_v17 = vmul.f32 %v6680_v41, %v4180_v3 }
 0x2a7   :  { %7419 = vst [vmem:[#allocation42_spill] sm:$0xff] %v6734_v48  ;;  %v4184_v28 = vmax.f32 %v3664_v30, 0.0  ;;  %v3666_v8 = vadd.f32 %v3665_v4, %v3553_v24  ;;  %v3555_v9 = vadd.f32 %v3554_v52, %v6631_v1  ;;  %v3667_v22 = vpop.f32.mrf.mxu1  ;;  %v4267_v59 = vmul.f32 %v6675_v2, %v4181_v44 }
 0x2a8   :  { %v3556_v11 = vpop.f32.mrf.mxu0 }
 0x2a9   :  { %v4185_v7 = vmax.f32 %v3666_v8, 0.0  ;;  %v3668_v40 = vadd.f32 %v3667_v22, %v3555_v9  ;;  %v3557_v62 = vadd.f32 %v3556_v11, %v6634_v54  ;;  %v3669_v12 = vpop.f32.mrf.mxu1  ;;  %v6741_v34 = vadd.f32 %v4267_v59, %v4266_v17 }
 0x2aa   :  { %v4270_v21 = vmul.f32 %v6680_v41, %v4184_v28  ;;  %v3560_v25 = vpop.f32.mrf.mxu0 }
 0x2ab   :  { %7420 = vst [vmem:[#allocation43_spill] sm:$0xff] %v6741_v34  ;;  %v4271_v38 = vmul.f32 %v6675_v2, %v4185_v7  ;;  %v4188_v0 = vmax.f32 %v3668_v40, 0.0  ;;  %v3670_v1 = vadd.f32 %v3669_v12, %v3557_v62  ;;  %v3561_v51 = vadd.f32 %v3560_v25, %v6640_v47  ;;  %v3673_v58 = vpop.f32.mrf.mxu1 }
 0x2ac   :  { %v3562_v15 = vpop.f32.mrf.mxu0 }
 0x2ad   :  { %v6746_v49 = vadd.f32 %v4271_v38, %v4270_v21  ;;  %v4189_v46 = vmax.f32 %v3670_v1, 0.0  ;;  %v3674_v35 = vadd.f32 %v3673_v58, %v3561_v51  ;;  %v3675_v6 = vpop.f32.mrf.mxu1  ;;  %v3563_v54 = vadd.f32 %v3562_v15, %v6644_v27 }
 0x2ae   :  { %v3564_v23 = vpop.f32.mrf.mxu0  ;;  %v4274_v39 = vmul.f32 %v6680_v41, %v4188_v0 }
 0x2af   :  { %7421 = vst [vmem:[#allocation44_spill] sm:$0xff] %v6746_v49  ;;  %v4275_v50 = vmul.f32 %v6675_v2, %v4189_v46  ;;  %v3565_v43 = vadd.f32 %v3564_v23, %v6647_v53  ;;  %v3677_v61 = vpop.f32.mrf.mxu1  ;;  %v4192_v32 = vmax.f32 %v3674_v35, 0.0  ;;  %v3676_v60 = vadd.f32 %v3675_v6, %v3563_v54 }
 0x2b0   :  { %v3566_v47 = vpop.f32.mrf.mxu0 }
 0x2b1   :  { %v6752_v26 = vadd.f32 %v4275_v50, %v4274_v39  ;;  %v3678_v55 = vadd.f32 %v3677_v61, %v3565_v43  ;;  %v3567_v33 = vadd.f32 %v3566_v47, %v6650_v29  ;;  %v3679_v3 = vpop.f32.mrf.mxu1  ;;  %v4193_v45 = vmax.f32 %v3676_v60, 0.0 }
 0x2b2   :  { %v3570_v36 = vpop.f32.mrf.mxu0  ;;  %v4278_v44 = vmul.f32 %v6680_v41, %v4192_v32 }
 0x2b3   :  { %7422 = vst [vmem:[#allocation45_spill] sm:$0xff] %v6752_v26  ;;  %v4196_v27 = vmax.f32 %v3678_v55, 0.0  ;;  %v3680_v30 = vadd.f32 %v3679_v3, %v3567_v33  ;;  %v3571_v24 = vadd.f32 %v3570_v36, %v6655_v16  ;;  %v3683_v4 = vpop.f32.mrf.mxu1  ;;  %v4279_v53 = vmul.f32 %v6675_v2, %v4193_v45 }
 0x2b4   :  { %v3572_v52 = vpop.f32.mrf.mxu0 }
 0x2b5   :  { %v4197_v28 = vmax.f32 %v3680_v30, 0.0  ;;  %v3684_v8 = vadd.f32 %v3683_v4, %v3571_v24  ;;  %v3573_v9 = vadd.f32 %v3572_v52, %v6658_v37  ;;  %v3685_v22 = vpop.f32.mrf.mxu1  ;;  %v6759_v17 = vadd.f32 %v4279_v53, %v4278_v44 }
 0x2b6   :  { %v4282_v29 = vmul.f32 %v6680_v41, %v4196_v27  ;;  %v3574_v59 = vpop.f32.mrf.mxu0 }
 0x2b7   :  { %7423 = vst [vmem:[#allocation46_spill] sm:$0xff] %v6759_v17  ;;  %v4283_v11 = vmul.f32 %v6675_v2, %v4197_v28  ;;  %v4200_v7 = vmax.f32 %v3684_v8, 0.0  ;;  %v3686_v16 = vadd.f32 %v3685_v22, %v3573_v9  ;;  %v3575_v40 = vadd.f32 %v3574_v59, %v6661_v10  ;;  %v3687_v62 = vpop.f32.mrf.mxu1 }
 0x2b8   :  { %v3576_v12 = vpop.f32.mrf.mxu0 }
 0x2b9   :  { %v6764_v21 = vadd.f32 %v4283_v11, %v4282_v29  ;;  %v4201_v25 = vmax.f32 %v3686_v16, 0.0  ;;  %v3688_v38 = vadd.f32 %v3687_v62, %v3575_v40  ;;  %v3689_v0 = vpop.f32.mrf.mxu1  ;;  %v3577_v37 = vadd.f32 %v3576_v12, %v6664_v18 }
 0x2ba   :  { %v6767_v1 = vpop.f32.mrf.mxu0  ;;  %v4286_v51 = vmul.f32 %v6680_v41, %v4200_v7 }
 0x2bb   :  { %7424 = vst [vmem:[#allocation47_spill] sm:$0xff] %v6764_v21  ;;  %v4287_v58 = vmul.f32 %v6675_v2, %v4201_v25  ;;  %v6771_v15 = vpop.f32.mrf.mxu1  ;;  %v4204_v46 = vmax.f32 %v3688_v38, 0.0  ;;  %v3690_v35 = vadd.f32 %v3689_v0, %v3577_v37 }
 0x2bc   :  { %v6773_v10 = vpop.f32.mrf.mxu0 }
 0x2bd   :  { %v6775_v6 = vadd.f32 %v4287_v58, %v4286_v51  ;;  %v6777_v54 = vpop.f32.mrf.mxu1  ;;  %v4205_v23 = vmax.f32 %v3690_v35, 0.0  ;;  %v4290_v50 = vmul.f32 %v6680_v41, %v4204_v46 }
 0x2be   :  { %v6779_v39 = vpop.f32.mrf.mxu0 }
 0x2bf   :  { %7425 = vst [vmem:[#allocation48_spill] sm:$0xff] %v6775_v6  ;;  %v6781_v18 = vpop.f32.mrf.mxu1  ;;  %v4291_v43 = vmul.f32 %v6675_v2, %v4205_v23 }
 0x2c0   :  { %v6785_v61 = vpop.f32.mrf.mxu0 }
 0x2c1   :  { %v6787_v32 = vpop.f32.mrf.mxu1  ;;  %v6789_v60 = vadd.f32 %v4291_v43, %v4290_v50 }
 0x2c2   :  { %v6791_v47 = vpop.f32.mrf.mxu0 }
 0x2c3   :  { %7426 = vst [vmem:[#allocation49_spill] sm:$0xff] %v6789_v60  ;;  %v6793_v55 = vpop.f32.mrf.mxu1 }
 0x2c4   :  { %v6795_v33 = vpop.f32.mrf.mxu0 }
 0x2c5   :  { %v6797_v3 = vpop.f32.mrf.mxu1 }
 0x2c6   :  { %v6799_v45 = vpop.f32.mrf.mxu0 }
 0x2c7   :  { %v6801_v36 = vpop.f32.mrf.mxu1 }
 0x2c8   :  { %v6803_v41 = vpop.f32.mrf.mxu0 }
 0x2c9   :  { %v6805_v2 = vpop.f32.mrf.mxu1 }
 0x2ca   :  { %v6807_v27 = vpop.f32.mrf.mxu0 }
 0x2cb   :  { %v6809_v30 = vpop.f32.mrf.mxu1 }
 0x2cc   :  { %v6811_v24 = vpop.f32.mrf.mxu0 }
 0x2cd   :  { %v6813_v4 = vpop.f32.mrf.mxu1 }
 0x2ce   :  { %v6815_v44 = vpop.f32.mrf.mxu0 }
 0x2cf   :  { %v6817_v53 = vpop.f32.mrf.mxu1 }
 0x2d0   :  { %v6819_v52 = vpop.f32.mrf.mxu0 }
 0x2d1   :  { %v6821_v28 = vpop.f32.mrf.mxu1 }
 0x2d2   :  { %v6823_v8 = vpop.f32.mrf.mxu0 }
 0x2d3   :  { %v6825_v9 = vpop.f32.mrf.mxu1 }
 0x2d4   :  { %v6827_v22 = vpop.f32.mrf.mxu0 }
 0x2d5   :  { %v6829_v29 = vpop.f32.mrf.mxu1 }
 0x2d6   :  { %v6831_v59 = vpop.f32.mrf.mxu0 }
 0x2d7   :  { %v6833_v11 = vpop.f32.mrf.mxu1 }
 0x2d8   :  { %v6835_v7 = vpop.f32.mrf.mxu0 }
 0x2d9   :  { %v6837_v16 = vpop.f32.mrf.mxu1 }
 0x2da   :  { %v6839_v40 = vpop.f32.mrf.mxu0 }
 0x2db   :  { %v6841_v62 = vpop.f32.mrf.mxu1 }
 0x2dc   :  { %v6843_v12 = vpop.f32.mrf.mxu0 }
 0x2dd   :  { %v6845_v25 = vpop.f32.mrf.mxu1 }
 0x2de   :  { %v6847_v38 = vpop.f32.mrf.mxu0 }
 0x2df   :  { %v6849_v0 = vpop.f32.mrf.mxu1 }
 0x2e0   :  { %v6851_v37 = vpop.f32.mrf.mxu0 }
 0x2e1   :  { %v6853_v51 = vpop.f32.mrf.mxu1 }
 0x2e2   :  { %7427 = vst [vmem:[#allocation50_spill] sm:$0xff] %v6853_v51  ;;  %v6855_v58 = vpop.f32.mrf.mxu0 }
 0x2e3   :  { %v6857_v46 = vpop.f32.mrf.mxu1 }
 0x2e4   :  { %7428 = vst [vmem:[#allocation51_spill] sm:$0xff] %v6857_v46  ;;  %v6859_v35 = vpop.f32.mrf.mxu0 }
 0x2e5   :  { %7429 = vst [vmem:[#allocation52_spill] sm:$0xff] %v6859_v35  ;;  %v6861_v23 = vpop.f32.mrf.mxu1 }
 0x2e6   :  { %7430 = vst [vmem:[#allocation53_spill] sm:$0xff] %v6861_v23  ;;  %v6863_v50 = vpop.f32.mrf.mxu0 }
 0x2e7   :  { %7431 = vst [vmem:[#allocation54_spill] sm:$0xff] %v6863_v50  ;;  %v6865_v43 = vpop.f32.mrf.mxu1 }
 0x2e8   :  { %7432 = vst [vmem:[#allocation55_spill] sm:$0xff] %v6865_v43  ;;  %v6867_v60 = vpop.f32.mrf.mxu0  ;;  %v7443_v43 = vld [vmem:[#allocation102_spill] sm:$0xff] }
 0x2e9   :  { %7433 = vst [vmem:[#allocation56_spill] sm:$0xff] %v6867_v60  ;;  %v6869_v6 = vpop.f32.mrf.mxu1  ;;  %v6889_v60 = vrot.slane %v6530_v14, %v7443_v43 }
 0x2ea   :  { %7434 = vst [vmem:[#allocation57_spill] sm:$0xff] %v6869_v6  ;;  %v6871_v21 = vpop.f32.mrf.mxu0 }
 0x2eb   :  { %7435 = vst [vmem:[#allocation58_spill] sm:$0xff] %v6871_v21  ;;  %v6873_v17 = vpop.f32.mrf.mxu1 }
 0x2ec   :  { %7436 = vst [vmem:[#allocation59_spill] sm:$0xff] %v6873_v17  ;;  %v6875_v26 = vpop.f32.mrf.mxu0  ;;  %v7446_v17 = vld [vmem:[#allocation103_spill] sm:$0xff] }
 0x2ed   :  { %7437 = vst [vmem:[#allocation60_spill] sm:$0xff] %v6875_v26  ;;  %v6877_v49 = vpop.f32.mrf.mxu1  ;;  %v6897_v26 = vrot.slane %v6530_v14, %v7446_v17 }
 0x2ee   :  { %7438 = vst [vmem:[#allocation61_spill] sm:$0xff] %v6877_v49  ;;  %v6879_v34 = vpop.f32.mrf.mxu0 }
 0x2ef   :  { %7439 = vst [vmem:[#allocation62_spill] sm:$0xff] %v6879_v34  ;;  %v6881_v48 = vpop.f32.mrf.mxu1 }
 0x2f0   :  { %7440 = vst [vmem:[#allocation63_spill] sm:$0xff] %v6881_v48  ;;  %v6883_v23 = vpop.f32.mrf.mxu0  ;;  %v3727_v48 = vadd.f32 %v6767_v1, %v6889_v60  ;;  %v3733_v1 = vadd.f32 %v6785_v61, %v6897_v26 }
 0x2f1   :  { %7441 = vst [vmem:[#allocation64_spill] sm:$0xff] %v6883_v23  ;;  %v6885_v56 = vpop.f32.mrf.mxu1 }
 0x2f2   :  { %7442 = vst [vmem:[#allocation65_spill] sm:$0xff] %v6885_v56  ;;  %v6891_v6 = vpop.f32.mrf.mxu0  ;;  %v3840_v14 = vadd.f32 %v6771_v15, %v3727_v48  ;;  %v6926_v48 = vrot.slane %v6670_v42, %v7443_v43  ;;  %v3846_v61 = vadd.f32 %v6787_v32, %v3733_v1 }
 0x2f3   :  { %7444 = vst [vmem:[#allocation66_spill] sm:$0xff] %v6891_v6  ;;  %v6893_v21 = vpop.f32.mrf.mxu1  ;;  %v3729_v6 = vadd.f32 %v6773_v10, %v6897_v26  ;;  %v3737_v10 = vadd.f32 %v6791_v47, %v6889_v60 }
 0x2f4   :  { %7445 = vst [vmem:[#allocation67_spill] sm:$0xff] %v6893_v21  ;;  %v6899_v49 = vpop.f32.mrf.mxu0 }
 0x2f5   :  { %7447 = vst [vmem:[#allocation68_spill] sm:$0xff] %v6899_v49  ;;  %v6901_v34 = vpop.f32.mrf.mxu1  ;;  %v3731_v49 = vadd.f32 %v6779_v39, %v6889_v60  ;;  %v3842_v46 = vadd.f32 %v6777_v54, %v3729_v6  ;;  %v3739_v6 = vadd.f32 %v6795_v33, %v6897_v26 }
 0x2f6   :  { %7448 = vst [vmem:[#allocation69_spill] sm:$0xff] %v6901_v34  ;;  %v6905_v56 = vpop.f32.mrf.mxu0 }
 0x2f7   :  { %7449 = vst [vmem:[#allocation70_spill] sm:$0xff] %v6905_v56  ;;  %v6907_v23 = vpop.f32.mrf.mxu1 }
 0x2f8   :  { %7450 = vst [vmem:[#allocation71_spill] sm:$0xff] %v6907_v23  ;;  %v6911_v50 = vpop.f32.mrf.mxu0 }
 0x2f9   :  { %7451 = vst [vmem:[#allocation72_spill] sm:$0xff] %v6911_v50  ;;  %v6913_v21 = vpop.f32.mrf.mxu1  ;;  %v3844_v50 = vadd.f32 %v6781_v18, %v3731_v49  ;;  %v3850_v18 = vadd.f32 %v6793_v55, %v3737_v10 }
 0x2fa   :  { %7452 = vst [vmem:[#allocation73_spill] sm:$0xff] %v6913_v21 }
 0x2fb   :  { %v3952_v34 = vpop.f32.mrf.mxu0 }
 0x2fc   :  { %v3953_v56 = vadd.f32 %v3952_v34, %v3840_v14  ;;  %v4065_v23 = vpop.f32.mrf.mxu1  ;;  %v6932_v34 = vrot.slane %v6670_v42, %v7446_v17  ;;  %v3852_v42 = vadd.f32 %v6797_v3, %v3739_v6  ;;  %v3743_v17 = vadd.f32 %v6803_v41, %v6897_v26 }
 0x2fd   :  { %v3954_v35 = vpop.f32.mrf.mxu0 }
 0x2fe   :  { %v4066_v21 = vadd.f32 %v4065_v23, %v3953_v56  ;;  %v3955_v15 = vadd.f32 %v3954_v35, %v3842_v46  ;;  %v4067_v39 = vpop.f32.mrf.mxu1  ;;  %v3741_v46 = vadd.f32 %v6799_v45, %v6889_v60 }
 0x2ff   :  { %v3956_v54 = vpop.f32.mrf.mxu0 }
 0x300   :  { %v4146_v47 = vmax.f32 %v4066_v21, 0.0  ;;  %v4068_v14 = vadd.f32 %v4067_v39, %v3955_v15  ;;  %v3957_v49 = vadd.f32 %v3956_v54, %v3844_v50  ;;  %v4069_v56 = vpop.f32.mrf.mxu1  ;;  %v3854_v45 = vadd.f32 %v6801_v36, %v3741_v46 }
 0x301   :  { %v3958_v35 = vpop.f32.mrf.mxu0  ;;  %v3747_v15 = vadd.f32 %v6807_v27, %v6889_v60 }
 0x302   :  { %v4232_v23 = vmul.f32 %v6926_v48, %v4146_v47  ;;  %v4147_v33 = vmax.f32 %v4068_v14, 0.0  ;;  %v4070_v43 = vadd.f32 %v4069_v56, %v3957_v49  ;;  %v3959_v51 = vadd.f32 %v3958_v35, %v3846_v61  ;;  %v4071_v63 = vpop.f32.mrf.mxu1 }
 0x303   :  { %v3962_v21 = vpop.f32.mrf.mxu0  ;;  %v3751_v35 = vadd.f32 %v6815_v44, %v6889_v60 }
 0x304   :  { %v4150_v32 = vmax.f32 %v4070_v43, 0.0  ;;  %v4072_v50 = vadd.f32 %v4071_v63, %v3959_v51  ;;  %v3963_v1 = vadd.f32 %v3962_v21, %v3850_v18  ;;  %v4075_v55 = vpop.f32.mrf.mxu1  ;;  %v4233_v10 = vmul.f32 %v6932_v34, %v4147_v33 }
 0x305   :  { %v3964_v39 = vpop.f32.mrf.mxu0  ;;  %v4295_v54 = vadd.f32 %v6688_v31, %v4232_v23  ;;  %v3856_v63 = vadd.f32 %v6805_v2, %v3743_v17  ;;  %v3749_v51 = vadd.f32 %v6811_v24, %v6897_v26  ;;  %v3860_v31 = vadd.f32 %v6809_v30, %v3747_v15 }
 0x306   :  { %v4236_v3 = vmul.f32 %v6926_v48, %v4150_v32  ;;  %v4151_v6 = vmax.f32 %v4072_v50, 0.0  ;;  %v4076_v61 = vadd.f32 %v4075_v55, %v3963_v1  ;;  %v3965_v41 = vadd.f32 %v3964_v39, %v3852_v42  ;;  %v4077_v47 = vpop.f32.mrf.mxu1 }
 0x307   :  { %v3966_v14 = vpop.f32.mrf.mxu0  ;;  %v4296_v49 = vadd.f32 %v4295_v54, %v4233_v10  ;;  %v3862_v21 = vadd.f32 %v6813_v4, %v3749_v51  ;;  %v3753_v32 = vadd.f32 %v6819_v52, %v6897_v26  ;;  %v3757_v15 = vadd.f32 %v6823_v8, %v6889_v60 }
 0x308   :  { %v4237_v36 = vmul.f32 %v6932_v34, %v4151_v6  ;;  %v4154_v56 = vmax.f32 %v4076_v61, 0.0  ;;  %v4078_v27 = vadd.f32 %v4077_v47, %v3965_v41  ;;  %v3967_v18 = vadd.f32 %v3966_v14, %v3854_v45  ;;  %v4079_v46 = vpop.f32.mrf.mxu1 }
 0x309   :  { %4297 = vadd.xlane.f32.xlu0 %v4296_v49  ;;  %v3968_v23 = vpop.f32.mrf.mxu0  ;;  %v4300_v2 = vadd.f32 %v6692_v13, %v4236_v3  ;;  %v3864_v13 = vadd.f32 %v6817_v53, %v3751_v35  ;;  %v3866_v41 = vadd.f32 %v6821_v28, %v3753_v32  ;;  %v3759_v47 = vadd.f32 %v6827_v22, %v6897_v26 }
 0x30a   :  { %v4240_v33 = vmul.f32 %v6926_v48, %v4154_v56  ;;  %v4155_v24 = vmax.f32 %v4078_v27, 0.0  ;;  %v4080_v43 = vadd.f32 %v4079_v46, %v3967_v18  ;;  %v3969_v42 = vadd.f32 %v3968_v23, %v3856_v63  ;;  %v4081_v17 = vpop.f32.mrf.mxu1 }
 0x30b   :  { %v3972_v50 = vpop.f32.mrf.mxu0  ;;  %v4301_v30 = vadd.f32 %v4300_v2, %v4237_v36  ;;  %v3761_v56 = vadd.f32 %v6831_v59, %v6889_v60  ;;  %v3872_v23 = vadd.f32 %v6829_v29, %v3759_v47  ;;  %v3763_v2 = vadd.f32 %v6835_v7, %v6897_v26 }
 0x30c   :  { %v4158_v1 = vmax.f32 %v4080_v43, 0.0  ;;  %v4082_v55 = vadd.f32 %v4081_v17, %v3969_v42  ;;  %v3973_v44 = vadd.f32 %v3972_v50, %v3860_v31  ;;  %v4085_v10 = vpop.f32.mrf.mxu1  ;;  %v4241_v45 = vmul.f32 %v6932_v34, %v4155_v24 }
 0x30d   :  { %4302 = vadd.xlane.f32.xlu0 %v4301_v30  ;;  %v3974_v39 = vpop.f32.mrf.mxu0  ;;  %v4305_v4 = vadd.f32 %v6699_v57, %v4240_v33  ;;  %v3870_v57 = vadd.f32 %v6825_v9, %v3757_v15 }
 0x30e   :  { %v4244_v54 = vmul.f32 %v6926_v48, %v4158_v1  ;;  %v4159_v52 = vmax.f32 %v4082_v55, 0.0  ;;  %v4086_v3 = vadd.f32 %v4085_v10, %v3973_v44  ;;  %v3975_v6 = vadd.f32 %v3974_v39, %v3862_v21  ;;  %v4087_v61 = vpop.f32.mrf.mxu1 }
 0x30f   :  { %v3976_v63 = vpop.f32.mrf.mxu0  ;;  %v4306_v53 = vadd.f32 %v4305_v4, %v4241_v45  ;;  %v3767_v21 = vadd.f32 %v6839_v40, %v6889_v60  ;;  %v3876_v44 = vadd.f32 %v6837_v16, %v3763_v2  ;;  %v3769_v10 = vadd.f32 %v6843_v12, %v6897_v26 }
 0x310   :  { %v4245_v51 = vmul.f32 %v6932_v34, %v4159_v52  ;;  %v4162_v8 = vmax.f32 %v4086_v3, 0.0  ;;  %v4088_v14 = vadd.f32 %v4087_v61, %v3975_v6  ;;  %v3977_v49 = vadd.f32 %v3976_v63, %v3864_v13  ;;  %v4089_v36 = vpop.f32.mrf.mxu1 }
 0x311   :  { %4307 = vadd.xlane.f32.xlu1 %v4306_v53  ;;  %v3978_v27 = vpop.f32.mrf.mxu0  ;;  %v4310_v28 = vadd.f32 %v6705_v5, %v4244_v54  ;;  %v3874_v5 = vadd.f32 %v6833_v11, %v3761_v56  ;;  %v3771_v54 = vadd.f32 %v6847_v38, %v6889_v60  ;;  %v3882_v47 = vadd.f32 %v6845_v25, %v3769_v10  ;;  %v7453_v56 = vld [vmem:[#allocation40_spill] sm:$0xff] }
 0x312   :  { %v4248_v18 = vmul.f32 %v6926_v48, %v4162_v8  ;;  %v4163_v22 = vmax.f32 %v4088_v14, 0.0  ;;  %v4090_v46 = vadd.f32 %v4089_v36, %v3977_v49  ;;  %v3979_v31 = vadd.f32 %v3978_v27, %v3866_v41  ;;  %v4091_v35 = vpop.f32.mrf.mxu1 }
 0x313   :  { %v3982_v33 = vpop.f32.mrf.mxu0  ;;  %v4311_v9 = vadd.f32 %v4310_v28, %v4245_v51  ;;  %v3773_v63 = vadd.f32 %v6851_v37, %v6897_v26  ;;  %v3777_v36 = vadd.f32 %v6855_v58, %v6889_v60 }
 0x314   :  { %v4249_v24 = vmul.f32 %v6932_v34, %v4163_v22  ;;  %v4166_v59 = vmax.f32 %v4090_v46, 0.0  ;;  %v4092_v43 = vadd.f32 %v4091_v35, %v3979_v31  ;;  %v3983_v42 = vadd.f32 %v3982_v33, %v3870_v57  ;;  %v4095_v17 = vpop.f32.mrf.mxu1  ;;  %v7454_v46 = vld [vmem:[#allocation50_spill] sm:$0xff]  ;;  %v7455_v35 = vld [vmem:[#allocation52_spill] sm:$0xff] }
 0x315   :  { %4312 = vadd.xlane.f32.xlu1 %v4311_v9  ;;  %v3984_v32 = vpop.f32.mrf.mxu0  ;;  %v4315_v29 = vadd.f32 %v6710_v19, %v4248_v18  ;;  %v3880_v19 = vadd.f32 %v6841_v62, %v3767_v21  ;;  %v3886_v31 = vadd.f32 %v7454_v46, %v3773_v63 }
 0x316   :  { %v4252_v50 = vmul.f32 %v6926_v48, %v4166_v59  ;;  %v4167_v7 = vmax.f32 %v4092_v43, 0.0  ;;  %v4096_v30 = vadd.f32 %v4095_v17, %v3983_v42  ;;  %v3985_v1 = vadd.f32 %v3984_v32, %v3872_v23  ;;  %v4097_v55 = vpop.f32.mrf.mxu1  ;;  %v7456_v43 = vld [vmem:[#allocation51_spill] sm:$0xff]  ;;  %v7457_v17 = vld [vmem:[#allocation54_spill] sm:$0xff]  ;;  %v7458_v32 = vld [vmem:[#allocation41_spill] sm:$0xff] }
 0x317   :  { %v3986_v45 = vpop.f32.mrf.mxu0  ;;  %v4316_v11 = vadd.f32 %v4315_v29, %v4249_v24  ;;  %v3779_v23 = vadd.f32 %v7455_v35, %v6897_v26  ;;  %v3890_v42 = vadd.f32 %v7456_v43, %v3777_v36  ;;  %v7468_v35 = vld [vmem:[#allocation43_spill] sm:$0xff]  ;;  %v7470_v43 = vld [vmem:[#allocation64_spill] sm:$0xff] }
 0x318   :  { %v4253_v13 = vmul.f32 %v6932_v34, %v4167_v7  ;;  %v4170_v40 = vmax.f32 %v4096_v30, 0.0  ;;  %v4098_v15 = vadd.f32 %v4097_v55, %v3985_v1  ;;  %v3987_v39 = vadd.f32 %v3986_v45, %v3874_v5  ;;  %v4099_v4 = vpop.f32.mrf.mxu1  ;;  %v7460_v45 = vld [vmem:[#allocation56_spill] sm:$0xff] }
 0x319   :  { %4317 = vadd.xlane.f32.xlu0 %v4316_v11  ;;  %v3988_v52 = vpop.f32.mrf.mxu0  ;;  %v4320_v16 = vadd.f32 %v6716_v20, %v4252_v50  ;;  %v3884_v20 = vadd.f32 %v6849_v0, %v3771_v54  ;;  %v3781_v5 = vadd.f32 %v7457_v17, %v6889_v60  ;;  %v3783_v11 = vadd.f32 %v7460_v45, %v6897_v26  ;;  %v7473_v45 = vld [vmem:[#allocation44_spill] sm:$0xff] }
 0x31a   :  { %v4256_v3 = vmul.f32 %v6926_v48, %v4170_v40  ;;  %v4171_v12 = vmax.f32 %v4098_v15, 0.0  ;;  %v4100_v6 = vadd.f32 %v4099_v4, %v3987_v39  ;;  %v3989_v61 = vadd.f32 %v3988_v52, %v3876_v44  ;;  %v4101_v41 = vpop.f32.mrf.mxu1  ;;  %v7459_v44 = vld [vmem:[#allocation53_spill] sm:$0xff]  ;;  %v7461_v52 = vld [vmem:[#allocation55_spill] sm:$0xff] }
 0x31b   :  { %v3992_v53 = vpop.f32.mrf.mxu0  ;;  %v4321_v62 = vadd.f32 %v4320_v16, %v4253_v13  ;;  %v3892_v10 = vadd.f32 %v7459_v44, %v3779_v23  ;;  %v3894_v16 = vadd.f32 %v7461_v52, %v3781_v5  ;;  %v7475_v52 = vld [vmem:[#allocation68_spill] sm:$0xff] }
 0x31c   :  { %v4257_v51 = vmul.f32 %v6932_v34, %v4171_v12  ;;  %v4174_v38 = vmax.f32 %v4100_v6, 0.0  ;;  %v4102_v8 = vadd.f32 %v4101_v41, %v3989_v61  ;;  %v3993_v14 = vadd.f32 %v3992_v53, %v3880_v19  ;;  %v4105_v49 = vpop.f32.mrf.mxu1  ;;  %v7463_v61 = vld [vmem:[#allocation42_spill] sm:$0xff] }
 0x31d   :  { %4322 = vadd.xlane.f32.xlu1 %v4321_v62  ;;  %v3994_v57 = vpop.f32.mrf.mxu0  ;;  %v4325_v25 = vadd.f32 %v7453_v56, %v4256_v3  ;;  %v7462_v3 = vld [vmem:[#allocation58_spill] sm:$0xff] }
 0x31e   :  { %v4260_v27 = vmul.f32 %v6926_v48, %v4174_v38  ;;  %v4175_v37 = vmax.f32 %v4102_v8, 0.0  ;;  %v4106_v28 = vadd.f32 %v4105_v49, %v3993_v14  ;;  %v3995_v18 = vadd.f32 %v3994_v57, %v3882_v47  ;;  %v4107_v22 = vpop.f32.mrf.mxu1  ;;  %v7464_v38 = vld [vmem:[#allocation57_spill] sm:$0xff]  ;;  %v7465_v14 = vld [vmem:[#allocation60_spill] sm:$0xff] }
 0x31f   :  { %v3996_v2 = vpop.f32.mrf.mxu0  ;;  %v4326_v0 = vadd.f32 %v4325_v25, %v4257_v51  ;;  %v3787_v12 = vadd.f32 %v7462_v3, %v6889_v60  ;;  %v3896_v8 = vadd.f32 %v7464_v38, %v3783_v11  ;;  %v3789_v49 = vadd.f32 %v7465_v14, %v6897_v26  ;;  %v7478_v14 = vld [vmem:[#allocation45_spill] sm:$0xff] }
 0x320   :  { %v4261_v33 = vmul.f32 %v6932_v34, %v4175_v37  ;;  %v4178_v58 = vmax.f32 %v4106_v28, 0.0  ;;  %v4108_v9 = vadd.f32 %v4107_v22, %v3995_v18  ;;  %v3997_v24 = vadd.f32 %v3996_v2, %v3884_v20  ;;  %v4109_v59 = vpop.f32.mrf.mxu1  ;;  %v7466_v28 = vld [vmem:[#allocation59_spill] sm:$0xff]  ;;  %v7467_v22 = vld [vmem:[#allocation62_spill] sm:$0xff] }
 0x321   :  { %4327 = vadd.xlane.f32.xlu0 %v4326_v0  ;;  %v3998_v21 = vpop.f32.mrf.mxu0  ;;  %v4330_v29 = vadd.f32 %v7458_v32, %v4260_v27  ;;  %v3900_v18 = vadd.f32 %v7466_v28, %v3787_v12  ;;  %v3791_v46 = vadd.f32 %v7467_v22, %v6889_v60  ;;  %v7480_v28 = vld [vmem:[#allocation72_spill] sm:$0xff] }
 0x322   :  { %v4264_v50 = vmul.f32 %v6926_v48, %v4178_v58  ;;  %v4179_v7 = vmax.f32 %v4108_v9, 0.0  ;;  %v4110_v30 = vadd.f32 %v4109_v59, %v3997_v24  ;;  %v3999_v1 = vadd.f32 %v3998_v21, %v3886_v31  ;;  %v4111_v55 = vpop.f32.mrf.mxu1  ;;  %v7469_v24 = vld [vmem:[#allocation61_spill] sm:$0xff] }
 0x323   :  { %v4002_v13 = vpop.f32.mrf.mxu0  ;;  %v4331_v40 = vadd.f32 %v4330_v29, %v4261_v33  ;;  %v3902_v59 = vadd.f32 %v7469_v24, %v3789_v49 }
 0x324   :  { %v4265_v15 = vmul.f32 %v6932_v34, %v4179_v7  ;;  %v4182_v39 = vmax.f32 %v4110_v30, 0.0  ;;  %v4112_v4 = vadd.f32 %v4111_v55, %v3999_v1  ;;  %v4003_v19 = vadd.f32 %v4002_v13, %v3890_v42  ;;  %v4115_v54 = vpop.f32.mrf.mxu1  ;;  %v7471_v30 = vld [vmem:[#allocation63_spill] sm:$0xff]  ;;  %v7472_v55 = vld [vmem:[#allocation66_spill] sm:$0xff] }
 0x325   :  { %4332 = vadd.xlane.f32.xlu1 %v4331_v40  ;;  %v4004_v6 = vpop.f32.mrf.mxu0  ;;  %v4335_v41 = vadd.f32 %v7463_v61, %v4264_v50  ;;  %v3793_v42 = vadd.f32 %v7470_v43, %v6897_v26  ;;  %v3904_v1 = vadd.f32 %v7471_v30, %v3791_v46  ;;  %v3797_v44 = vadd.f32 %v7472_v55, %v6889_v60 }
 0x326   :  { %v4268_v47 = vmul.f32 %v6926_v48, %v4182_v39  ;;  %v4183_v63 = vmax.f32 %v4112_v4, 0.0  ;;  %v4116_v53 = vadd.f32 %v4115_v54, %v4003_v19  ;;  %v4005_v62 = vadd.f32 %v4004_v6, %v3892_v10  ;;  %v4117_v51 = vpop.f32.mrf.mxu1  ;;  %v7474_v19 = vld [vmem:[#allocation65_spill] sm:$0xff] }
 0x327   :  { %v4006_v20 = vpop.f32.mrf.mxu0  ;;  %v4336_v36 = vadd.f32 %v4335_v41, %v4265_v15  ;;  %v3906_v54 = vadd.f32 %v7474_v19, %v3793_v42 }
 0x328   :  { %v4269_v57 = vmul.f32 %v6932_v34, %v4183_v63  ;;  %v4186_v56 = vmax.f32 %v4116_v53, 0.0  ;;  %v4118_v25 = vadd.f32 %v4117_v51, %v4005_v62  ;;  %v4007_v27 = vadd.f32 %v4006_v20, %v3894_v16  ;;  %v4119_v37 = vpop.f32.mrf.mxu1  ;;  %v7476_v53 = vld [vmem:[#allocation67_spill] sm:$0xff]  ;;  %v7477_v51 = vld [vmem:[#allocation70_spill] sm:$0xff] }
 0x329   :  { %4337 = vadd.xlane.f32.xlu0 %v4336_v36  ;;  %v4008_v31 = vpop.f32.mrf.mxu0  ;;  %v4340_v23 = vadd.f32 %v7468_v35, %v4268_v47  ;;  %v3799_v16 = vadd.f32 %v7475_v52, %v6897_v26  ;;  %v3910_v62 = vadd.f32 %v7476_v53, %v3797_v44  ;;  %v3801_v38 = vadd.f32 %v7477_v51, %v6889_v60 }
 0x32a   :  { %v4272_v2 = vmul.f32 %v6926_v48, %v4186_v56  ;;  %v4187_v0 = vmax.f32 %v4118_v25, 0.0  ;;  %v4120_v33 = vadd.f32 %v4119_v37, %v4007_v27  ;;  %v4009_v58 = vadd.f32 %v4008_v31, %v3896_v8  ;;  %v4121_v9 = vpop.f32.mrf.mxu1  ;;  %v7479_v27 = vld [vmem:[#allocation69_spill] sm:$0xff] }
 0x32b   :  { %v4012_v17 = vpop.f32.mrf.mxu0  ;;  %v4341_v5 = vadd.f32 %v4340_v23, %v4269_v57  ;;  %v3912_v37 = vadd.f32 %v7479_v27, %v3799_v16  ;;  %v7485_v16 = vld [vmem:[#allocation48_spill] sm:$0xff]  ;;  %v7073_v27 = vstv %s7138_s8  ;;  %s5386_s8 = smov [#allocation8]  }
 0x32c   :  { %v4273_v21 = vmul.f32 %v6932_v34, %v4187_v0  ;;  %v4190_v32 = vmax.f32 %v4120_v33, 0.0  ;;  %v4122_v29 = vadd.f32 %v4121_v9, %v4009_v58  ;;  %v4013_v50 = vadd.f32 %v4012_v17, %v3900_v18  ;;  %v4125_v7 = vpop.f32.mrf.mxu1  ;;  %v7481_v0 = vld [vmem:[#allocation71_spill] sm:$0xff]  ;;  %v7482_v9 = vld [vmem:[#allocation46_spill] sm:$0xff]  ;;  %s4527_s19 = sshll.u32 %s5386_s8, 4  ;;  %s4528_s19 = int_to_ptr.vmem [resolvable:$true] %s4527_s19 }
 0x32d   :  { %4342 = vadd.xlane.f32.xlu1 %v4341_v5  ;;  %v4014_v10 = vpop.f32.mrf.mxu0  ;;  %v4345_v11 = vadd.f32 %v7473_v45, %v4272_v2  ;;  %v3803_v18 = vadd.f32 %v7480_v28, %v6897_v26  ;;  %v3914_v33 = vadd.f32 %v7481_v0, %v3801_v38  ;;  %v7483_v5 = vld [vmem:[#allocation73_spill] sm:$0xff]  ;;  %s5353_s20 = scalar_lea.vmem %s4528_s19, 16  ;;  %s5357_s21 = scalar_lea.vmem %s4528_s19, 32 }
 0x32e   :  { %v4276_v13 = vmul.f32 %v6926_v48, %v4190_v32  ;;  %v4191_v40 = vmax.f32 %v4122_v29, 0.0  ;;  %v4126_v15 = vadd.f32 %v4125_v7, %v4013_v50  ;;  %v4015_v39 = vadd.f32 %v4014_v10, %v3902_v59  ;;  %v4127_v4 = vpop.f32.mrf.mxu1  ;;  %v7484_v10 = vld [vmem:[#allocation47_spill] sm:$0xff]  ;;  %p5354_p10 = scmp.ne.s32.totalorder %s4528_s19, %s5353_s20  ;;  %p5358_p11 = scmp.lt.s32.totalorder %s4528_s19, %s4528_s19 }
 0x32f   :  { %v4016_v3 = vpop.f32.mrf.mxu0  ;;  %v4346_v12 = vadd.f32 %v4345_v11, %v4273_v21  ;;  %v3916_v21 = vadd.f32 %v7483_v5, %v3803_v18  ;;  %p5359_p12 = scmp.lt.s32.totalorder %s5357_s21, %s5353_s20 }
 0x330   :  { %v4277_v6 = vmul.f32 %v6932_v34, %v4191_v40  ;;  %v4194_v61 = vmax.f32 %v4126_v15, 0.0  ;;  %v4128_v41 = vadd.f32 %v4127_v4, %v4015_v39  ;;  %v4017_v47 = vadd.f32 %v4016_v3, %v3904_v1  ;;  %v4129_v63 = vpop.f32.mrf.mxu1 }
 0x331   :  { %4347 = vadd.xlane.f32.xlu0 %v4346_v12  ;;  %v4018_v8 = vpop.f32.mrf.mxu0  ;;  %v4350_v49 = vadd.f32 %v7478_v14, %v4276_v13  ;;  %v7487_v14 = vlaneseq  ;;  %p5360_p13 = por %p5359_p12, %p5358_p11 }
 0x332   :  { %v4280_v20 = vmul.f32 %v6926_v48, %v4194_v61  ;;  %v4195_v36 = vmax.f32 %v4128_v41, 0.0  ;;  %v4130_v57 = vadd.f32 %v4129_v63, %v4017_v47  ;;  %v4019_v56 = vadd.f32 %v4018_v8, %v3906_v54  ;;  %v4131_v25 = vpop.f32.mrf.mxu1  ;;  %v7486_v47 = vld [vmem:[#allocation49_spill] sm:$0xff] }
 0x333   :  { %v4022_v22 = vpop.f32.mrf.mxu0  ;;  %v4351_v46 = vadd.f32 %v4350_v49, %v4277_v6  ;;  %v7064_v49 = vand.u32 127, %v7487_v14  ;;  %p5361_p0 = pnand %p5360_p13, %p5354_p10 }
 0x334   :  { %v4281_v31 = vmul.f32 %v6932_v34, %v4195_v36  ;;  %v4198_v60 = vmax.f32 %v4130_v57, 0.0  ;;  %v4132_v35 = vadd.f32 %v4131_v25, %v4019_v56  ;;  %v4023_v23 = vadd.f32 %v4022_v22, %v3910_v62  ;;  %v4135_v2 = vpop.f32.mrf.mxu1 }
 0x335   :  { %4352 = vadd.xlane.f32.xlu1 %v4351_v46  ;;  %v4024_v58 = vpop.f32.mrf.mxu0  ;;  %v4355_v24 = vadd.f32 %v7482_v9, %v4280_v20  ;;  %v4414_v36 = vadd.s32 4294967288, %v7064_v49  ;;  %v4435_v56 = vadd.s32 4294967264, %v7064_v49  ;;  %v4442_v18 = vadd.s32 4294967256, %v7064_v49 }
 0x336   :  { %v4284_v59 = vmul.f32 %v6926_v48, %v4198_v60  ;;  %v4199_v43 = vmax.f32 %v4132_v35, 0.0  ;;  %v4136_v42 = vadd.f32 %v4135_v2, %v4023_v23  ;;  %v4025_v17 = vadd.f32 %v4024_v58, %v3912_v37  ;;  %v4137_v26 = vpop.f32.mrf.mxu1  ;;  %v7488_v37 = vld [vmem:[#allocation94_spill] sm:$0xff] }
 0x337   :  { %v4026_v32 = vpop.f32.mrf.mxu0  ;;  %v4356_v29 = vadd.f32 %v4355_v24, %v4281_v31  ;;  %v4412_v28 = vsub.s32 %v7064_v49, %v7488_v37  ;;  %v4417_v22 = vsub.s32 %v4414_v36, %v7488_v37  ;;  %v4449_v31 = vadd.s32 4294967248, %v7064_v49 }
 0x338   :  { %v4285_v50 = vmul.f32 %v6932_v34, %v4199_v43  ;;  %v4202_v7 = vmax.f32 %v4136_v42, 0.0  ;;  %v4138_v30 = vadd.f32 %v4137_v26, %v4025_v17  ;;  %v4027_v1 = vadd.f32 %v4026_v32, %v3914_v33  ;;  %v4139_v55 = vpop.f32.mrf.mxu1 }
 0x339   :  { %4357 = vadd.xlane.f32.xlu0 %v4356_v29  ;;  %v4028_v44 = vpop.f32.mrf.mxu0  ;;  %v4360_v45 = vadd.f32 %v7484_v10, %v4284_v59  ;;  %v4456_v23 = vadd.s32 4294967240, %v7064_v49  ;;  %v4438_v0 = vsub.s32 %v4435_v56, %v7488_v37  ;;  %v4463_v33 = vadd.s32 4294967232, %v7064_v49 }
 0x33a   :  { %v4288_v11 = vmul.f32 %v6926_v48, %v4202_v7  ;;  %v4203_v13 = vmax.f32 %v4138_v30, 0.0  ;;  %v4140_v40 = vadd.f32 %v4139_v55, %v4027_v1  ;;  %v4029_v15 = vadd.f32 %v4028_v44, %v3916_v21  ;;  %v4141_v39 = vpop.f32.mrf.mxu1 }
 0x33b   :  { %v4361_v4 = vadd.f32 %v4360_v45, %v4285_v50  ;;  %v4445_v24 = vsub.s32 %v4442_v18, %v7488_v37  ;;  %v4470_v59 = vadd.s32 4294967224, %v7064_v49  ;;  %v4452_v17 = vsub.s32 %v4449_v31, %v7488_v37 }
 0x33c   :  { %v4289_v19 = vmul.f32 %v6932_v34, %v4203_v13  ;;  %v4206_v54 = vmax.f32 %v4140_v40, 0.0  ;;  %v4142_v52 = vadd.f32 %v4141_v39, %v4029_v15  ;;  %v4365_v3 = vadd.f32 %v7485_v16, %v4288_v11 }
 0x33d   :  { %4362 = vadd.xlane.f32.xlu1 %v4361_v4  ;;  %v4459_v21 = vsub.s32 %v4456_v23, %v7488_v37  ;;  %v4477_v32 = vadd.s32 4294967216, %v7064_v49  ;;  %v4466_v7 = vsub.s32 %v4463_v33, %v7488_v37  ;;  %v4484_v1 = vadd.s32 4294967208, %v7064_v49 }
 0x33e   :  { %v4292_v12 = vmul.f32 %v6926_v48, %v4206_v54  ;;  %v4207_v6 = vmax.f32 %v4142_v52, 0.0  ;;  %v4366_v61 = vadd.f32 %v4365_v3, %v4289_v19  ;;  %v4421_v48 = vadd.s32 4294967280, %v7064_v49 }
 0x33f   :  { %v4473_v10 = vsub.s32 %v4470_v59, %v7488_v37  ;;  %v4491_v15 = vadd.s32 4294967200, %v7064_v49  ;;  %v4480_v19 = vsub.s32 %v4477_v32, %v7488_v37  ;;  %v4498_v54 = vadd.s32 4294967192, %v7064_v49 }
 0x340   :  { %v4293_v41 = vmul.f32 %v6932_v34, %v4207_v6  ;;  %4367 = vadd.xlane.f32.xlu0 %v4366_v61  ;;  %v4370_v63 = vadd.f32 %v7486_v47, %v4292_v12  ;;  %v4428_v34 = vadd.s32 4294967272, %v7064_v49  ;;  %v4424_v46 = vsub.s32 %v4421_v48, %v7488_v37 }
 0x341   :  { %v4487_v12 = vsub.s32 %v4484_v1, %v7488_v37  ;;  %v4501_v48 = vsub.s32 %v4498_v54, %v7488_v37 }
 0x342   :  { %v4371_v53 = vadd.f32 %v4370_v63, %v4293_v41  ;;  %v4431_v35 = vsub.s32 %v4428_v34, %v7488_v37  ;;  %v4505_v63 = vadd.s32 4294967184, %v7064_v49 }
 0x344   :  { %4372 = vadd.xlane.f32.xlu1 %v4371_v53 }
 0x392   :  { %v4298_v62 = vpop.xlane.xlu0 %4297 }
 0x393   :  { %v4376_v43 = vadd.f32 %v7073_v27, %v4298_v62 }
 0x395   :  { %v4413_v45 = vrot.slane %v4376_v43, %v4412_v28 }
 0x396   :  { %v4303_v38 = vpop.xlane.xlu0 %4302 }
 0x397   :  { %v4377_v2 = vadd.f32 %v7073_v27, %v4303_v38  ;;  %v4494_v38 = vsub.s32 %v4491_v15, %v7488_v37 }
 0x399   :  { %v4418_v29 = vrot.slane %v4377_v2, %v4417_v22  ;;  %v4508_v22 = vsub.s32 %v4505_v63, %v7488_v37 }
 0x39a   :  { %v4308_v51 = vpop.xlane.xlu1 %4307 }
 0x39b   :  { %v4378_v9 = vadd.f32 %v7073_v27, %v4308_v51  ;;  %v4420_v52 = vsel %vm4419_vm1, %v4418_v29, %v4413_v45 }
 0x39d   :  { %v4425_v55 = vrot.slane %v4378_v9, %v4424_v46 }
 0x39e   :  { %v4313_v8 = vpop.xlane.xlu1 %4312 }
 0x39f   :  { %v4379_v42 = vadd.f32 %v7073_v27, %v4313_v8  ;;  %v4427_v61 = vsel %vm4426_vm2, %v4425_v55, %v4420_v52 }
 0x3a1   :  { %v4432_v11 = vrot.slane %v4379_v42, %v4431_v35 }
 0x3a2   :  { %v4318_v20 = vpop.xlane.xlu0 %4317 }
 0x3a3   :  { %v4380_v5 = vadd.f32 %v7073_v27, %v4318_v20  ;;  %v4434_v53 = vsel %vm4433_vm3, %v4432_v11, %v4427_v61 }
 0x3a5   :  { %v4439_v39 = vrot.slane %v4380_v5, %v4438_v0 }
 0x3a6   :  { %v4323_v57 = vpop.xlane.xlu1 %4322 }
 0x3a7   :  { %v4381_v50 = vadd.f32 %v7073_v27, %v4323_v57  ;;  %v4441_v14 = vsel %vm4440_vm4, %v4439_v39, %v4434_v53 }
 0x3a9   :  { %v4446_v16 = vrot.slane %v4381_v50, %v4445_v24 }
 0x3aa   :  { %v4328_v25 = vpop.xlane.xlu0 %4327 }
 0x3ab   :  { %v4382_v44 = vadd.f32 %v7073_v27, %v4328_v25  ;;  %v4448_v57 = vsel %vm4447_vm5, %v4446_v16, %v4441_v14  ;;  %v4512_v25 = vadd.s32 4294967176, %v7064_v49 }
 0x3ad   :  { %v4453_v41 = vrot.slane %v4382_v44, %v4452_v17  ;;  %v4515_v33 = vsub.s32 %v4512_v25, %v7488_v37 }
 0x3ae   :  { %v4333_v60 = vpop.xlane.xlu1 %4332 }
 0x3af   :  { %v4383_v13 = vadd.f32 %v7073_v27, %v4333_v60  ;;  %v4455_v28 = vsel %vm4454_vm6, %v4453_v41, %v4448_v57 }
 0x3b1   :  { %v4460_v62 = vrot.slane %v4383_v13, %v4459_v21 }
 0x3b2   :  { %v4338_v58 = vpop.xlane.xlu0 %4337 }
 0x3b3   :  { %v4384_v4 = vadd.f32 %v7073_v27, %v4338_v58  ;;  %v4462_v31 = vsel %vm4461_vm7, %v4460_v62, %v4455_v28 }
 0x3b5   :  { %v4467_v20 = vrot.slane %v4384_v4, %v4466_v7 }
 0x3b6   :  { %v4343_v26 = vpop.xlane.xlu1 %4342 }
 0x3b7   :  { %v4385_v3 = vadd.f32 %v7073_v27, %v4343_v26  ;;  %v4469_v23 = vsel %vm4468_vm8, %v4467_v20, %v4462_v31 }
 0x3b9   :  { %v4474_v34 = vrot.slane %v4385_v3, %v4473_v10 }
 0x3ba   :  { %v4348_v30 = vpop.xlane.xlu0 %4347 }
 0x3bb   :  { %v4386_v47 = vadd.f32 %v7073_v27, %v4348_v30  ;;  %v4476_v0 = vsel %vm4475_vm9, %v4474_v34, %v4469_v23 }
 0x3bd   :  { %v4481_v18 = vrot.slane %v4386_v47, %v4480_v19 }
 0x3be   :  { %v4353_v40 = vpop.xlane.xlu1 %4352 }
 0x3bf   :  { %v4387_v51 = vadd.f32 %v7073_v27, %v4353_v40  ;;  %v4483_v58 = vsel %vm4482_vm10, %v4481_v18, %v4476_v0 }
 0x3c1   :  { %v4488_v60 = vrot.slane %v4387_v51, %v4487_v12 }
 0x3c2   :  { %v4358_v6 = vpop.xlane.xlu0 %4357 }
 0x3c3   :  { %v4388_v36 = vadd.f32 %v7073_v27, %v4358_v6  ;;  %v4490_v59 = vsel %vm4489_vm11, %v4488_v60, %v4483_v58 }
 0x3c5   :  { %v4495_v2 = vrot.slane %v4388_v36, %v4494_v38 }
 0x3c6   :  { %v4363_v8 = vpop.xlane.xlu1 %4362 }
 0x3c7   :  { %v4389_v56 = vadd.f32 %v7073_v27, %v4363_v8  ;;  %v4497_v42 = vsel %vm4496_vm12, %v4495_v2, %v4490_v59 }
 0x3c9   :  { %v4368_v46 = vpop.xlane.xlu0 %4367  ;;  %v4502_v49 = vrot.slane %v4389_v56, %v4501_v48 }
 0x3ca   :  { %v4390_v35 = vadd.f32 %v7073_v27, %v4368_v46 }
 0x3cb   :  { %v4504_v17 = vsel %vm4503_vm13, %v4502_v49, %v4497_v42 }
 0x3cc   :  { %v4509_v9 = vrot.slane %v4390_v35, %v4508_v22 }
 0x3cd   :  { %v4373_v24 = vpop.xlane.xlu1 %4372 }
 0x3ce   :  { %v4391_v43 = vadd.f32 %v7073_v27, %v4373_v24  ;;  %v4511_v5 = vsel %vm4510_vm14, %v4509_v9, %v4504_v17 }
 0x3d0   :  { %v4516_v26 = vrot.slane %v4391_v43, %v4515_v33 }
 0x3d2   :  { %v4518_v21 = vsel %vm4517_vm15, %v4516_v26, %v4511_v5 }
 0x3d3   :  { %4520 = vst [vmem:[#allocation8] sm:$0x1] %v4518_v21 }
 0x3d4   :  { %5364 = shalt.err (!%p5361_p0)
}
 0x3d5   :  { %4530 = dma.vmem_to_hbm [thread:$0]  %s4528_s19, 16, %s7139_s9, [#allocation5]  }
 0x3d6   :  { %5377 = dma.done.wait [#allocation5], 16  }
 0x3d7   :  { %5378 = vsyncadd [#allocation5], 4294967280 }
 0x3d8   :  { %4534 = vsyncpa [#allocation4], 1 }
 0x3d9   :  { %4535 = vsyncpa [#allocation7], 1 }
 0x3da   :  { %4536 = vsyncpa [#allocation5], 1 }

</bundles_post_ra>
